<compile_context>
chip_gen: v7x
topology: tpu7x:2x2x1
jax: 0.10.0
libtpu: 0.0.40
codegen_flags: <defaults>
</compile_context>

<pallas_src>
import jax
import jax.numpy as jnp
import numpy as np
from jax.experimental import pallas as pl
from jax.experimental.pallas import tpu as pltpu


# --------------------------------------------------------------------------
# Pallas kernel
# --------------------------------------------------------------------------
def _relpos_kernel(q_ref, t_ref, o_ref):
    # q_ref: (tbn, H, W*D)  bf16   lane-dense query block
    # t_ref: (H, W*D, W*C)  bf16   fused width+height block-diagonal table
    # o_ref: (tbn, H, W*C)         lane-dense output block
    H = q_ref.shape[1]
    for h in range(H):                       # static unroll, H is small (8)
        o_ref[:, h, :] = jnp.dot(
            q_ref[:, h, :], t_ref[h],
            preferred_element_type=jnp.float32,
        ).astype(o_ref.dtype)


# --------------------------------------------------------------------------
# Wrapper helpers
# --------------------------------------------------------------------------
def _build_fused_table(rel_height, rel_width, H, W, Hk, Wk, dtype=jnp.bfloat16):
    """T[h, w*D + d, v*C + c] = delta(w, v) * ( rel_width[(c % Wk) - w + W - 1, d]
                                              + rel_height[(c // Wk) - h + H - 1, d] )

    i.e. the torch rel_to_abs index shuffle is folded into absolute-indexed
    tables, the column index c = hk*Wk + wk is pre-expanded, the width and
    height terms are pre-summed, and the result is laid out block-diagonally
    over w so a single (tbn, W*D) x (W*D, W*C) matmul per h yields the final
    lane-dense logits."""
    D = rel_width.shape[-1]
    C = Hk * Wk
    iw = jnp.arange(W)
    rel_w_abs = rel_width[iw[None, :] - iw[:, None] + (W - 1)]      # (W, Wk, D)
    ih = jnp.arange(H)
    rel_h_abs = rel_height[ih[None, :] - ih[:, None] + (H - 1)]     # (H, Hk, D)
    rwx = jnp.tile(rel_w_abs, (1, Hk, 1))                           # (W, C, D)
    rhx = jnp.repeat(rel_h_abs, Wk, axis=1)                         # (H, C, D)
    blk = rwx[None, :, :, :] + rhx[:, None, :, :]                   # (H, W, C, D)
    eye_w = jnp.eye(W, dtype=blk.dtype)
    t = jnp.einsum('hwcd,wv->hwdvc', blk, eye_w)                    # (H, W, D, W, C)
    return t.reshape(H, W * D, W * C).astype(dtype)


def _pick_tbn(bn, per_pair_block_bytes, vmem_budget_bytes=8 << 20,
              min_rows_for_split=64, max_tbn=512):
    """How many (b, n) pairs to process per grid step.

    * One big block by default: v5e/v6e have a single TensorCore, so extra grid
      steps are pure serial overhead (~0.35us each) and shrink the matmul M.
    * Split into >=2 "parallel" blocks (v7x megacore) only when each block
      still feeds the MXU at least `min_rows_for_split` rows.
    * The double-buffered q+out working set per step stays under
      `vmem_budget_bytes` (8 MiB), which together with the ~2x2 MiB resident
      table keeps every generation (incl. v5e's 16 MiB scoped default and
      v7x's 64 MiB physical VMEM) comfortably within limits.
    """
    cap = int(max(1, min(max_tbn,
                         vmem_budget_bytes // max(1, per_pair_block_bytes))))
    tbn = max(1, min(bn, cap))
    half = (bn + 1) // 2
    if half >= min_rows_for_split and half < tbn:
        tbn = half                          # >=2 parallel blocks, M still large
    return tbn


# --------------------------------------------------------------------------
# Forward
# --------------------------------------------------------------------------
def rel_pos_emb_forward(q, rel_height, rel_width, hq, wq, hk, wk):
    """q: (b, n, hq*wq, d) -> (b, n, hq*wq, hk*wk).  Requires hk==hq, wk==wq
    (same constraint the torch rel_to_abs trick imposes)."""
    assert hk == hq and wk == wq, "rel_to_abs semantics require hk==hq, wk==wq"
    b, n, L, d = q.shape
    H, W, Hk, Wk = hq, wq, hk, wk
    C = Hk * Wk
    assert L == H * W

    bn = b * n
    out_dtype = q.dtype
    out_itemsize = q.dtype.itemsize

    # Fused, absolute-indexed, block-diagonal table (grid-invariant, ~2 MiB).
    table = _build_fused_table(rel_height, rel_width, H, W, Hk, Wk)   # (H, W*D, W*C)

    # Lane-dense q view: (bn, H, W*D), last dim 256 -- pure reshape + bf16 cast.
    q_in = q.reshape(bn, H, W * d).astype(jnp.bfloat16)

    per_pair_bytes = 2 * (H * W * d * 2 + H * W * C * out_itemsize)   # dbl-buffered
    tbn = _pick_tbn(bn, per_pair_bytes)
    grid_n = -(-bn // tbn)                   # cdiv; pad bn so any bn works
    bn_pad = grid_n * tbn
    if bn_pad != bn:
        q_in = jnp.pad(q_in, ((0, bn_pad - bn), (0, 0), (0, 0)))

    flops = 2 * bn_pad * H * (W * d) * (W * C)
    bytes_accessed = (q_in.size * 2 + table.size * 2
                      + bn_pad * H * W * C * out_itemsize)

    out = pl.pallas_call(
        _relpos_kernel,
        out_shape=jax.ShapeDtypeStruct((bn_pad, H, W * C), out_dtype),
        grid_spec=pltpu.PrefetchScalarGridSpec(
            num_scalar_prefetch=0,
            grid=(grid_n,),
            in_specs=[
                pl.BlockSpec((tbn, H, W * d), lambda i: (i, 0, 0)),
                # Grid-invariant table: constant index_map -> DMA'd once,
                # stays resident in VMEM across all grid steps.
                pl.BlockSpec((H, W * d, W * C), lambda i: (0, 0, 0)),
            ],
            out_specs=pl.BlockSpec((tbn, H, W * C), lambda i: (i, 0, 0)),
        ),
        compiler_params=pltpu.CompilerParams(
            dimension_semantics=("parallel",)),
        cost_estimate=pl.CostEstimate(flops=flops, transcendentals=0,
                                      bytes_accessed=bytes_accessed),
    )(q_in, table)

    if bn_pad != bn:
        out = out[:bn]
    # (bn, H, W*C) has identical element order to (b, n, H*W, Hk*Wk): free reshape.
    return out.reshape(b, n, H * W, C)


# --------------------------------------------------------------------------
# Pure-JAX reference mirroring the torch code (correctness check only)
# --------------------------------------------------------------------------
def _rel_to_abs_ref(x):
    b, nh, l, _ = x.shape
    x = jnp.concatenate([x, jnp.zeros((b, nh, l, 1), x.dtype)], axis=3)
    flat_x = x.reshape(b, nh, l * 2 * l)
    flat_x = jnp.concatenate([flat_x, jnp.zeros((b, nh, l - 1), x.dtype)], axis=2)
    final_x = flat_x.reshape(b, nh, l + 1, 2 * l - 1)
    return final_x[:, :, :l, l - 1:]


def _relative_logits_1d_ref(q, rel_k):
    b, n, hq, wq, _ = q.shape
    logits = jnp.einsum('bnhwd,rd->bnhwr', q, rel_k,
                        precision=jax.lax.Precision.HIGHEST)
    logits = logits.reshape(b, n * hq, wq, -1)
    logits = _rel_to_abs_ref(logits)
    logits = logits.reshape(b, n, hq, wq, wq)
    logits = jnp.broadcast_to(logits[:, :, :, None, :, :],
                              (b, n, hq, hq, wq, wq))
    return logits


def rel_pos_emb_ref(q, rel_height, rel_width, hq, wq):
    b, n, L, d = q.shape
    q5 = q.reshape(b, n, hq, wq, d)
    lw = _relative_logits_1d_ref(q5, rel_width)               # b n hq hk wq wk
    lw = jnp.transpose(lw, (0, 1, 2, 4, 3, 5)).reshape(b, n, hq * wq, hq * wq)
    q5t = jnp.transpose(q5, (0, 1, 3, 2, 4))                  # b n wq hq d
    lh = _relative_logits_1d_ref(q5t, rel_height)             # b n wq wk hq hk
    lh = jnp.transpose(lh, (0, 1, 4, 2, 5, 3)).reshape(b, n, hq * wq, hq * wq)
    return lw + lh


# --------------------------------------------------------------------------
# Main
# --------------------------------------------------------------------------
if __name__ == "__main__":
    hq = wq = hk = wk = 8
    dim_head = 32
    b, n = 2, 4

    key = jax.random.PRNGKey(0)
    k1, k2, k3 = jax.random.split(key, 3)
    scale = dim_head ** -0.5
    rel_height = jax.random.normal(k1, (hk * 2 - 1, dim_head), jnp.float32) * scale
    rel_width = jax.random.normal(k2, (wk * 2 - 1, dim_head), jnp.float32) * scale
    q = jax.random.normal(k3, (b, n, hq * wq, dim_head), jnp.float32)

    out = rel_pos_emb_forward(q, rel_height, rel_width, hq, wq, hk, wk)
    out = jax.block_until_ready(out)

    ref = jax.block_until_ready(rel_pos_emb_ref(q, rel_height, rel_width, hq, wq))
    assert out.shape == (b, n, hq * wq, hk * wk)
    # bf16 matmul operands (f32 MXU accumulation): ~2^-8 relative rounding of the
    # inputs over a 32-term contraction -> observed |err| ~1e-2 worst case here,
    # so the tolerance is widened vs the f32 reference.
    np.testing.assert_allclose(np.asarray(out), np.asarray(ref),
                               rtol=2e-2, atol=2e-2)

    print("KERNEL_OK")
</pallas_src>

<mosaic_0001>
module attributes {stable_mosaic.version = 11 : i64} {
  func.func @_relpos_kernel(%arg0: i32, %arg1: memref<8x8x256xbf16, #tpu.memory_space<vmem>>, %arg2: memref<8x256x512xbf16, #tpu.memory_space<vmem>>, %arg3: memref<8x8x512xf32, #tpu.memory_space<vmem>>) attributes {dimension_semantics = [#tpu.dimension_semantics<parallel>], iteration_bounds = array<i64: 1>, scalar_prefetch = 0 : i64, scratch_operands = 0 : i64, tpu.core_type = #tpu.core_type<tc>, window_params = [{transform_indices = @transform_0, window_bounds = array<i64: 8, 8, 256>}, {pipeline_mode = #tpu.pipeline_mode<synchronous>, transform_indices = @transform_1, window_bounds = array<i64: 8, 256, 512>}, {transform_indices = @transform_2, window_bounds = array<i64: 8, 8, 512>}]} {
    %c0 = arith.constant 0 : index
    %c0_0 = arith.constant 0 : index
    %c0_1 = arith.constant 0 : index
    %0 = vector.load %arg1[%c0, %c0_0, %c0_1] : memref<8x8x256xbf16, #tpu.memory_space<vmem>>, vector<8x1x256xbf16>
    %1 = vector.shape_cast %0 : vector<8x1x256xbf16> to vector<8x256xbf16>
    %c0_2 = arith.constant 0 : index
    %c0_3 = arith.constant 0 : index
    %c0_4 = arith.constant 0 : index
    %2 = vector.load %arg2[%c0_2, %c0_3, %c0_4] : memref<8x256x512xbf16, #tpu.memory_space<vmem>>, vector<1x256x512xbf16>
    %3 = vector.shape_cast %2 : vector<1x256x512xbf16> to vector<256x512xbf16>
    %cst = arith.constant dense<0.000000e+00> : vector<8x512xf32>
    %4 = tpu.matmul %1, %3, %cst {dimension_numbers = #tpu.dot_dimension_numbers<[1], [0], [0], [1], [0, 0, 1, 1], [], []>} : vector<8x256xbf16>, vector<256x512xbf16>, vector<8x512xf32> -> vector<8x512xf32>
    %c0_5 = arith.constant 0 : index
    %c0_6 = arith.constant 0 : index
    %c0_7 = arith.constant 0 : index
    %5 = vector.load %arg3[%c0_5, %c0_6, %c0_7] : memref<8x8x512xf32, #tpu.memory_space<vmem>>, vector<8x1x512xf32>
    %6 = vector.shape_cast %5 : vector<8x1x512xf32> to vector<8x512xf32>
    %7 = vector.shape_cast %4 : vector<8x512xf32> to vector<8x1x512xf32>
    tpu.vector_store %arg3[%c0_5, %c0_6, %c0_7], %7 {strides = array<i32>} : memref<8x8x512xf32, #tpu.memory_space<vmem>>, vector<8x1x512xf32>,
    %c0_8 = arith.constant 0 : index
    %c1 = arith.constant 1 : index
    %c0_9 = arith.constant 0 : index
    %8 = vector.load %arg1[%c0_8, %c1, %c0_9] : memref<8x8x256xbf16, #tpu.memory_space<vmem>>, vector<8x1x256xbf16>
    %9 = vector.shape_cast %8 : vector<8x1x256xbf16> to vector<8x256xbf16>
    %c1_10 = arith.constant 1 : index
    %c0_11 = arith.constant 0 : index
    %c0_12 = arith.constant 0 : index
    %10 = vector.load %arg2[%c1_10, %c0_11, %c0_12] : memref<8x256x512xbf16, #tpu.memory_space<vmem>>, vector<1x256x512xbf16>
    %11 = vector.shape_cast %10 : vector<1x256x512xbf16> to vector<256x512xbf16>
    %cst_13 = arith.constant dense<0.000000e+00> : vector<8x512xf32>
    %12 = tpu.matmul %9, %11, %cst_13 {dimension_numbers = #tpu.dot_dimension_numbers<[1], [0], [0], [1], [0, 0, 1, 1], [], []>} : vector<8x256xbf16>, vector<256x512xbf16>, vector<8x512xf32> -> vector<8x512xf32>
    %c0_14 = arith.constant 0 : index
    %c1_15 = arith.constant 1 : index
    %c0_16 = arith.constant 0 : index
    %13 = vector.load %arg3[%c0_14, %c1_15, %c0_16] : memref<8x8x512xf32, #tpu.memory_space<vmem>>, vector<8x1x512xf32>
    %14 = vector.shape_cast %13 : vector<8x1x512xf32> to vector<8x512xf32>
    %15 = vector.shape_cast %12 : vector<8x512xf32> to vector<8x1x512xf32>
    tpu.vector_store %arg3[%c0_14, %c1_15, %c0_16], %15 {strides = array<i32>} : memref<8x8x512xf32, #tpu.memory_space<vmem>>, vector<8x1x512xf32>,
    %c0_17 = arith.constant 0 : index
    %c2 = arith.constant 2 : index
    %c0_18 = arith.constant 0 : index
    %16 = vector.load %arg1[%c0_17, %c2, %c0_18] : memref<8x8x256xbf16, #tpu.memory_space<vmem>>, vector<8x1x256xbf16>
    %17 = vector.shape_cast %16 : vector<8x1x256xbf16> to vector<8x256xbf16>
    %c2_19 = arith.constant 2 : index
    %c0_20 = arith.constant 0 : index
    %c0_21 = arith.constant 0 : index
    %18 = vector.load %arg2[%c2_19, %c0_20, %c0_21] : memref<8x256x512xbf16, #tpu.memory_space<vmem>>, vector<1x256x512xbf16>
    %19 = vector.shape_cast %18 : vector<1x256x512xbf16> to vector<256x512xbf16>
    %cst_22 = arith.constant dense<0.000000e+00> : vector<8x512xf32>
    %20 = tpu.matmul %17, %19, %cst_22 {dimension_numbers = #tpu.dot_dimension_numbers<[1], [0], [0], [1], [0, 0, 1, 1], [], []>} : vector<8x256xbf16>, vector<256x512xbf16>, vector<8x512xf32> -> vector<8x512xf32>
    %c0_23 = arith.constant 0 : index
    %c2_24 = arith.constant 2 : index
    %c0_25 = arith.constant 0 : index
    %21 = vector.load %arg3[%c0_23, %c2_24, %c0_25] : memref<8x8x512xf32, #tpu.memory_space<vmem>>, vector<8x1x512xf32>
    %22 = vector.shape_cast %21 : vector<8x1x512xf32> to vector<8x512xf32>
    %23 = vector.shape_cast %20 : vector<8x512xf32> to vector<8x1x512xf32>
    tpu.vector_store %arg3[%c0_23, %c2_24, %c0_25], %23 {strides = array<i32>} : memref<8x8x512xf32, #tpu.memory_space<vmem>>, vector<8x1x512xf32>,
    %c0_26 = arith.constant 0 : index
    %c3 = arith.constant 3 : index
    %c0_27 = arith.constant 0 : index
    %24 = vector.load %arg1[%c0_26, %c3, %c0_27] : memref<8x8x256xbf16, #tpu.memory_space<vmem>>, vector<8x1x256xbf16>
    %25 = vector.shape_cast %24 : vector<8x1x256xbf16> to vector<8x256xbf16>
    %c3_28 = arith.constant 3 : index
    %c0_29 = arith.constant 0 : index
    %c0_30 = arith.constant 0 : index
    %26 = vector.load %arg2[%c3_28, %c0_29, %c0_30] : memref<8x256x512xbf16, #tpu.memory_space<vmem>>, vector<1x256x512xbf16>
    %27 = vector.shape_cast %26 : vector<1x256x512xbf16> to vector<256x512xbf16>
    %cst_31 = arith.constant dense<0.000000e+00> : vector<8x512xf32>
    %28 = tpu.matmul %25, %27, %cst_31 {dimension_numbers = #tpu.dot_dimension_numbers<[1], [0], [0], [1], [0, 0, 1, 1], [], []>} : vector<8x256xbf16>, vector<256x512xbf16>, vector<8x512xf32> -> vector<8x512xf32>
    %c0_32 = arith.constant 0 : index
    %c3_33 = arith.constant 3 : index
    %c0_34 = arith.constant 0 : index
    %29 = vector.load %arg3[%c0_32, %c3_33, %c0_34] : memref<8x8x512xf32, #tpu.memory_space<vmem>>, vector<8x1x512xf32>
    %30 = vector.shape_cast %29 : vector<8x1x512xf32> to vector<8x512xf32>
    %31 = vector.shape_cast %28 : vector<8x512xf32> to vector<8x1x512xf32>
    tpu.vector_store %arg3[%c0_32, %c3_33, %c0_34], %31 {strides = array<i32>} : memref<8x8x512xf32, #tpu.memory_space<vmem>>, vector<8x1x512xf32>,
    %c0_35 = arith.constant 0 : index
    %c4 = arith.constant 4 : index
    %c0_36 = arith.constant 0 : index
    %32 = vector.load %arg1[%c0_35, %c4, %c0_36] : memref<8x8x256xbf16, #tpu.memory_space<vmem>>, vector<8x1x256xbf16>
    %33 = vector.shape_cast %32 : vector<8x1x256xbf16> to vector<8x256xbf16>
    %c4_37 = arith.constant 4 : index
    %c0_38 = arith.constant 0 : index
    %c0_39 = arith.constant 0 : index
    %34 = vector.load %arg2[%c4_37, %c0_38, %c0_39] : memref<8x256x512xbf16, #tpu.memory_space<vmem>>, vector<1x256x512xbf16>
    %35 = vector.shape_cast %34 : vector<1x256x512xbf16> to vector<256x512xbf16>
    %cst_40 = arith.constant dense<0.000000e+00> : vector<8x512xf32>
    %36 = tpu.matmul %33, %35, %cst_40 {dimension_numbers = #tpu.dot_dimension_numbers<[1], [0], [0], [1], [0, 0, 1, 1], [], []>} : vector<8x256xbf16>, vector<256x512xbf16>, vector<8x512xf32> -> vector<8x512xf32>
    %c0_41 = arith.constant 0 : index
    %c4_42 = arith.constant 4 : index
    %c0_43 = arith.constant 0 : index
    %37 = vector.load %arg3[%c0_41, %c4_42, %c0_43] : memref<8x8x512xf32, #tpu.memory_space<vmem>>, vector<8x1x512xf32>
    %38 = vector.shape_cast %37 : vector<8x1x512xf32> to vector<8x512xf32>
    %39 = vector.shape_cast %36 : vector<8x512xf32> to vector<8x1x512xf32>
    tpu.vector_store %arg3[%c0_41, %c4_42, %c0_43], %39 {strides = array<i32>} : memref<8x8x512xf32, #tpu.memory_space<vmem>>, vector<8x1x512xf32>,
    %c0_44 = arith.constant 0 : index
    %c5 = arith.constant 5 : index
    %c0_45 = arith.constant 0 : index
    %40 = vector.load %arg1[%c0_44, %c5, %c0_45] : memref<8x8x256xbf16, #tpu.memory_space<vmem>>, vector<8x1x256xbf16>
    %41 = vector.shape_cast %40 : vector<8x1x256xbf16> to vector<8x256xbf16>
    %c5_46 = arith.constant 5 : index
    %c0_47 = arith.constant 0 : index
    %c0_48 = arith.constant 0 : index
    %42 = vector.load %arg2[%c5_46, %c0_47, %c0_48] : memref<8x256x512xbf16, #tpu.memory_space<vmem>>, vector<1x256x512xbf16>
    %43 = vector.shape_cast %42 : vector<1x256x512xbf16> to vector<256x512xbf16>
    %cst_49 = arith.constant dense<0.000000e+00> : vector<8x512xf32>
    %44 = tpu.matmul %41, %43, %cst_49 {dimension_numbers = #tpu.dot_dimension_numbers<[1], [0], [0], [1], [0, 0, 1, 1], [], []>} : vector<8x256xbf16>, vector<256x512xbf16>, vector<8x512xf32> -> vector<8x512xf32>
    %c0_50 = arith.constant 0 : index
    %c5_51 = arith.constant 5 : index
    %c0_52 = arith.constant 0 : index
    %45 = vector.load %arg3[%c0_50, %c5_51, %c0_52] : memref<8x8x512xf32, #tpu.memory_space<vmem>>, vector<8x1x512xf32>
    %46 = vector.shape_cast %45 : vector<8x1x512xf32> to vector<8x512xf32>
    %47 = vector.shape_cast %44 : vector<8x512xf32> to vector<8x1x512xf32>
    tpu.vector_store %arg3[%c0_50, %c5_51, %c0_52], %47 {strides = array<i32>} : memref<8x8x512xf32, #tpu.memory_space<vmem>>, vector<8x1x512xf32>,
    %c0_53 = arith.constant 0 : index
    %c6 = arith.constant 6 : index
    %c0_54 = arith.constant 0 : index
    %48 = vector.load %arg1[%c0_53, %c6, %c0_54] : memref<8x8x256xbf16, #tpu.memory_space<vmem>>, vector<8x1x256xbf16>
    %49 = vector.shape_cast %48 : vector<8x1x256xbf16> to vector<8x256xbf16>
    %c6_55 = arith.constant 6 : index
    %c0_56 = arith.constant 0 : index
    %c0_57 = arith.constant 0 : index
    %50 = vector.load %arg2[%c6_55, %c0_56, %c0_57] : memref<8x256x512xbf16, #tpu.memory_space<vmem>>, vector<1x256x512xbf16>
    %51 = vector.shape_cast %50 : vector<1x256x512xbf16> to vector<256x512xbf16>
    %cst_58 = arith.constant dense<0.000000e+00> : vector<8x512xf32>
    %52 = tpu.matmul %49, %51, %cst_58 {dimension_numbers = #tpu.dot_dimension_numbers<[1], [0], [0], [1], [0, 0, 1, 1], [], []>} : vector<8x256xbf16>, vector<256x512xbf16>, vector<8x512xf32> -> vector<8x512xf32>
    %c0_59 = arith.constant 0 : index
    %c6_60 = arith.constant 6 : index
    %c0_61 = arith.constant 0 : index
    %53 = vector.load %arg3[%c0_59, %c6_60, %c0_61] : memref<8x8x512xf32, #tpu.memory_space<vmem>>, vector<8x1x512xf32>
    %54 = vector.shape_cast %53 : vector<8x1x512xf32> to vector<8x512xf32>
    %55 = vector.shape_cast %52 : vector<8x512xf32> to vector<8x1x512xf32>
    tpu.vector_store %arg3[%c0_59, %c6_60, %c0_61], %55 {strides = array<i32>} : memref<8x8x512xf32, #tpu.memory_space<vmem>>, vector<8x1x512xf32>,
    %c0_62 = arith.constant 0 : index
    %c7 = arith.constant 7 : index
    %c0_63 = arith.constant 0 : index
    %56 = vector.load %arg1[%c0_62, %c7, %c0_63] : memref<8x8x256xbf16, #tpu.memory_space<vmem>>, vector<8x1x256xbf16>
    %57 = vector.shape_cast %56 : vector<8x1x256xbf16> to vector<8x256xbf16>
    %c7_64 = arith.constant 7 : index
    %c0_65 = arith.constant 0 : index
    %c0_66 = arith.constant 0 : index
    %58 = vector.load %arg2[%c7_64, %c0_65, %c0_66] : memref<8x256x512xbf16, #tpu.memory_space<vmem>>, vector<1x256x512xbf16>
    %59 = vector.shape_cast %58 : vector<1x256x512xbf16> to vector<256x512xbf16>
    %cst_67 = arith.constant dense<0.000000e+00> : vector<8x512xf32>
    %60 = tpu.matmul %57, %59, %cst_67 {dimension_numbers = #tpu.dot_dimension_numbers<[1], [0], [0], [1], [0, 0, 1, 1], [], []>} : vector<8x256xbf16>, vector<256x512xbf16>, vector<8x512xf32> -> vector<8x512xf32>
    %c0_68 = arith.constant 0 : index
    %c7_69 = arith.constant 7 : index
    %c0_70 = arith.constant 0 : index
    %61 = vector.load %arg3[%c0_68, %c7_69, %c0_70] : memref<8x8x512xf32, #tpu.memory_space<vmem>>, vector<8x1x512xf32>
    %62 = vector.shape_cast %61 : vector<8x1x512xf32> to vector<8x512xf32>
    %63 = vector.shape_cast %60 : vector<8x512xf32> to vector<8x1x512xf32>
    tpu.vector_store %arg3[%c0_68, %c7_69, %c0_70], %63 {strides = array<i32>} : memref<8x8x512xf32, #tpu.memory_space<vmem>>, vector<8x1x512xf32>,
    return
  }
  func.func @transform_0(%arg0: i32) -> (i32, i32, i32) {
    %c0_i32 = arith.constant 0 : i32
    %c0_i32_0 = arith.constant 0 : i32
    %c0_i32_1 = arith.constant 0 : i32
    return %arg0, %c0_i32, %c0_i32_0 : i32, i32, i32
  }
  func.func @transform_1(%arg0: i32) -> (i32, i32, i32) {
    %c0_i32 = arith.constant 0 : i32
    %c0_i32_0 = arith.constant 0 : i32
    %c0_i32_1 = arith.constant 0 : i32
    %c0_i32_2 = arith.constant 0 : i32
    return %c0_i32, %c0_i32_0, %c0_i32_1 : i32, i32, i32
  }
  func.func @transform_2(%arg0: i32) -> (i32, i32, i32) {
    %c0_i32 = arith.constant 0 : i32
    %c0_i32_0 = arith.constant 0 : i32
    %c0_i32_1 = arith.constant 0 : i32
    return %arg0, %c0_i32, %c0_i32_0 : i32, i32, i32
  }
}

</mosaic_0001>

<bundles_post_ra>
// kernel: tpu_custom_call.1
= control target key start
LH: loop header
LB: loop body
LE: loop exit
PB: predicated region body
PF: predicated region fallthrough
CT: control target
= control target key end

     0   :  { %7 = vsyncpa [#allocation3], 0  ;;  %s7717_s0 = inlined_call_operand.hbm [shape: bf16[8,8,256], index: 0, kind: input, shape index: {}]   ;;  %s7718_s1 = inlined_call_operand.hbm [shape: bf16[8,256,512], index: 1, kind: input, shape index: {}]   ;;  %s7719_s2 = inlined_call_operand.hbm [shape: f32[8,8,512], index: 2, kind: output, shape index: {}]  }
   0x1   :  { %8 = vsyncpa [#allocation6], 0 }
   0x2   :  { %9 = vsyncpa [#allocation4], 0  ;;  %s7021_s9 = smov [#allocation2]   ;;  %s6949_s13 = scalar_lea.hbm %s7717_s0, 1024 }
   0x3   :  { %s15_s10 = sshll.u32 %s7021_s9, 4  ;;  %p6950_p0 = scmp.ne.s32.totalorder %s7717_s0, %s6949_s13  ;;  %s16_s10 = int_to_ptr.vmem [resolvable:$true] %s15_s10 }
   0x4   :  { %p6953_p1 = scmp.lt.u32.totalorder %s6949_s13, %s7717_s0 }
   0x6   :  { %p6955_p2 = pnand %p6953_p1, %p6950_p0 }
   0x8   :  { %6958 = shalt.err (!%p6955_p2)
}
   0x9   :  { %s6959_s18 = scalar_lea.vmem %s16_s10, 1024  ;;  %p6964_p4 = scmp.lt.s32.totalorder %s16_s10, %s16_s10 }
   0xa   :  { %p6960_p3 = scmp.ne.s32.totalorder %s16_s10, %s6959_s18  ;;  %p6965_p5 = scmp.lt.s32.totalorder %s6959_s18, %s6959_s18 }
   0xc   :  { %p6966_p6 = por %p6965_p5, %p6964_p4 }
   0xe   :  { %p6967_p7 = pnand %p6966_p6, %p6960_p3 }
  0x10   :  { %6970 = shalt.err (!%p6967_p7)
}
  0x11   :  { %s7022_s19 = smov 128   ;;  %s7023_s20 = smov 8  }
  0x12   :  { %21 = dma.hbm_to_vmem [thread:$0]  %s7717_s0, 1024, %s16_s10, [#allocation3], %s7022_s19, %s7022_s19, %s7023_s20  }
  0x13   :  { %s7024_s23 = smov [#allocation5]   ;;  %s6971_s27 = scalar_lea.hbm %s7718_s1, 65536 }
  0x14   :  { %s27_s24 = sshll.u32 %s7024_s23, 4  ;;  %p6972_p8 = scmp.ne.s32.totalorder %s7718_s1, %s6971_s27  ;;  %s28_s24 = int_to_ptr.vmem [resolvable:$true] %s27_s24 }
  0x15   :  { %p6975_p9 = scmp.lt.u32.totalorder %s6971_s27, %s7718_s1 }
  0x17   :  { %p6977_p10 = pnand %p6975_p9, %p6972_p8 }
  0x19   :  { %6980 = shalt.err (!%p6977_p10)
}
  0x1a   :  { %s6981_s4 = scalar_lea.vmem %s28_s24, 65536  ;;  %p6986_p12 = scmp.lt.s32.totalorder %s28_s24, %s28_s24 }
  0x1b   :  { %p6982_p11 = scmp.ne.s32.totalorder %s28_s24, %s6981_s4  ;;  %p6987_p13 = scmp.lt.s32.totalorder %s6981_s4, %s6981_s4 }
  0x1d   :  { %p6988_p0 = por %p6987_p13, %p6986_p12 }
  0x1f   :  { %p6989_p1 = pnand %p6988_p0, %p6982_p11 }
  0x21   :  { %6992 = shalt.err (!%p6989_p1)
}
  0x22   :  { %s7025_s0 = smov 256   ;;  %s7026_s5 = smov 16  }
  0x23   :  { %33 = dma.hbm_to_vmem [thread:$0]  %s7718_s1, 65536, %s28_s24, [#allocation6], %s7025_s0, %s7025_s0, %s7026_s5  }
  0x24   :  { %7015 = dma.done.wait [#allocation3], 1024  }
  0x25   :  { %7016 = vsyncadd [#allocation3], 4294966272 }
  0x26   :  { %7017 = dma.done.wait [#allocation6], 65536  }
  0x27   :  { %7018 = vsyncadd [#allocation6], 4294901760  ;;  %v6053_v0 = vld [vmem:[#allocation5 + $0x4] ss:$16 sps:$4 sm:$0xff]   ;;  %v6055_v1 = vld [vmem:[#allocation5 + $0xc] ss:$16 sps:$4 sm:$0xff]  }
  0x28   :  { %527 = vmatprep.subr.bf16.mxu0 %v6053_v0  ;;  %v6057_v2 = vld [vmem:[#allocation5] ss:$16 sps:$4 sm:$0xff]   ;;  %v6058_v3 = vld [vmem:[#allocation5 + $0x8] ss:$16 sps:$4 sm:$0xff]   ;;  %568 = vmatprep.subr.bf16.mxu1 %v6055_v1  ;;  %v6059_v4 = vld [vmem:[#allocation5 + $0x24] ss:$16 sps:$4 sm:$0xff]  }
  0x29   :  { %528 = vmatpush1.bf16.msra.mxu0 %v6057_v2  ;;  %569 = vmatpush1.bf16.msra.mxu1 %v6058_v3  ;;  %v6061_v5 = vld [vmem:[#allocation5 + $0x2c] ss:$16 sps:$4 sm:$0xff]   ;;  %v6063_v6 = vld [vmem:[#allocation5 + $0x20] ss:$16 sps:$4 sm:$0xff]   ;;  %v6064_v7 = vld [vmem:[#allocation5 + $0x28] ss:$16 sps:$4 sm:$0xff]  }
  0x2a   :  { %529 = vmatprep.subr.bf16.mxu0 %v6059_v4  ;;  %570 = vmatprep.subr.bf16.mxu1 %v6061_v5  ;;  %v6065_v8 = vld [vmem:[#allocation5 + $0x44] ss:$16 sps:$4 sm:$0xff]   ;;  %v6067_v9 = vld [vmem:[#allocation5 + $0x4c] ss:$16 sps:$4 sm:$0xff]   ;;  %v6069_v10 = vld [vmem:[#allocation5 + $0x40] ss:$16 sps:$4 sm:$0xff]  }
  0x2b   :  { %v6070_v11 = vld [vmem:[#allocation5 + $0x48] ss:$16 sps:$4 sm:$0xff]   ;;  %v6071_v12 = vld [vmem:[#allocation5 + $0x64] ss:$16 sps:$4 sm:$0xff]   ;;  %v6073_v13 = vld [vmem:[#allocation5 + $0x6c] ss:$16 sps:$4 sm:$0xff]  }
  0x2c   :  { %v6075_v14 = vld [vmem:[#allocation5 + $0x60] ss:$16 sps:$4 sm:$0xff]   ;;  %v6076_v15 = vld [vmem:[#allocation5 + $0x68] ss:$16 sps:$4 sm:$0xff]   ;;  %v6077_v16 = vld [vmem:[#allocation5 + $0x84] ss:$16 sps:$4 sm:$0xff]  }
  0x2d   :  { %530 = vmatpush1.bf16.msra.mxu0 %v6063_v6  ;;  %571 = vmatpush1.bf16.msra.mxu1 %v6064_v7  ;;  %v6079_v17 = vld [vmem:[#allocation5 + $0x8c] ss:$16 sps:$4 sm:$0xff]   ;;  %v6081_v18 = vld [vmem:[#allocation5 + $0x80] ss:$16 sps:$4 sm:$0xff]   ;;  %v6082_v19 = vld [vmem:[#allocation5 + $0x88] ss:$16 sps:$4 sm:$0xff]  }
  0x2e   :  { %531 = vmatprep.subr.bf16.mxu0 %v6065_v8  ;;  %572 = vmatprep.subr.bf16.mxu1 %v6067_v9  ;;  %v6083_v20 = vld [vmem:[#allocation5 + $0xa4] ss:$16 sps:$4 sm:$0xff]   ;;  %v6085_v21 = vld [vmem:[#allocation5 + $0xac] ss:$16 sps:$4 sm:$0xff]   ;;  %v6087_v22 = vld [vmem:[#allocation5 + $0xa0] ss:$16 sps:$4 sm:$0xff]  }
  0x2f   :  { %v6088_v23 = vld [vmem:[#allocation5 + $0xa8] ss:$16 sps:$4 sm:$0xff]   ;;  %v6089_v24 = vld [vmem:[#allocation5 + $0xc4] ss:$16 sps:$4 sm:$0xff]   ;;  %v6091_v25 = vld [vmem:[#allocation5 + $0xcc] ss:$16 sps:$4 sm:$0xff]  }
  0x30   :  { %v6093_v26 = vld [vmem:[#allocation5 + $0xc0] ss:$16 sps:$4 sm:$0xff]   ;;  %v6094_v27 = vld [vmem:[#allocation5 + $0xc8] ss:$16 sps:$4 sm:$0xff]   ;;  %v6095_v28 = vld [vmem:[#allocation5 + $0xe4] ss:$16 sps:$4 sm:$0xff]  }
  0x31   :  { %532 = vmatpush1.bf16.msra.mxu0 %v6069_v10  ;;  %573 = vmatpush1.bf16.msra.mxu1 %v6070_v11  ;;  %v6097_v29 = vld [vmem:[#allocation5 + $0xec] ss:$16 sps:$4 sm:$0xff]   ;;  %v6099_v30 = vld [vmem:[#allocation5 + $0xe0] ss:$16 sps:$4 sm:$0xff]   ;;  %v6100_v31 = vld [vmem:[#allocation5 + $0xe8] ss:$16 sps:$4 sm:$0xff]  }
  0x32   :  { %533 = vmatprep.subr.bf16.mxu0 %v6071_v12  ;;  %574 = vmatprep.subr.bf16.mxu1 %v6073_v13  ;;  %v6101_v32 = vld [vmem:[#allocation5 + $0x104] ss:$16 sps:$4 sm:$0xff]   ;;  %v6103_v33 = vld [vmem:[#allocation5 + $0x10c] ss:$16 sps:$4 sm:$0xff]   ;;  %v6105_v34 = vld [vmem:[#allocation5 + $0x100] ss:$16 sps:$4 sm:$0xff]  }
  0x33   :  { %v6106_v35 = vld [vmem:[#allocation5 + $0x108] ss:$16 sps:$4 sm:$0xff]   ;;  %v6107_v36 = vld [vmem:[#allocation5 + $0x124] ss:$16 sps:$4 sm:$0xff]   ;;  %v6109_v37 = vld [vmem:[#allocation5 + $0x12c] ss:$16 sps:$4 sm:$0xff]  }
  0x34   :  { %v6111_v38 = vld [vmem:[#allocation5 + $0x120] ss:$16 sps:$4 sm:$0xff]   ;;  %v6112_v39 = vld [vmem:[#allocation5 + $0x128] ss:$16 sps:$4 sm:$0xff]   ;;  %v6113_v40 = vld [vmem:[#allocation5 + $0x144] ss:$16 sps:$4 sm:$0xff]  }
  0x35   :  { %534 = vmatpush1.bf16.msra.mxu0 %v6075_v14  ;;  %575 = vmatpush1.bf16.msra.mxu1 %v6076_v15  ;;  %v6115_v41 = vld [vmem:[#allocation5 + $0x14c] ss:$16 sps:$4 sm:$0xff]   ;;  %v6117_v42 = vld [vmem:[#allocation5 + $0x140] ss:$16 sps:$4 sm:$0xff]   ;;  %v6118_v43 = vld [vmem:[#allocation5 + $0x148] ss:$16 sps:$4 sm:$0xff]  }
  0x36   :  { %535 = vmatprep.subr.bf16.mxu0 %v6077_v16  ;;  %576 = vmatprep.subr.bf16.mxu1 %v6079_v17  ;;  %v6119_v44 = vld [vmem:[#allocation5 + $0x164] ss:$16 sps:$4 sm:$0xff]   ;;  %v6121_v45 = vld [vmem:[#allocation5 + $0x16c] ss:$16 sps:$4 sm:$0xff]   ;;  %vm169_vm0 = vcmask 1041409   ;;  %vm172_vm1 = vcmask 1042434  }
  0x37   :  { %v6123_v46 = vld [vmem:[#allocation5 + $0x160] ss:$16 sps:$4 sm:$0xff]   ;;  %v6124_v47 = vld [vmem:[#allocation5 + $0x168] ss:$16 sps:$4 sm:$0xff]   ;;  %v6125_v49 = vld [vmem:[#allocation5 + $0x184] ss:$16 sps:$4 sm:$0xff]  }
  0x38   :  { %v40_v48 = vld [vmem:[#allocation2] sm:$0x11]  ;;  %v6127_v50 = vld [vmem:[#allocation5 + $0x18c] ss:$16 sps:$4 sm:$0xff]   ;;  %v42_v52 = vld [vmem:[#allocation2 + $0x10] sm:$0x11] }
  0x39   :  { %536 = vmatpush1.bf16.msra.mxu0 %v6081_v18  ;;  %577 = vmatpush1.bf16.msra.mxu1 %v6082_v19  ;;  %v41_v51 = vld [vmem:[#allocation2 + $0x8] sm:$0x11]  ;;  %v43_v53 = vld [vmem:[#allocation2 + $0x18] sm:$0x11]  ;;  %v5403_v54 = vcombine.low %v40_v48, %v40_v48  ;;  %v5404_v55 = vcombine.high %v40_v48, %v40_v48  ;;  %vm175_vm2 = vcmask 1043459   ;;  %v5407_v61 = vcombine.low %v42_v52, %v42_v52  ;;  %s7028_s1 = smov [#allocation7]  }
  0x3a   :  { %537 = vmatprep.subr.bf16.mxu0 %v6083_v20  ;;  %578 = vmatprep.subr.bf16.mxu1 %v6085_v21  ;;  %v44_v56 = vld [vmem:[#allocation2 + $0x20] sm:$0x11]  ;;  %v45_v57 = vld [vmem:[#allocation2 + $0x28] sm:$0x11]  ;;  %v46_v58 = vld [vmem:[#allocation2 + $0x30] sm:$0x11]  ;;  %v5405_v59 = vcombine.low %v41_v51, %v41_v51  ;;  %v5406_v60 = vcombine.high %v41_v51, %v41_v51  ;;  %v5408_v63 = vcombine.high %v42_v52, %v42_v52 }
  0x3b   :  { %vm178_vm3 = vcmask 1044484   ;;  %v47_v62 = vld [vmem:[#allocation2 + $0x38] sm:$0x11]  ;;  %v5409_v0 = vcombine.low %v43_v53, %v43_v53  ;;  %v5410_v1 = vcombine.high %v43_v53, %v43_v53  ;;  %v153_v2 = vunpack.c.l.b16 %v5404_v55  ;;  %v6129_v7 = vld [vmem:[#allocation5 + $0x180] ss:$16 sps:$4 sm:$0xff]   ;;  %s5390_s8 = sshll.u32 %s7028_s1, 4  ;;  %s7682_s8 = int_to_ptr.vmem [resolvable:$true] %s5390_s8 }
  0x3c   :  { %vm181_vm4 = vcmask 1045509   ;;  %v5411_v3 = vcombine.low %v44_v56, %v44_v56  ;;  %v5412_v4 = vcombine.high %v44_v56, %v44_v56  ;;  %v5413_v5 = vcombine.low %v45_v57, %v45_v57  ;;  %v6130_v8 = vld [vmem:[#allocation5 + $0x188] ss:$16 sps:$4 sm:$0xff]   ;;  %v6131_v13 = vld [vmem:[#allocation5 + $0x1a4] ss:$16 sps:$4 sm:$0xff]   ;;  %s6993_s9 = scalar_lea.vmem %s7682_s8, 4096  ;;  %p6998_p3 = scmp.lt.s32.totalorder %s7682_s8, %s7682_s8 }
  0x3d   :  { %538 = vmatpush1.bf16.msra.mxu0 %v6087_v22  ;;  %579 = vmatpush1.bf16.msra.mxu1 %v6088_v23  ;;  %v5414_v6 = vcombine.high %v45_v57, %v45_v57  ;;  %vm184_vm5 = vcmask 1046534   ;;  %v5415_v9 = vcombine.low %v46_v58, %v46_v58  ;;  %v5416_v10 = vcombine.high %v46_v58, %v46_v58  ;;  %v6133_v18 = vld [vmem:[#allocation5 + $0x1ac] ss:$16 sps:$4 sm:$0xff]   ;;  %p6994_p2 = scmp.ne.s32.totalorder %s7682_s8, %s6993_s9  ;;  %p6999_p4 = scmp.lt.s32.totalorder %s6993_s9, %s6993_s9 }
  0x3e   :  { %539 = vmatprep.subr.bf16.mxu0 %v6089_v24  ;;  %580 = vmatprep.subr.bf16.mxu1 %v6091_v25  ;;  %v5417_v11 = vcombine.low %v47_v62, %v47_v62  ;;  %v5418_v12 = vcombine.high %v47_v62, %v47_v62  ;;  %v155_v14 = vunpack.c.l.b16 %v5406_v60  ;;  %v157_v15 = vunpack.c.l.b16 %v5408_v63  ;;  %v6145_v55 = vld [vmem:[#allocation5 + $0x1ec] ss:$16 sps:$4 sm:$0xff]   ;;  %v6147_v62 = vld [vmem:[#allocation5 + $0x1e0] ss:$16 sps:$4 sm:$0xff]  }
  0x3f   :  { %v159_v16 = vunpack.c.l.b16 %v5410_v1  ;;  %v161_v17 = vunpack.c.l.b16 %v5412_v4  ;;  %v163_v19 = vunpack.c.l.b16 %v5414_v6  ;;  %v165_v20 = vunpack.c.l.b16 %v5416_v10  ;;  %v6148_v1 = vld [vmem:[#allocation5 + $0x1e8] ss:$16 sps:$4 sm:$0xff]   ;;  %v6167_v4 = vld [vmem:[#allocation5 + $0x204] ss:$16 sps:$4 sm:$0xff]   ;;  %p7000_p5 = por %p6999_p4, %p6998_p3 }
  0x40   :  { %v167_v21 = vunpack.c.l.b16 %v5418_v12  ;;  %v152_v22 = vunpack.c.l.b16 %v5403_v54  ;;  %v189_v23 = vrot.slane %v155_v14, 7  ;;  %v191_v24 = vrot.slane %v157_v15, 6  ;;  %v6143_v54 = vld [vmem:[#allocation5 + $0x1e4] ss:$16 sps:$4 sm:$0xff]   ;;  %v6171_v12 = vld [vmem:[#allocation5 + $0x220] ss:$16 sps:$4 sm:$0xff]  }
  0x41   :  { %540 = vmatpush1.bf16.msra.mxu0 %v6093_v26  ;;  %581 = vmatpush1.bf16.msra.mxu1 %v6094_v27  ;;  %v193_v25 = vrot.slane %v159_v16, 5  ;;  %v195_v26 = vrot.slane %v161_v17, 4  ;;  %v6135_v27 = vld [vmem:[#allocation5 + $0x1a0] ss:$16 sps:$4 sm:$0xff]   ;;  %vm187_vm6 = vcmask 1047559   ;;  %p7001_p6 = pnand %p7000_p5, %p6994_p2 }
  0x42   :  { %541 = vmatprep.subr.bf16.mxu0 %v6095_v28  ;;  %582 = vmatprep.subr.bf16.mxu1 %v6097_v29  ;;  %v197_v28 = vrot.slane %v163_v19, 3  ;;  %v199_v29 = vrot.slane %v165_v20, 2  ;;  %v6173_v10 = vld [vmem:[#allocation5 + $0x224] ss:$16 sps:$4 sm:$0xff]   ;;  %v6182_v15 = vld [vmem:[#allocation5 + $0x24c] ss:$16 sps:$4 sm:$0xff]  }
  0x43   :  { %v6179_v14 = vld [vmem:[#allocation5 + $0x244] ss:$16 sps:$4 sm:$0xff]   ;;  %v6177_v16 = vld [vmem:[#allocation5 + $0x240] ss:$16 sps:$4 sm:$0xff]   ;;  %v6180_v17 = vld [vmem:[#allocation5 + $0x248] ss:$16 sps:$4 sm:$0xff]  }
  0x44   :  { %v6188_v19 = vld [vmem:[#allocation5 + $0x26c] ss:$16 sps:$4 sm:$0xff]   ;;  %v6183_v20 = vld [vmem:[#allocation5 + $0x260] ss:$16 sps:$4 sm:$0xff]  }
  0x45   :  { %542 = vmatpush1.bf16.msra.mxu0 %v6099_v30  ;;  %583 = vmatpush1.bf16.msra.mxu1 %v6100_v31  ;;  %v201_v30 = vrot.slane %v167_v21, 1  ;;  %v154_v31 = vunpack.c.l.b16 %v5405_v59  ;;  %v6186_v21 = vld [vmem:[#allocation5 + $0x268] ss:$16 sps:$4 sm:$0xff]  }
  0x46   :  { %543 = vmatprep.subr.bf16.mxu0 %v6101_v32  ;;  %584 = vmatprep.subr.bf16.mxu1 %v6103_v33  ;;  %v6136_v32 = vld [vmem:[#allocation5 + $0x1a8] ss:$16 sps:$4 sm:$0xff]   ;;  %v6137_v33 = vld [vmem:[#allocation5 + $0x1c4] ss:$16 sps:$4 sm:$0xff]  }
  0x49   :  { %544 = vmatpush1.bf16.msra.mxu0 %v6105_v34  ;;  %585 = vmatpush1.bf16.msra.mxu1 %v6106_v35  ;;  %v190_v34 = vsel %vm169_vm0, %v189_v23, %v153_v2  ;;  %v156_v35 = vunpack.c.l.b16 %v5407_v61  ;;  %v6194_v23 = vld [vmem:[#allocation5 + $0x28c] ss:$16 sps:$4 sm:$0xff]  }
  0x4a   :  { %545 = vmatprep.subr.bf16.mxu0 %v6107_v36  ;;  %586 = vmatprep.subr.bf16.mxu1 %v6109_v37  ;;  %v158_v36 = vunpack.c.l.b16 %v5409_v0  ;;  %v160_v37 = vunpack.c.l.b16 %v5411_v3 }
  0x4d   :  { %546 = vmatpush1.bf16.msra.mxu0 %v6111_v38  ;;  %587 = vmatpush1.bf16.msra.mxu1 %v6112_v39  ;;  %v6139_v38 = vld [vmem:[#allocation5 + $0x1cc] ss:$16 sps:$4 sm:$0xff]   ;;  %v192_v39 = vsel %vm172_vm1, %v191_v24, %v190_v34  ;;  %v6189_v24 = vld [vmem:[#allocation5 + $0x280] ss:$16 sps:$4 sm:$0xff]   ;;  %v6209_v34 = vld [vmem:[#allocation5 + $0x2e4] ss:$16 sps:$4 sm:$0xff]  }
  0x4e   :  { %547 = vmatprep.subr.bf16.mxu0 %v6113_v40  ;;  %588 = vmatprep.subr.bf16.mxu1 %v6115_v41  ;;  %v162_v40 = vunpack.c.l.b16 %v5413_v5  ;;  %v164_v41 = vunpack.c.l.b16 %v5415_v9  ;;  %v6170_v5 = vld [vmem:[#allocation5 + $0x20c] ss:$16 sps:$4 sm:$0xff]   ;;  %v6168_v9 = vld [vmem:[#allocation5 + $0x208] ss:$16 sps:$4 sm:$0xff]  }
  0x50   :  { %v180_v53 = vrot.slane %v162_v40, 3  ;;  %v183_v58 = vrot.slane %v164_v41, 2  ;;  %v718_v40 = vld [vmem:[#allocation2 + $0x10] sm:$0x11]  ;;  %v7084_v41 = vld [vmem:[#allocation2 + $0x18] sm:$0x11] }
  0x51   :  { %548 = vmatpush1.bf16.msra.mxu0 %v6117_v42  ;;  %589 = vmatpush1.bf16.msra.mxu1 %v6118_v43  ;;  %v166_v42 = vunpack.c.l.b16 %v5417_v11  ;;  %v194_v43 = vsel %vm175_vm2, %v193_v25, %v192_v39  ;;  %v6176_v11 = vld [vmem:[#allocation5 + $0x22c] ss:$16 sps:$4 sm:$0xff]   ;;  %v6192_v25 = vld [vmem:[#allocation5 + $0x288] ss:$16 sps:$4 sm:$0xff]  }
  0x52   :  { %549 = vmatprep.subr.bf16.mxu0 %v6119_v44  ;;  %590 = vmatprep.subr.bf16.mxu1 %v6121_v45  ;;  %v168_v44 = vrot.slane %v154_v31, 7  ;;  %v171_v45 = vrot.slane %v156_v35, 6  ;;  %v196_v48 = vsel %vm178_vm3, %v195_v26, %v194_v43  ;;  %v6197_v26 = vld [vmem:[#allocation5 + $0x2a4] ss:$16 sps:$4 sm:$0xff]   ;;  %v6206_v31 = vld [vmem:[#allocation5 + $0x2cc] ss:$16 sps:$4 sm:$0xff]  }
  0x53   :  { %v198_v51 = vsel %vm181_vm4, %v197_v28, %v196_v48  ;;  %v186_v61 = vrot.slane %v166_v42, 1  ;;  %v6195_v28 = vld [vmem:[#allocation5 + $0x2a0] ss:$16 sps:$4 sm:$0xff]   ;;  %v6212_v35 = vld [vmem:[#allocation5 + $0x2ec] ss:$16 sps:$4 sm:$0xff]  }
  0x54   :  { %v170_v52 = vsel %vm169_vm0, %v168_v44, %v152_v22  ;;  %v200_v56 = vsel %vm184_vm5, %v199_v29, %v198_v51  ;;  %v6191_v22 = vld [vmem:[#allocation5 + $0x284] ss:$16 sps:$4 sm:$0xff]   ;;  %v6198_v29 = vld [vmem:[#allocation5 + $0x2a8] ss:$16 sps:$4 sm:$0xff]   ;;  %v6218_v51 = vld [vmem:[#allocation5 + $0x30c] ss:$16 sps:$4 sm:$0xff]  }
  0x55   :  { %550 = vmatpush1.bf16.msra.mxu0 %v6123_v46  ;;  %591 = vmatpush1.bf16.msra.mxu1 %v6124_v47  ;;  %v174_v46 = vrot.slane %v158_v36, 5  ;;  %v6141_v47 = vld [vmem:[#allocation5 + $0x1c0] ss:$16 sps:$4 sm:$0xff]   ;;  %v173_v57 = vsel %vm172_vm1, %v171_v45, %v170_v52  ;;  %v202_v59 = vsel %vm187_vm6, %v201_v30, %v200_v56  ;;  %v6203_v30 = vld [vmem:[#allocation5 + $0x2c4] ss:$16 sps:$4 sm:$0xff]  }
  0x56   :  { %551 = vmatprep.subr.bf16.mxu0 %v6125_v49  ;;  %592 = vmatprep.subr.bf16.mxu1 %v6127_v50  ;;  %v177_v49 = vrot.slane %v160_v37, 4  ;;  %v6142_v50 = vld [vmem:[#allocation5 + $0x1c8] ss:$16 sps:$4 sm:$0xff]   ;;  %v204_v63 = vpack.c.b16 %v202_v59, %v202_v59  ;;  %v716_v36 = vld [vmem:[#allocation2] sm:$0x11] }
  0x57   :  { %v176_v60 = vsel %vm175_vm2, %v174_v46, %v173_v57  ;;  %v6207_v37 = vld [vmem:[#allocation5 + $0x2e0] ss:$16 sps:$4 sm:$0xff]   ;;  %v717_v39 = vld [vmem:[#allocation2 + $0x8] sm:$0x11]  ;;  %v5484_v42 = vcombine.high %v716_v36, %v716_v36  ;;  %v5488_v46 = vcombine.high %v718_v40, %v718_v40 }
  0x58   :  { %v179_v0 = vsel %vm178_vm3, %v177_v49, %v176_v60  ;;  %559 = vmatprep.mubr.bf16.mxu0 %v204_v63  ;;  %600 = vmatprep.mubr.bf16.mxu1 %v204_v63  ;;  %v7086_v43 = vld [vmem:[#allocation2 + $0x20] sm:$0x11]  ;;  %v7088_v44 = vld [vmem:[#allocation2 + $0x28] sm:$0x11]  ;;  %v7090_v45 = vld [vmem:[#allocation2 + $0x30] sm:$0x11]  ;;  %v5486_v48 = vcombine.high %v717_v39, %v717_v39  ;;  %v5490_v49 = vcombine.high %v7084_v41, %v7084_v41 }
  0x59   :  { %552 = vmatpush1.bf16.msra.mxu0 %v6129_v7  ;;  %593 = vmatpush1.bf16.msra.mxu1 %v6130_v8  ;;  %v182_v2 = vsel %vm181_vm4, %v180_v53, %v179_v0  ;;  %v6165_v8 = vld [vmem:[#allocation5 + $0x200] ss:$16 sps:$4 sm:$0xff]   ;;  %v5492_v52 = vcombine.high %v7086_v43, %v7086_v43  ;;  %v5494_v53 = vcombine.high %v7088_v44, %v7088_v44  ;;  %v830_v57 = vunpack.c.l.b16 %v5484_v42  ;;  %v6216_v60 = vld [vmem:[#allocation5 + $0x308] ss:$16 sps:$4 sm:$0xff]   ;;  %v6221_v0 = vld [vmem:[#allocation5 + $0x324] ss:$16 sps:$4 sm:$0xff]  }
  0x5a   :  { %553 = vmatprep.subr.bf16.mxu0 %v6131_v13  ;;  %594 = vmatprep.subr.bf16.mxu1 %v6133_v18  ;;  %v185_v3 = vsel %vm184_vm5, %v183_v58, %v182_v2  ;;  %v6174_v13 = vld [vmem:[#allocation5 + $0x228] ss:$16 sps:$4 sm:$0xff]   ;;  %v6185_v18 = vld [vmem:[#allocation5 + $0x264] ss:$16 sps:$4 sm:$0xff]   ;;  %v6213_v58 = vld [vmem:[#allocation5 + $0x300] ss:$16 sps:$4 sm:$0xff]   ;;  %v834_v59 = vunpack.c.l.b16 %v5488_v46  ;;  %v5485_v2 = vcombine.low %v717_v39, %v717_v39 }
  0x5b   :  { %v188_v6 = vsel %vm187_vm6, %v186_v61, %v185_v3  ;;  %v832_v61 = vunpack.c.l.b16 %v5486_v48  ;;  %v838_v63 = vunpack.c.l.b16 %v5492_v52  ;;  %v5487_v3 = vcombine.low %v718_v40, %v718_v40  ;;  %v6231_v39 = vld [vmem:[#allocation5 + $0x360] ss:$16 sps:$4 sm:$0xff]   ;;  %v6234_v42 = vld [vmem:[#allocation5 + $0x368] ss:$16 sps:$4 sm:$0xff]   ;;  %v6239_v46 = vld [vmem:[#allocation5 + $0x384] ss:$16 sps:$4 sm:$0xff]  }
  0x5c   :  { %v203_v7 = vpack.c.b16 %v188_v6, %v188_v6  ;;  %v6242_v48 = vld [vmem:[#allocation5 + $0x38c] ss:$16 sps:$4 sm:$0xff]  }
  0x5d   :  { %554 = vmatpush1.bf16.msra.mxu0 %v6135_v27  ;;  %595 = vmatpush1.bf16.msra.mxu1 %v6136_v32  ;;  %v6200_v27 = vld [vmem:[#allocation5 + $0x2ac] ss:$16 sps:$4 sm:$0xff]   ;;  %v6201_v32 = vld [vmem:[#allocation5 + $0x2c0] ss:$16 sps:$4 sm:$0xff]  }
  0x5e   :  { %555 = vmatprep.subr.bf16.mxu0 %v6137_v33  ;;  %596 = vmatprep.subr.bf16.mxu1 %v6139_v38  ;;  %v6204_v33 = vld [vmem:[#allocation5 + $0x2c8] ss:$16 sps:$4 sm:$0xff]  }
  0x5f   :  { %v6210_v38 = vld [vmem:[#allocation5 + $0x2e8] ss:$16 sps:$4 sm:$0xff]  }
  0x61   :  { %556 = vmatpush1.bf16.msra.mxu0 %v6141_v47  ;;  %597 = vmatpush1.bf16.msra.mxu1 %v6142_v50  ;;  %v7092_v47 = vld [vmem:[#allocation2 + $0x38] sm:$0x11]  ;;  %v6215_v50 = vld [vmem:[#allocation5 + $0x304] ss:$16 sps:$4 sm:$0xff]  }
  0x62   :  { %557 = vmatprep.subr.bf16.mxu0 %v6143_v54  ;;  %598 = vmatprep.subr.bf16.mxu1 %v6145_v55  ;;  %v5483_v54 = vcombine.low %v716_v36, %v716_v36  ;;  %v5496_v55 = vcombine.high %v7090_v45, %v7090_v45  ;;  %v5498_v56 = vcombine.high %v7092_v47, %v7092_v47 }
  0x63   :  { %v5493_v36 = vcombine.low %v7088_v44, %v7088_v44 }
  0x64   :  { %v829_v6 = vunpack.c.l.b16 %v5483_v54  ;;  %v5497_v54 = vcombine.low %v7092_v47, %v7092_v47 }
  0x65   :  { %558 = vmatpush1.bf16.msra.mxu0 %v6147_v62  ;;  %599 = vmatpush1.bf16.msra.mxu1 %v6148_v1  ;;  %v836_v62 = vunpack.c.l.b16 %v5490_v49  ;;  %v6224_v1 = vld [vmem:[#allocation5 + $0x32c] ss:$16 sps:$4 sm:$0xff]   ;;  %v5495_v49 = vcombine.low %v7090_v45, %v7090_v45 }
  0x66   :  { %1197 = vmatprep.subr.bf16.mxu0 %v6167_v4  ;;  %1238 = vmatprep.subr.bf16.mxu1 %v6170_v5  ;;  %v840_v4 = vunpack.c.l.b16 %v5494_v53  ;;  %v842_v5 = vunpack.c.l.b16 %v5496_v55  ;;  %v6240_v53 = vld [vmem:[#allocation5 + $0x388] ss:$16 sps:$4 sm:$0xff]  }
  0x67   :  { %v841_v45 = vunpack.c.l.b16 %v5495_v49 }
  0x68   :  { %560 = vmatmul.mubr.bf16.vlgmr.msra.gmra.mrb[0].mxu0 %v203_v7  ;;  %601 = vmatmul.mubr.bf16.vlgmr.msra.gmra.mrb[0].mxu1 %v203_v7  ;;  %v844_v7 = vunpack.c.l.b16 %v5498_v56  ;;  %v6245_v56 = vld [vmem:[#allocation5 + $0x3a4] ss:$16 sps:$4 sm:$0xff]  }
  0x69   :  { %1198 = vmatpush1.bf16.msra.mxu0 %v6165_v8  ;;  %1239 = vmatpush1.bf16.msra.mxu1 %v6168_v9  ;;  %v859_v8 = vrot.slane %v830_v57, 1  ;;  %v861_v9 = vrot.slane %v834_v59, 7  ;;  %v6248_v57 = vld [vmem:[#allocation5 + $0x3ac] ss:$16 sps:$4 sm:$0xff]   ;;  %v6243_v59 = vld [vmem:[#allocation5 + $0x3a0] ss:$16 sps:$4 sm:$0xff]  }
  0x6a   :  { %1199 = vmatprep.subr.bf16.mxu0 %v6173_v10  ;;  %1240 = vmatprep.subr.bf16.mxu1 %v6176_v11  ;;  %v863_v10 = vrot.slane %v836_v62, 6  ;;  %v865_v11 = vrot.slane %v838_v63, 5  ;;  %v843_v62 = vunpack.c.l.b16 %v5497_v54  ;;  %v6251_v63 = vld [vmem:[#allocation5 + $0x3c4] ss:$16 sps:$4 sm:$0xff]   ;;  %v855_v47 = vrot.slane %v841_v45, 3 }
  0x6b   :  { %v6309_v54 = vld [vmem:[#allocation5 + $0x4a4] ss:$16 sps:$4 sm:$0xff]   ;;  %v6312_v45 = vld [vmem:[#allocation5 + $0x4ac] ss:$16 sps:$4 sm:$0xff]  }
  0x6d   :  { %1200 = vmatpush1.bf16.msra.mxu0 %v6171_v12  ;;  %1241 = vmatpush1.bf16.msra.mxu1 %v6174_v13  ;;  %v6219_v12 = vld [vmem:[#allocation5 + $0x320] ss:$16 sps:$4 sm:$0xff]   ;;  %v6222_v13 = vld [vmem:[#allocation5 + $0x328] ss:$16 sps:$4 sm:$0xff]  }
  0x6e   :  { %1201 = vmatprep.subr.bf16.mxu0 %v6179_v14  ;;  %1242 = vmatprep.subr.bf16.mxu1 %v6182_v15  ;;  %v5489_v14 = vcombine.low %v7084_v41, %v7084_v41  ;;  %v860_v15 = vsel %vm169_vm0, %v832_v61, %v859_v8  ;;  %v6246_v61 = vld [vmem:[#allocation5 + $0x3a8] ss:$16 sps:$4 sm:$0xff]   ;;  %v6255_v8 = vld [vmem:[#allocation5 + $0x3e0] ss:$16 sps:$4 sm:$0xff]  }
  0x71   :  { %1202 = vmatpush1.bf16.msra.mxu0 %v6177_v16  ;;  %1243 = vmatpush1.bf16.msra.mxu1 %v6180_v17  ;;  %v867_v16 = vrot.slane %v840_v4, 4  ;;  %v6227_v17 = vld [vmem:[#allocation5 + $0x344] ss:$16 sps:$4 sm:$0xff]   ;;  %v857_v4 = vrot.slane %v843_v62, 2 }
  0x72   :  { %1203 = vmatprep.subr.bf16.mxu0 %v6185_v18  ;;  %1244 = vmatprep.subr.bf16.mxu1 %v6188_v19  ;;  %v6230_v18 = vld [vmem:[#allocation5 + $0x34c] ss:$16 sps:$4 sm:$0xff]   ;;  %v833_v19 = vunpack.c.l.b16 %v5487_v3  ;;  %v6252_v3 = vld [vmem:[#allocation5 + $0x3c8] ss:$16 sps:$4 sm:$0xff]  }
  0x75   :  { %1204 = vmatpush1.bf16.msra.mxu0 %v6183_v20  ;;  %1245 = vmatpush1.bf16.msra.mxu1 %v6186_v21  ;;  %v862_v20 = vsel %vm172_vm1, %v861_v9, %v860_v15  ;;  %v869_v21 = vrot.slane %v842_v5, 3  ;;  %v6257_v5 = vld [vmem:[#allocation5 + $0x3e4] ss:$16 sps:$4 sm:$0xff]   ;;  %v6258_v9 = vld [vmem:[#allocation5 + $0x3e8] ss:$16 sps:$4 sm:$0xff]  }
  0x76   :  { %1205 = vmatprep.subr.bf16.mxu0 %v6191_v22  ;;  %1246 = vmatprep.subr.bf16.mxu1 %v6194_v23  ;;  %v831_v22 = vunpack.c.l.b16 %v5485_v2  ;;  %v864_v23 = vsel %vm175_vm2, %v863_v10, %v862_v20  ;;  %v6249_v2 = vld [vmem:[#allocation5 + $0x3c0] ss:$16 sps:$4 sm:$0xff]   ;;  %v6280_v15 = vld [vmem:[#allocation5 + $0x408] ss:$16 sps:$4 sm:$0xff]   ;;  %v6291_v20 = vld [vmem:[#allocation5 + $0x444] ss:$16 sps:$4 sm:$0xff]  }
  0x79   :  { %1206 = vmatpush1.bf16.msra.mxu0 %v6189_v24  ;;  %1247 = vmatpush1.bf16.msra.mxu1 %v6192_v25  ;;  %v871_v24 = vrot.slane %v844_v7, 2  ;;  %v845_v25 = vrot.slane %v829_v6, 1  ;;  %v6260_v6 = vld [vmem:[#allocation5 + $0x3ec] ss:$16 sps:$4 sm:$0xff]  }
  0x7a   :  { %1207 = vmatprep.subr.bf16.mxu0 %v6197_v26  ;;  %1248 = vmatprep.subr.bf16.mxu1 %v6200_v27  ;;  %v6225_v26 = vld [vmem:[#allocation5 + $0x340] ss:$16 sps:$4 sm:$0xff]   ;;  %v5491_v27 = vcombine.low %v7086_v43, %v7086_v43 }
  0x7c   :  { %v837_v40 = vunpack.c.l.b16 %v5491_v27  ;;  %v7130_v27 = vld [vmem:[#allocation2 + $0x8] sm:$0x22] }
  0x7d   :  { %1208 = vmatpush1.bf16.msra.mxu0 %v6195_v28  ;;  %1249 = vmatpush1.bf16.msra.mxu1 %v6198_v29  ;;  %v866_v28 = vsel %vm178_vm3, %v865_v11, %v864_v23  ;;  %v6228_v29 = vld [vmem:[#allocation5 + $0x348] ss:$16 sps:$4 sm:$0xff]   ;;  %v6279_v11 = vld [vmem:[#allocation5 + $0x404] ss:$16 sps:$4 sm:$0xff]  }
  0x7e   :  { %1209 = vmatprep.subr.bf16.mxu0 %v6203_v30  ;;  %1250 = vmatprep.subr.bf16.mxu1 %v6206_v31  ;;  %v835_v30 = vunpack.c.l.b16 %v5489_v14  ;;  %v868_v31 = vsel %vm181_vm4, %v867_v16, %v866_v28  ;;  %v851_v52 = vrot.slane %v837_v40, 5  ;;  %v6277_v14 = vld [vmem:[#allocation5 + $0x400] ss:$16 sps:$4 sm:$0xff]   ;;  %v6285_v16 = vld [vmem:[#allocation5 + $0x424] ss:$16 sps:$4 sm:$0xff]  }
  0x7f   :  { %v6292_v23 = vld [vmem:[#allocation5 + $0x448] ss:$16 sps:$4 sm:$0xff]   ;;  %v7132_v28 = vld [vmem:[#allocation2 + $0x10] sm:$0x22] }
  0x80   :  { %v849_v43 = vrot.slane %v835_v30, 6  ;;  %v7136_v30 = vld [vmem:[#allocation2 + $0x20] sm:$0x22]  ;;  %v5568_v40 = vcombine.high %v7132_v28, %v7132_v28 }
  0x81   :  { %1210 = vmatpush1.bf16.msra.mxu0 %v6201_v32  ;;  %1251 = vmatpush1.bf16.msra.mxu1 %v6204_v33  ;;  %v6233_v32 = vld [vmem:[#allocation5 + $0x364] ss:$16 sps:$4 sm:$0xff]   ;;  %v6236_v33 = vld [vmem:[#allocation5 + $0x36c] ss:$16 sps:$4 sm:$0xff]  }
  0x82   :  { %1211 = vmatprep.subr.bf16.mxu0 %v6209_v34  ;;  %1252 = vmatprep.subr.bf16.mxu1 %v6212_v35  ;;  %v870_v34 = vsel %vm184_vm5, %v869_v21, %v868_v31  ;;  %v847_v35 = vrot.slane %v833_v19, 7  ;;  %v6286_v19 = vld [vmem:[#allocation5 + $0x428] ss:$16 sps:$4 sm:$0xff]   ;;  %v6294_v21 = vld [vmem:[#allocation5 + $0x44c] ss:$16 sps:$4 sm:$0xff]  }
  0x85   :  { %1212 = vmatpush1.bf16.msra.mxu0 %v6207_v37  ;;  %1253 = vmatpush1.bf16.msra.mxu1 %v6210_v38  ;;  %v872_v37 = vsel %vm187_vm6, %v871_v24, %v870_v34  ;;  %v846_v38 = vsel %vm169_vm0, %v831_v22, %v845_v25  ;;  %v6289_v22 = vld [vmem:[#allocation5 + $0x440] ss:$16 sps:$4 sm:$0xff]   ;;  %v6297_v24 = vld [vmem:[#allocation5 + $0x464] ss:$16 sps:$4 sm:$0xff]   ;;  %v6300_v25 = vld [vmem:[#allocation5 + $0x46c] ss:$16 sps:$4 sm:$0xff]  }
  0x86   :  { %1213 = vmatprep.subr.bf16.mxu0 %v6215_v50  ;;  %1254 = vmatprep.subr.bf16.mxu1 %v6218_v51  ;;  %v874_v41 = vpack.c.b16 %v872_v37, %v872_v37  ;;  %v848_v44 = vsel %vm172_vm1, %v847_v35, %v846_v38  ;;  %v839_v50 = vunpack.c.l.b16 %v5493_v36  ;;  %v6237_v51 = vld [vmem:[#allocation5 + $0x380] ss:$16 sps:$4 sm:$0xff]   ;;  %v7144_v34 = vld [vmem:[#allocation2 + $0x38] sm:$0x22]  ;;  %v5566_v35 = vcombine.high %v7130_v27, %v7130_v27 }
  0x87   :  { %v850_v55 = vsel %vm175_vm2, %v849_v43, %v848_v44  ;;  %v6295_v36 = vld [vmem:[#allocation5 + $0x460] ss:$16 sps:$4 sm:$0xff]   ;;  %v5572_v38 = vcombine.high %v7136_v30, %v7136_v30  ;;  %v6303_v43 = vld [vmem:[#allocation5 + $0x484] ss:$16 sps:$4 sm:$0xff]  }
  0x88   :  { %1229 = vmatprep.mubr.bf16.mxu0 %v874_v41  ;;  %1270 = vmatprep.mubr.bf16.mxu1 %v874_v41  ;;  %v6301_v44 = vld [vmem:[#allocation5 + $0x480] ss:$16 sps:$4 sm:$0xff]  }
  0x89   :  { %1214 = vmatpush1.bf16.msra.mxu0 %v6213_v58  ;;  %1255 = vmatpush1.bf16.msra.mxu1 %v6216_v60  ;;  %v853_v58 = vrot.slane %v839_v50, 4  ;;  %v852_v60 = vsel %vm178_vm3, %v851_v52, %v850_v55  ;;  %v1499_v50 = vunpack.c.l.b16 %v5566_v35  ;;  %v1501_v55 = vunpack.c.l.b16 %v5568_v40 }
  0x8a   :  { %1215 = vmatprep.subr.bf16.mxu0 %v6221_v0  ;;  %1256 = vmatprep.subr.bf16.mxu1 %v6224_v1  ;;  %v6254_v0 = vld [vmem:[#allocation5 + $0x3cc] ss:$16 sps:$4 sm:$0xff]   ;;  %v5567_v40 = vcombine.low %v7132_v28, %v7132_v28 }
  0x8b   :  { %v854_v1 = vsel %vm181_vm4, %v853_v58, %v852_v60  ;;  %v1527_v60 = vrot.slane %v1499_v50, 1 }
  0x8c   :  { %v856_v7 = vsel %vm184_vm5, %v855_v47, %v854_v1  ;;  %v6307_v47 = vld [vmem:[#allocation5 + $0x4a0] ss:$16 sps:$4 sm:$0xff]   ;;  %v6310_v1 = vld [vmem:[#allocation5 + $0x4a8] ss:$16 sps:$4 sm:$0xff]   ;;  %v1500_v50 = vunpack.c.l.b16 %v5567_v40  ;;  %v6391_v40 = vld [vmem:[#allocation5 + $0x604] ss:$16 sps:$4 sm:$0xff]  }
  0x8d   :  { %1216 = vmatpush1.bf16.msra.mxu0 %v6219_v12  ;;  %1257 = vmatpush1.bf16.msra.mxu1 %v6222_v13  ;;  %v858_v10 = vsel %vm187_vm6, %v857_v4, %v856_v7  ;;  %v6282_v12 = vld [vmem:[#allocation5 + $0x40c] ss:$16 sps:$4 sm:$0xff]   ;;  %v6315_v4 = vld [vmem:[#allocation5 + $0x4c4] ss:$16 sps:$4 sm:$0xff]  }
  0x8e   :  { %1217 = vmatprep.subr.bf16.mxu0 %v6227_v17  ;;  %1258 = vmatprep.subr.bf16.mxu1 %v6230_v18  ;;  %v873_v13 = vpack.c.b16 %v858_v10, %v858_v10  ;;  %v6288_v17 = vld [vmem:[#allocation5 + $0x42c] ss:$16 sps:$4 sm:$0xff]   ;;  %v6283_v18 = vld [vmem:[#allocation5 + $0x420] ss:$16 sps:$4 sm:$0xff]  }
  0x8f   :  { %v6313_v10 = vld [vmem:[#allocation5 + $0x4c0] ss:$16 sps:$4 sm:$0xff]  }
  0x91   :  { %1218 = vmatpush1.bf16.msra.mxu0 %v6225_v26  ;;  %1259 = vmatpush1.bf16.msra.mxu1 %v6228_v29  ;;  %v7128_v26 = vld [vmem:[#allocation2] sm:$0x22]  ;;  %v7134_v29 = vld [vmem:[#allocation2 + $0x18] sm:$0x22] }
  0x92   :  { %1219 = vmatprep.subr.bf16.mxu0 %v6233_v32  ;;  %1260 = vmatprep.subr.bf16.mxu1 %v6236_v33  ;;  %v5564_v31 = vcombine.high %v7128_v26, %v7128_v26  ;;  %v7140_v32 = vld [vmem:[#allocation2 + $0x28] sm:$0x22]  ;;  %v7142_v33 = vld [vmem:[#allocation2 + $0x30] sm:$0x22]  ;;  %v5570_v37 = vcombine.high %v7134_v29, %v7134_v29 }
  0x93   :  { %v5574_v41 = vcombine.high %v7140_v32, %v7140_v32 }
  0x94   :  { %v1497_v49 = vunpack.c.l.b16 %v5564_v31  ;;  %v1503_v52 = vunpack.c.l.b16 %v5570_v37  ;;  %v6336_v31 = vld [vmem:[#allocation5 + $0x52c] ss:$16 sps:$4 sm:$0xff]   ;;  %v6331_v37 = vld [vmem:[#allocation5 + $0x520] ss:$16 sps:$4 sm:$0xff]  }
  0x95   :  { %1220 = vmatpush1.bf16.msra.mxu0 %v6231_v39  ;;  %1261 = vmatpush1.bf16.msra.mxu1 %v6234_v42  ;;  %v6298_v39 = vld [vmem:[#allocation5 + $0x468] ss:$16 sps:$4 sm:$0xff]   ;;  %v5576_v42 = vcombine.high %v7142_v33, %v7142_v33 }
  0x96   :  { %1221 = vmatprep.subr.bf16.mxu0 %v6239_v46  ;;  %1262 = vmatprep.subr.bf16.mxu1 %v6242_v48  ;;  %v6306_v46 = vld [vmem:[#allocation5 + $0x48c] ss:$16 sps:$4 sm:$0xff]   ;;  %v5578_v48 = vcombine.high %v7144_v34, %v7144_v34 }
  0x98   :  { %v1511_v58 = vunpack.c.l.b16 %v5578_v48  ;;  %v6340_v48 = vld [vmem:[#allocation5 + $0x548] ss:$16 sps:$4 sm:$0xff]  }
  0x99   :  { %1222 = vmatpush1.bf16.msra.mxu0 %v6237_v51  ;;  %1263 = vmatpush1.bf16.msra.mxu1 %v6240_v53  ;;  %v6304_v51 = vld [vmem:[#allocation5 + $0x488] ss:$16 sps:$4 sm:$0xff]   ;;  %v1505_v53 = vunpack.c.l.b16 %v5572_v38 }
  0x9a   :  { %1223 = vmatprep.subr.bf16.mxu0 %v6245_v56  ;;  %1264 = vmatprep.subr.bf16.mxu1 %v6248_v57  ;;  %v1507_v56 = vunpack.c.l.b16 %v5574_v41  ;;  %v1509_v57 = vunpack.c.l.b16 %v5576_v42  ;;  %v1538_v7 = vrot.slane %v1511_v58, 3  ;;  %v6334_v38 = vld [vmem:[#allocation5 + $0x528] ss:$16 sps:$4 sm:$0xff]  }
  0x9b   :  { %v1532_v62 = vrot.slane %v1505_v53, 6  ;;  %v6343_v53 = vld [vmem:[#allocation5 + $0x560] ss:$16 sps:$4 sm:$0xff]  }
  0x9d   :  { %1224 = vmatpush1.bf16.msra.mxu0 %v6243_v59  ;;  %1265 = vmatpush1.bf16.msra.mxu1 %v6246_v61  ;;  %v1526_v59 = vrot.slane %v1497_v49, 2  ;;  %v1530_v61 = vrot.slane %v1503_v52, 7 }
  0x9e   :  { %1225 = vmatprep.subr.bf16.mxu0 %v6251_v63  ;;  %1266 = vmatprep.subr.bf16.mxu1 %v6254_v0  ;;  %v1534_v0 = vrot.slane %v1507_v56, 5  ;;  %v6354_v56 = vld [vmem:[#allocation5 + $0x58c] ss:$16 sps:$4 sm:$0xff]  }
  0x9f   :  { %v1528_v63 = vsel %vm169_vm0, %v1527_v60, %v1526_v59  ;;  %v6349_v60 = vld [vmem:[#allocation5 + $0x580] ss:$16 sps:$4 sm:$0xff]  }
  0xa1   :  { %1226 = vmatpush1.bf16.msra.mxu0 %v6249_v2  ;;  %1267 = vmatpush1.bf16.msra.mxu1 %v6252_v3  ;;  %v1529_v2 = vsel %vm172_vm1, %v1501_v55, %v1528_v63  ;;  %v1536_v3 = vrot.slane %v1509_v57, 4  ;;  %v6351_v55 = vld [vmem:[#allocation5 + $0x584] ss:$16 sps:$4 sm:$0xff]   ;;  %v5575_v57 = vcombine.low %v7142_v33, %v7142_v33 }
  0xa2   :  { %1227 = vmatprep.subr.bf16.mxu0 %v6257_v5  ;;  %1268 = vmatprep.subr.bf16.mxu1 %v6260_v6  ;;  %v6318_v5 = vld [vmem:[#allocation5 + $0x4cc] ss:$16 sps:$4 sm:$0xff]   ;;  %v1531_v6 = vsel %vm175_vm2, %v1530_v61, %v1529_v2  ;;  %v6352_v61 = vld [vmem:[#allocation5 + $0x588] ss:$16 sps:$4 sm:$0xff]   ;;  %v6357_v63 = vld [vmem:[#allocation5 + $0x5a4] ss:$16 sps:$4 sm:$0xff]  }
  0xa5   :  { %1228 = vmatpush1.bf16.msra.mxu0 %v6255_v8  ;;  %1269 = vmatpush1.bf16.msra.mxu1 %v6258_v9  ;;  %v1533_v8 = vsel %vm178_vm3, %v1532_v62, %v1531_v6 }
  0xa6   :  { %1864 = vmatprep.subr.bf16.mxu0 %v6279_v11  ;;  %1905 = vmatprep.subr.bf16.mxu1 %v6282_v12  ;;  %v1535_v9 = vsel %vm181_vm4, %v1534_v0, %v1533_v8  ;;  %v6316_v11 = vld [vmem:[#allocation5 + $0x4c8] ss:$16 sps:$4 sm:$0xff]   ;;  %v6360_v0 = vld [vmem:[#allocation5 + $0x5ac] ss:$16 sps:$4 sm:$0xff]  }
  0xa7   :  { %v1537_v12 = vsel %vm184_vm5, %v1536_v3, %v1535_v9  ;;  %v6355_v3 = vld [vmem:[#allocation5 + $0x5a0] ss:$16 sps:$4 sm:$0xff]   ;;  %v6364_v8 = vld [vmem:[#allocation5 + $0x5c8] ss:$16 sps:$4 sm:$0xff]  }
  0xa8   :  { %1230 = vmatmul.mubr.bf16.vlgmr.msra.gmra.mrb[4].mxu0 %v873_v13  ;;  %1271 = vmatmul.mubr.bf16.vlgmr.msra.gmra.mrb[4].mxu1 %v873_v13  ;;  %v6321_v13 = vld [vmem:[#allocation5 + $0x4e4] ss:$16 sps:$4 sm:$0xff]  }
  0xa9   :  { %1865 = vmatpush1.bf16.msra.mxu0 %v6277_v14  ;;  %1906 = vmatpush1.bf16.msra.mxu1 %v6280_v15  ;;  %v6324_v14 = vld [vmem:[#allocation5 + $0x4ec] ss:$16 sps:$4 sm:$0xff]   ;;  %v1539_v15 = vsel %vm187_vm6, %v1538_v7, %v1537_v12  ;;  %v6361_v7 = vld [vmem:[#allocation5 + $0x5c0] ss:$16 sps:$4 sm:$0xff]  }
  0xaa   :  { %1866 = vmatprep.subr.bf16.mxu0 %v6285_v16  ;;  %1907 = vmatprep.subr.bf16.mxu1 %v6288_v17  ;;  %v1541_v16 = vpack.c.b16 %v1539_v15, %v1539_v15  ;;  %v6319_v17 = vld [vmem:[#allocation5 + $0x4e0] ss:$16 sps:$4 sm:$0xff]  }
  0xab   :  { %v7192_v15 = vld [vmem:[#allocation2 + $0x10] sm:$0x22] }
  0xac   :  { %1896 = vmatprep.mubr.bf16.mxu0 %v1541_v16  ;;  %1937 = vmatprep.mubr.bf16.mxu1 %v1541_v16  ;;  %v7194_v16 = vld [vmem:[#allocation2 + $0x18] sm:$0x22] }
  0xad   :  { %1867 = vmatpush1.bf16.msra.mxu0 %v6283_v18  ;;  %1908 = vmatpush1.bf16.msra.mxu1 %v6286_v19  ;;  %v6322_v18 = vld [vmem:[#allocation5 + $0x4e8] ss:$16 sps:$4 sm:$0xff]   ;;  %v6327_v19 = vld [vmem:[#allocation5 + $0x504] ss:$16 sps:$4 sm:$0xff]  }
  0xae   :  { %1868 = vmatprep.subr.bf16.mxu0 %v6291_v20  ;;  %1909 = vmatprep.subr.bf16.mxu1 %v6294_v21  ;;  %v6330_v20 = vld [vmem:[#allocation5 + $0x50c] ss:$16 sps:$4 sm:$0xff]   ;;  %v5563_v21 = vcombine.low %v7128_v26, %v7128_v26  ;;  %v5569_v26 = vcombine.low %v7134_v29, %v7134_v29  ;;  %v6345_v29 = vld [vmem:[#allocation5 + $0x564] ss:$16 sps:$4 sm:$0xff]  }
  0xb0   :  { %v1496_v35 = vunpack.c.l.b16 %v5563_v21  ;;  %v1502_v49 = vunpack.c.l.b16 %v5569_v26  ;;  %v7203_v21 = vld [vmem:[#allocation2 + $0x30] sm:$0x22]  ;;  %v5650_v26 = vcombine.high %v7194_v16, %v7194_v16 }
  0xb1   :  { %1869 = vmatpush1.bf16.msra.mxu0 %v6289_v22  ;;  %1910 = vmatpush1.bf16.msra.mxu1 %v6292_v23  ;;  %v5565_v22 = vcombine.low %v7130_v27, %v7130_v27  ;;  %v6325_v23 = vld [vmem:[#allocation5 + $0x500] ss:$16 sps:$4 sm:$0xff]   ;;  %v6339_v27 = vld [vmem:[#allocation5 + $0x544] ss:$16 sps:$4 sm:$0xff]  }
  0xb2   :  { %1870 = vmatprep.subr.bf16.mxu0 %v6297_v24  ;;  %1911 = vmatprep.subr.bf16.mxu1 %v6300_v25  ;;  %v6328_v24 = vld [vmem:[#allocation5 + $0x508] ss:$16 sps:$4 sm:$0xff]   ;;  %v6333_v25 = vld [vmem:[#allocation5 + $0x524] ss:$16 sps:$4 sm:$0xff]   ;;  %v1512_v41 = vrot.slane %v1496_v35, 2  ;;  %v5656_v35 = vcombine.high %v7203_v21, %v7203_v21 }
  0xb5   :  { %1871 = vmatpush1.bf16.msra.mxu0 %v6295_v36  ;;  %1912 = vmatpush1.bf16.msra.mxu1 %v6298_v39  ;;  %v1498_v36 = vunpack.c.l.b16 %v5565_v22  ;;  %v6342_v39 = vld [vmem:[#allocation5 + $0x54c] ss:$16 sps:$4 sm:$0xff]  }
  0xb6   :  { %1872 = vmatprep.subr.bf16.mxu0 %v6303_v43  ;;  %1913 = vmatprep.subr.bf16.mxu1 %v6306_v46  ;;  %v5571_v43 = vcombine.low %v7136_v30, %v7136_v30  ;;  %v6337_v46 = vld [vmem:[#allocation5 + $0x540] ss:$16 sps:$4 sm:$0xff]   ;;  %v6346_v30 = vld [vmem:[#allocation5 + $0x568] ss:$16 sps:$4 sm:$0xff]  }
  0xb7   :  { %v1513_v42 = vrot.slane %v1498_v36, 1  ;;  %v7205_v22 = vld [vmem:[#allocation2 + $0x38] sm:$0x22]  ;;  %v6367_v36 = vld [vmem:[#allocation5 + $0x5e0] ss:$16 sps:$4 sm:$0xff]  }
  0xb8   :  { %v1504_v52 = vunpack.c.l.b16 %v5571_v43 }
  0xb9   :  { %1873 = vmatpush1.bf16.msra.mxu0 %v6301_v44  ;;  %1914 = vmatpush1.bf16.msra.mxu1 %v6304_v51  ;;  %v6348_v44 = vld [vmem:[#allocation5 + $0x56c] ss:$16 sps:$4 sm:$0xff]   ;;  %v5573_v51 = vcombine.low %v7140_v32, %v7140_v32  ;;  %v1514_v28 = vsel %vm169_vm0, %v1513_v42, %v1512_v41  ;;  %v5577_v32 = vcombine.low %v7144_v34, %v7144_v34  ;;  %v6358_v34 = vld [vmem:[#allocation5 + $0x5a8] ss:$16 sps:$4 sm:$0xff]  }
  0xba   :  { %1874 = vmatprep.subr.bf16.mxu0 %v6309_v54  ;;  %1915 = vmatprep.subr.bf16.mxu1 %v6312_v45  ;;  %v1516_v54 = vrot.slane %v1502_v49, 7  ;;  %v1515_v45 = vsel %vm172_vm1, %v1500_v50, %v1514_v28  ;;  %v1518_v59 = vrot.slane %v1504_v52, 6  ;;  %v6394_v41 = vld [vmem:[#allocation5 + $0x60c] ss:$16 sps:$4 sm:$0xff]   ;;  %v6389_v49 = vld [vmem:[#allocation5 + $0x600] ss:$16 sps:$4 sm:$0xff]   ;;  %v2170_v28 = vunpack.c.l.b16 %v5650_v26 }
  0xbb   :  { %v1506_v58 = vunpack.c.l.b16 %v5573_v51  ;;  %v1510_v33 = vunpack.c.l.b16 %v5577_v32  ;;  %v6392_v50 = vld [vmem:[#allocation5 + $0x608] ss:$16 sps:$4 sm:$0xff]   ;;  %v6397_v51 = vld [vmem:[#allocation5 + $0x624] ss:$16 sps:$4 sm:$0xff]   ;;  %v6431_v26 = vld [vmem:[#allocation5 + $0x6e0] ss:$16 sps:$4 sm:$0xff]  }
  0xbc   :  { %v1517_v62 = vsel %vm175_vm2, %v1516_v54, %v1515_v45  ;;  %v6400_v54 = vld [vmem:[#allocation5 + $0x62c] ss:$16 sps:$4 sm:$0xff]  }
  0xbd   :  { %1875 = vmatpush1.bf16.msra.mxu0 %v6307_v47  ;;  %1916 = vmatpush1.bf16.msra.mxu1 %v6310_v1  ;;  %v1508_v47 = vunpack.c.l.b16 %v5575_v57  ;;  %v1520_v1 = vrot.slane %v1506_v58, 5  ;;  %v1519_v2 = vsel %vm178_vm3, %v1518_v59, %v1517_v62  ;;  %v1524_v12 = vrot.slane %v1510_v33, 3  ;;  %v6395_v58 = vld [vmem:[#allocation5 + $0x620] ss:$16 sps:$4 sm:$0xff]  }
  0xbe   :  { %1876 = vmatprep.subr.bf16.mxu0 %v6315_v4  ;;  %1917 = vmatprep.subr.bf16.mxu1 %v6318_v5  ;;  %v6363_v4 = vld [vmem:[#allocation5 + $0x5c4] ss:$16 sps:$4 sm:$0xff]   ;;  %v6366_v5 = vld [vmem:[#allocation5 + $0x5cc] ss:$16 sps:$4 sm:$0xff]   ;;  %v6401_v33 = vld [vmem:[#allocation5 + $0x640] ss:$16 sps:$4 sm:$0xff]  }
  0xbf   :  { %v1522_v6 = vrot.slane %v1508_v47, 4  ;;  %v1521_v9 = vsel %vm181_vm4, %v1520_v1, %v1519_v2 }
  0xc1   :  { %1877 = vmatpush1.bf16.msra.mxu0 %v6313_v10  ;;  %1918 = vmatpush1.bf16.msra.mxu1 %v6316_v11  ;;  %v6369_v10 = vld [vmem:[#allocation5 + $0x5e4] ss:$16 sps:$4 sm:$0xff]   ;;  %v6372_v11 = vld [vmem:[#allocation5 + $0x5ec] ss:$16 sps:$4 sm:$0xff]  }
  0xc2   :  { %1878 = vmatprep.subr.bf16.mxu0 %v6321_v13  ;;  %1919 = vmatprep.subr.bf16.mxu1 %v6324_v14  ;;  %v7188_v13 = vld [vmem:[#allocation2] sm:$0x22]  ;;  %v7190_v14 = vld [vmem:[#allocation2 + $0x8] sm:$0x22] }
  0xc5   :  { %1879 = vmatpush1.bf16.msra.mxu0 %v6319_v17  ;;  %1920 = vmatpush1.bf16.msra.mxu1 %v6322_v18  ;;  %v7196_v17 = vld [vmem:[#allocation2 + $0x20] sm:$0x22]  ;;  %v5644_v18 = vcombine.high %v7188_v13, %v7188_v13 }
  0xc6   :  { %1880 = vmatprep.subr.bf16.mxu0 %v6327_v19  ;;  %1921 = vmatprep.subr.bf16.mxu1 %v6330_v20  ;;  %v1523_v19 = vsel %vm184_vm5, %v1522_v6, %v1521_v9  ;;  %v7201_v20 = vld [vmem:[#allocation2 + $0x28] sm:$0x22]  ;;  %v6415_v9 = vld [vmem:[#allocation5 + $0x684] ss:$16 sps:$4 sm:$0xff]  }
  0xc9   :  { %1881 = vmatpush1.bf16.msra.mxu0 %v6325_v23  ;;  %1922 = vmatpush1.bf16.msra.mxu1 %v6328_v24  ;;  %v5646_v23 = vcombine.high %v7190_v14, %v7190_v14  ;;  %v5648_v24 = vcombine.high %v7192_v15, %v7192_v15 }
  0xca   :  { %1882 = vmatprep.subr.bf16.mxu0 %v6333_v25  ;;  %1923 = vmatprep.subr.bf16.mxu1 %v6336_v31  ;;  %v5652_v25 = vcombine.high %v7196_v17, %v7196_v17  ;;  %v5654_v31 = vcombine.high %v7201_v20, %v7201_v20 }
  0xcb   :  { %v2166_v42 = vunpack.c.l.b16 %v5646_v23  ;;  %v2168_v43 = vunpack.c.l.b16 %v5648_v24  ;;  %v6419_v23 = vld [vmem:[#allocation5 + $0x6a0] ss:$16 sps:$4 sm:$0xff]   ;;  %v6422_v24 = vld [vmem:[#allocation5 + $0x6a8] ss:$16 sps:$4 sm:$0xff]  }
  0xcd   :  { %1883 = vmatpush1.bf16.msra.mxu0 %v6331_v37  ;;  %1924 = vmatpush1.bf16.msra.mxu1 %v6334_v38  ;;  %v6370_v37 = vld [vmem:[#allocation5 + $0x5e8] ss:$16 sps:$4 sm:$0xff]   ;;  %v1525_v38 = vsel %vm187_vm6, %v1524_v12, %v1523_v19  ;;  %v6424_v19 = vld [vmem:[#allocation5 + $0x6ac] ss:$16 sps:$4 sm:$0xff]  }
  0xce   :  { %1884 = vmatprep.subr.bf16.mxu0 %v6339_v27  ;;  %1925 = vmatprep.subr.bf16.mxu1 %v6342_v39  ;;  %v5658_v27 = vcombine.high %v7205_v22, %v7205_v22  ;;  %v2164_v39 = vunpack.c.l.b16 %v5644_v18  ;;  %v6416_v12 = vld [vmem:[#allocation5 + $0x688] ss:$16 sps:$4 sm:$0xff]   ;;  %v6421_v18 = vld [vmem:[#allocation5 + $0x6a4] ss:$16 sps:$4 sm:$0xff]  }
  0xd0   :  { %v2178_v52 = vunpack.c.l.b16 %v5658_v27  ;;  %v6434_v27 = vld [vmem:[#allocation5 + $0x6e8] ss:$16 sps:$4 sm:$0xff]  }
  0xd1   :  { %1885 = vmatpush1.bf16.msra.mxu0 %v6337_v46  ;;  %1926 = vmatpush1.bf16.msra.mxu1 %v6340_v48  ;;  %v2172_v46 = vunpack.c.l.b16 %v5652_v25  ;;  %v1540_v48 = vpack.c.b16 %v1525_v38, %v1525_v38  ;;  %v6427_v25 = vld [vmem:[#allocation5 + $0x6c4] ss:$16 sps:$4 sm:$0xff]   ;;  %v6436_v38 = vld [vmem:[#allocation5 + $0x6ec] ss:$16 sps:$4 sm:$0xff]  }
  0xd2   :  { %1886 = vmatprep.subr.bf16.mxu0 %v6345_v29  ;;  %1927 = vmatprep.subr.bf16.mxu1 %v6348_v44  ;;  %v2174_v29 = vunpack.c.l.b16 %v5654_v31  ;;  %v2176_v44 = vunpack.c.l.b16 %v5656_v35  ;;  %v6430_v31 = vld [vmem:[#allocation5 + $0x6cc] ss:$16 sps:$4 sm:$0xff]   ;;  %v6425_v35 = vld [vmem:[#allocation5 + $0x6c0] ss:$16 sps:$4 sm:$0xff]  }
  0xd4   :  { %v2201_v45 = vrot.slane %v2174_v29, 6  ;;  %v2203_v59 = vrot.slane %v2176_v44, 5  ;;  %v5647_v29 = vcombine.low %v7192_v15, %v7192_v15  ;;  %v5651_v15 = vcombine.low %v7196_v17, %v7196_v17 }
  0xd5   :  { %1887 = vmatpush1.bf16.msra.mxu0 %v6343_v53  ;;  %1928 = vmatpush1.bf16.msra.mxu1 %v6346_v30  ;;  %v2193_v53 = vrot.slane %v2164_v39, 3  ;;  %v2194_v30 = vrot.slane %v2166_v42, 2  ;;  %v6439_v39 = vld [vmem:[#allocation5 + $0x704] ss:$16 sps:$4 sm:$0xff]   ;;  %v5645_v42 = vcombine.low %v7190_v14, %v7190_v14  ;;  %v6454_v14 = vld [vmem:[#allocation5 + $0x74c] ss:$16 sps:$4 sm:$0xff]  }
  0xd6   :  { %1888 = vmatprep.subr.bf16.mxu0 %v6351_v55  ;;  %1929 = vmatprep.subr.bf16.mxu1 %v6354_v56  ;;  %v2196_v55 = vrot.slane %v2168_v43, 1  ;;  %v2199_v56 = vrot.slane %v2172_v46, 7  ;;  %v6437_v43 = vld [vmem:[#allocation5 + $0x700] ss:$16 sps:$4 sm:$0xff]   ;;  %v6440_v46 = vld [vmem:[#allocation5 + $0x708] ss:$16 sps:$4 sm:$0xff]  }
  0xd7   :  { %v2195_v57 = vsel %vm169_vm0, %v2194_v30, %v2193_v53 }
  0xd8   :  { %v2197_v32 = vsel %vm172_vm1, %v2196_v55, %v2195_v57  ;;  %v7237_v55 = vld [vmem:[#allocation2 + $0x8] sm:$0x44]  ;;  %v7243_v57 = vld [vmem:[#allocation2 + $0x18] sm:$0x44] }
  0xd9   :  { %1889 = vmatpush1.bf16.msra.mxu0 %v6349_v60  ;;  %1930 = vmatpush1.bf16.msra.mxu1 %v6352_v61  ;;  %v6398_v60 = vld [vmem:[#allocation5 + $0x628] ss:$16 sps:$4 sm:$0xff]   ;;  %v6403_v61 = vld [vmem:[#allocation5 + $0x644] ss:$16 sps:$4 sm:$0xff]   ;;  %v2198_v62 = vsel %vm175_vm2, %v2170_v28, %v2197_v32 }
  0xda   :  { %1890 = vmatprep.subr.bf16.mxu0 %v6357_v63  ;;  %1931 = vmatprep.subr.bf16.mxu1 %v6360_v0  ;;  %v2205_v63 = vrot.slane %v2178_v52, 4  ;;  %v6406_v0 = vld [vmem:[#allocation5 + $0x64c] ss:$16 sps:$4 sm:$0xff]   ;;  %v2200_v47 = vsel %vm178_vm3, %v2199_v56, %v2198_v62  ;;  %v6451_v28 = vld [vmem:[#allocation5 + $0x744] ss:$16 sps:$4 sm:$0xff]   ;;  %v2167_v52 = vunpack.c.l.b16 %v5647_v29 }
  0xdb   :  { %v2202_v1 = vsel %vm181_vm4, %v2201_v45, %v2200_v47  ;;  %v7241_v56 = vld [vmem:[#allocation2 + $0x10] sm:$0x44]  ;;  %v6452_v32 = vld [vmem:[#allocation5 + $0x748] ss:$16 sps:$4 sm:$0xff]   ;;  %v6460_v62 = vld [vmem:[#allocation5 + $0x76c] ss:$16 sps:$4 sm:$0xff]  }
  0xdc   :  { %v2204_v2 = vsel %vm184_vm5, %v2203_v59, %v2202_v1  ;;  %v6457_v59 = vld [vmem:[#allocation5 + $0x764] ss:$16 sps:$4 sm:$0xff]   ;;  %v5728_v17 = vcombine.high %v7241_v56, %v7241_v56  ;;  %v6455_v47 = vld [vmem:[#allocation5 + $0x760] ss:$16 sps:$4 sm:$0xff]   ;;  %v5653_v1 = vcombine.low %v7201_v20, %v7201_v20  ;;  %v5655_v20 = vcombine.low %v7203_v21, %v7203_v21  ;;  %v6464_v21 = vld [vmem:[#allocation5 + $0x788] ss:$16 sps:$4 sm:$0xff]  }
  0xdd   :  { %1891 = vmatpush1.bf16.msra.mxu0 %v6355_v3  ;;  %1932 = vmatpush1.bf16.msra.mxu1 %v6358_v34  ;;  %v6404_v3 = vld [vmem:[#allocation5 + $0x648] ss:$16 sps:$4 sm:$0xff]   ;;  %v6409_v34 = vld [vmem:[#allocation5 + $0x664] ss:$16 sps:$4 sm:$0xff]   ;;  %v6467_v29 = vld [vmem:[#allocation5 + $0x7a0] ss:$16 sps:$4 sm:$0xff]  }
  0xde   :  { %1892 = vmatprep.subr.bf16.mxu0 %v6363_v4  ;;  %1933 = vmatprep.subr.bf16.mxu1 %v6366_v5  ;;  %v2206_v4 = vsel %vm187_vm6, %v2205_v63, %v2204_v2  ;;  %v6412_v5 = vld [vmem:[#allocation5 + $0x66c] ss:$16 sps:$4 sm:$0xff]   ;;  %v2182_v63 = vrot.slane %v2167_v52, 1  ;;  %v6458_v2 = vld [vmem:[#allocation5 + $0x768] ss:$16 sps:$4 sm:$0xff]  }
  0xdf   :  { %v2208_v6 = vpack.c.b16 %v2206_v4, %v2206_v4 }
  0xe1   :  { %1893 = vmatpush1.bf16.msra.mxu0 %v6361_v7  ;;  %1934 = vmatpush1.bf16.msra.mxu1 %v6364_v8  ;;  %v6407_v7 = vld [vmem:[#allocation5 + $0x660] ss:$16 sps:$4 sm:$0xff]   ;;  %v6410_v8 = vld [vmem:[#allocation5 + $0x668] ss:$16 sps:$4 sm:$0xff]  }
  0xe2   :  { %1894 = vmatprep.subr.bf16.mxu0 %v6369_v10  ;;  %1935 = vmatprep.subr.bf16.mxu1 %v6372_v11  ;;  %v6418_v10 = vld [vmem:[#allocation5 + $0x68c] ss:$16 sps:$4 sm:$0xff]   ;;  %v6413_v11 = vld [vmem:[#allocation5 + $0x680] ss:$16 sps:$4 sm:$0xff]  }
  0xe5   :  { %1895 = vmatpush1.bf16.msra.mxu0 %v6367_v36  ;;  %1936 = vmatpush1.bf16.msra.mxu1 %v6370_v37  ;;  %v6428_v36 = vld [vmem:[#allocation5 + $0x6c8] ss:$16 sps:$4 sm:$0xff]   ;;  %v6433_v37 = vld [vmem:[#allocation5 + $0x6e4] ss:$16 sps:$4 sm:$0xff]  }
  0xe6   :  { %2531 = vmatprep.subr.bf16.mxu0 %v6391_v40  ;;  %2572 = vmatprep.subr.bf16.mxu1 %v6394_v41  ;;  %v6442_v40 = vld [vmem:[#allocation5 + $0x70c] ss:$16 sps:$4 sm:$0xff]   ;;  %v5643_v41 = vcombine.low %v7188_v13, %v7188_v13  ;;  %v6446_v13 = vld [vmem:[#allocation5 + $0x728] ss:$16 sps:$4 sm:$0xff]  }
  0xe8   :  { %1897 = vmatmul.mubr.bf16.vlgmr.msra.gmra.mrb[8].mxu0 %v1540_v48  ;;  %1938 = vmatmul.mubr.bf16.vlgmr.msra.gmra.mrb[8].mxu1 %v1540_v48  ;;  %v6445_v48 = vld [vmem:[#allocation5 + $0x724] ss:$16 sps:$4 sm:$0xff]   ;;  %v2163_v44 = vunpack.c.l.b16 %v5643_v41  ;;  %v6472_v41 = vld [vmem:[#allocation5 + $0x7ac] ss:$16 sps:$4 sm:$0xff]  }
  0xe9   :  { %2532 = vmatpush1.bf16.msra.mxu0 %v6389_v49  ;;  %2573 = vmatpush1.bf16.msra.mxu1 %v6392_v50  ;;  %v6448_v49 = vld [vmem:[#allocation5 + $0x72c] ss:$16 sps:$4 sm:$0xff]   ;;  %v2165_v50 = vunpack.c.l.b16 %v5645_v42  ;;  %v2175_v42 = vunpack.c.l.b16 %v5655_v20 }
  0xea   :  { %2533 = vmatprep.subr.bf16.mxu0 %v6397_v51  ;;  %2574 = vmatprep.subr.bf16.mxu1 %v6400_v54  ;;  %v6443_v51 = vld [vmem:[#allocation5 + $0x720] ss:$16 sps:$4 sm:$0xff]   ;;  %v2179_v53 = vrot.slane %v2163_v44, 3  ;;  %v6470_v44 = vld [vmem:[#allocation5 + $0x7a8] ss:$16 sps:$4 sm:$0xff]  }
  0xeb   :  { %2563 = vmatprep.mubr.bf16.mxu0 %v2208_v6  ;;  %2604 = vmatprep.mubr.bf16.mxu1 %v2208_v6  ;;  %v2180_v30 = vrot.slane %v2165_v50, 2  ;;  %v7235_v54 = vld [vmem:[#allocation2] sm:$0x44]  ;;  %v6466_v6 = vld [vmem:[#allocation5 + $0x78c] ss:$16 sps:$4 sm:$0xff]  }
  0xec   :  { %v5724_v45 = vcombine.high %v7235_v54, %v7235_v54 }
  0xed   :  { %2534 = vmatpush1.bf16.msra.mxu0 %v6395_v58  ;;  %2575 = vmatpush1.bf16.msra.mxu1 %v6398_v60  ;;  %v6449_v58 = vld [vmem:[#allocation5 + $0x740] ss:$16 sps:$4 sm:$0xff]   ;;  %v5649_v60 = vcombine.low %v7194_v16, %v7194_v16  ;;  %v7258_v16 = vld [vmem:[#allocation2 + $0x28] sm:$0x44] }
  0xee   :  { %2535 = vmatprep.subr.bf16.mxu0 %v6403_v61  ;;  %2576 = vmatprep.subr.bf16.mxu1 %v6406_v0  ;;  %v5726_v61 = vcombine.high %v7237_v55, %v7237_v55  ;;  %v5730_v0 = vcombine.high %v7243_v57, %v7243_v57  ;;  %v2831_v4 = vunpack.c.l.b16 %v5724_v45 }
  0xf1   :  { %2536 = vmatpush1.bf16.msra.mxu0 %v6401_v33  ;;  %2577 = vmatpush1.bf16.msra.mxu1 %v6404_v3  ;;  %v2181_v33 = vsel %vm169_vm0, %v2180_v30, %v2179_v53  ;;  %v2171_v3 = vunpack.c.l.b16 %v5651_v15  ;;  %v6478_v53 = vld [vmem:[#allocation5 + $0x7cc] ss:$16 sps:$4 sm:$0xff]   ;;  %v2189_v30 = vrot.slane %v2175_v42, 5  ;;  %v620_v42 = vlaneseq }
  0xf2   :  { %2537 = vmatprep.subr.bf16.mxu0 %v6409_v34  ;;  %2578 = vmatprep.subr.bf16.mxu1 %v6412_v5  ;;  %v7260_v34 = vld [vmem:[#allocation2 + $0x20] sm:$0x44] }
  0xf3   :  { %v6463_v5 = vld [vmem:[#allocation5 + $0x784] ss:$16 sps:$4 sm:$0xff]   ;;  %vm7297_vm7 = vcmp.lt.s32.totalorder %v620_v42, 512 }
  0xf5   :  { %2538 = vmatpush1.bf16.msra.mxu0 %v6407_v7  ;;  %2579 = vmatpush1.bf16.msra.mxu1 %v6410_v8  ;;  %v2169_v7 = vunpack.c.l.b16 %v5649_v60  ;;  %v2833_v8 = vunpack.c.l.b16 %v5726_v61  ;;  %v6481_v61 = vld [vmem:[#allocation5 + $0x7e4] ss:$16 sps:$4 sm:$0xff]  }
  0xf6   :  { %2539 = vmatprep.subr.bf16.mxu0 %v6415_v9  ;;  %2580 = vmatprep.subr.bf16.mxu1 %v6418_v10  ;;  %v2835_v9 = vunpack.c.l.b16 %v5728_v17  ;;  %v2183_v10 = vsel %vm172_vm1, %v2182_v63, %v2181_v33  ;;  %v6484_v63 = vld [vmem:[#allocation5 + $0x7ec] ss:$16 sps:$4 sm:$0xff]   ;;  %v6482_v33 = vld [vmem:[#allocation5 + $0x7e8] ss:$16 sps:$4 sm:$0xff]  }
  0xf9   :  { %2540 = vmatpush1.bf16.msra.mxu0 %v6413_v11  ;;  %2581 = vmatpush1.bf16.msra.mxu1 %v6416_v12  ;;  %v7265_v11 = vld [vmem:[#allocation2 + $0x30] sm:$0x44]  ;;  %v5734_v12 = vcombine.high %v7258_v16, %v7258_v16 }
  0xfa   :  { %2541 = vmatprep.subr.bf16.mxu0 %v6421_v18  ;;  %2582 = vmatprep.subr.bf16.mxu1 %v6424_v19  ;;  %v2837_v18 = vunpack.c.l.b16 %v5730_v0  ;;  %v6461_v19 = vld [vmem:[#allocation5 + $0x780] ss:$16 sps:$4 sm:$0xff]  }
  0xfd   :  { %2542 = vmatpush1.bf16.msra.mxu0 %v6419_v23  ;;  %2583 = vmatpush1.bf16.msra.mxu1 %v6422_v24  ;;  %v2173_v23 = vunpack.c.l.b16 %v5653_v1  ;;  %v5732_v24 = vcombine.high %v7260_v34, %v7260_v34  ;;  %v6479_v1 = vld [vmem:[#allocation5 + $0x7e0] ss:$16 sps:$4 sm:$0xff]  }
  0xfe   :  { %2543 = vmatprep.subr.bf16.mxu0 %v6427_v25  ;;  %2584 = vmatprep.subr.bf16.mxu1 %v6430_v31  ;;  %v2185_v25 = vrot.slane %v2171_v3, 7  ;;  %v2860_v31 = vrot.slane %v2831_v4, 4  ;;  %v6503_v4 = vld [vmem:[#allocation5 + $0x804] ss:$16 sps:$4 sm:$0xff]  }
 0x101   :  { %2544 = vmatpush1.bf16.msra.mxu0 %v6425_v35  ;;  %2585 = vmatpush1.bf16.msra.mxu1 %v6428_v36  ;;  %v2861_v35 = vrot.slane %v2833_v8, 3  ;;  %v2863_v36 = vrot.slane %v2835_v9, 2  ;;  %v6501_v8 = vld [vmem:[#allocation5 + $0x800] ss:$16 sps:$4 sm:$0xff]   ;;  %v6504_v9 = vld [vmem:[#allocation5 + $0x808] ss:$16 sps:$4 sm:$0xff]  }
 0x102   :  { %2545 = vmatprep.subr.bf16.mxu0 %v6433_v37  ;;  %2586 = vmatprep.subr.bf16.mxu1 %v6436_v38  ;;  %v5657_v37 = vcombine.low %v7205_v22, %v7205_v22  ;;  %v2184_v38 = vsel %vm175_vm2, %v2169_v7, %v2183_v10  ;;  %v6509_v10 = vld [vmem:[#allocation5 + $0x824] ss:$16 sps:$4 sm:$0xff]  }
 0x103   :  { %v2186_v50 = vsel %vm178_vm3, %v2185_v25, %v2184_v38  ;;  %v6518_v25 = vld [vmem:[#allocation5 + $0x84c] ss:$16 sps:$4 sm:$0xff]   ;;  %v6522_v38 = vld [vmem:[#allocation5 + $0x868] ss:$16 sps:$4 sm:$0xff]  }
 0x105   :  { %2546 = vmatpush1.bf16.msra.mxu0 %v6431_v26  ;;  %2587 = vmatpush1.bf16.msra.mxu1 %v6434_v27  ;;  %v7274_v26 = vld [vmem:[#allocation2 + $0x38] sm:$0x44]  ;;  %v5736_v27 = vcombine.high %v7265_v11, %v7265_v11 }
 0x106   :  { %2547 = vmatprep.subr.bf16.mxu0 %v6439_v39  ;;  %2588 = vmatprep.subr.bf16.mxu1 %v6442_v40  ;;  %v2865_v39 = vrot.slane %v2837_v18, 1  ;;  %v6469_v40 = vld [vmem:[#allocation5 + $0x7a4] ss:$16 sps:$4 sm:$0xff]  }
 0x107   :  { %v2843_v52 = vunpack.c.l.b16 %v5736_v27  ;;  %v6527_v27 = vld [vmem:[#allocation5 + $0x884] ss:$16 sps:$4 sm:$0xff]  }
 0x109   :  { %2548 = vmatpush1.bf16.msra.mxu0 %v6437_v43  ;;  %2589 = vmatpush1.bf16.msra.mxu1 %v6440_v46  ;;  %v2841_v43 = vunpack.c.l.b16 %v5734_v12  ;;  %v2862_v46 = vsel %vm169_vm0, %v2861_v35, %v2860_v31  ;;  %v6512_v12 = vld [vmem:[#allocation5 + $0x82c] ss:$16 sps:$4 sm:$0xff]   ;;  %v6513_v31 = vld [vmem:[#allocation5 + $0x840] ss:$16 sps:$4 sm:$0xff]   ;;  %v6516_v35 = vld [vmem:[#allocation5 + $0x848] ss:$16 sps:$4 sm:$0xff]  }
 0x10a   :  { %2549 = vmatprep.subr.bf16.mxu0 %v6445_v48  ;;  %2590 = vmatprep.subr.bf16.mxu1 %v6448_v49  ;;  %v2187_v48 = vrot.slane %v2173_v23, 6  ;;  %v2839_v49 = vunpack.c.l.b16 %v5732_v24  ;;  %v2864_v22 = vsel %vm172_vm1, %v2863_v36, %v2862_v46  ;;  %v6510_v23 = vld [vmem:[#allocation5 + $0x828] ss:$16 sps:$4 sm:$0xff]   ;;  %v6515_v24 = vld [vmem:[#allocation5 + $0x844] ss:$16 sps:$4 sm:$0xff]  }
 0x10b   :  { %v2868_v15 = vrot.slane %v2841_v43, 7  ;;  %v6521_v36 = vld [vmem:[#allocation5 + $0x864] ss:$16 sps:$4 sm:$0xff]   ;;  %v6525_v43 = vld [vmem:[#allocation5 + $0x880] ss:$16 sps:$4 sm:$0xff]  }
 0x10c   :  { %v2188_v45 = vsel %vm181_vm4, %v2187_v48, %v2186_v50  ;;  %v6528_v46 = vld [vmem:[#allocation5 + $0x888] ss:$16 sps:$4 sm:$0xff]   ;;  %v6533_v48 = vld [vmem:[#allocation5 + $0x8a4] ss:$16 sps:$4 sm:$0xff]  }
 0x10d   :  { %2550 = vmatpush1.bf16.msra.mxu0 %v6443_v51  ;;  %2591 = vmatpush1.bf16.msra.mxu1 %v6446_v13  ;;  %v5738_v51 = vcombine.high %v7274_v26, %v7274_v26  ;;  %v2866_v13 = vsel %vm175_vm2, %v2865_v39, %v2864_v22  ;;  %v2190_v0 = vsel %vm184_vm5, %v2189_v30, %v2188_v45  ;;  %v6530_v39 = vld [vmem:[#allocation5 + $0x88c] ss:$16 sps:$4 sm:$0xff]   ;;  %v6534_v50 = vld [vmem:[#allocation5 + $0x8a8] ss:$16 sps:$4 sm:$0xff]  }
 0x10e   :  { %2551 = vmatprep.subr.bf16.mxu0 %v6451_v28  ;;  %2592 = vmatprep.subr.bf16.mxu1 %v6454_v14  ;;  %v6475_v28 = vld [vmem:[#allocation5 + $0x7c4] ss:$16 sps:$4 sm:$0xff]   ;;  %v2177_v14 = vunpack.c.l.b16 %v5657_v37  ;;  %v6519_v37 = vld [vmem:[#allocation5 + $0x860] ss:$16 sps:$4 sm:$0xff]  }
 0x10f   :  { %v2845_v60 = vunpack.c.l.b16 %v5738_v51  ;;  %v6539_v51 = vld [vmem:[#allocation5 + $0x8c4] ss:$16 sps:$4 sm:$0xff]  }
 0x110   :  { %v2191_v17 = vrot.slane %v2177_v14, 4 }
 0x111   :  { %2552 = vmatpush1.bf16.msra.mxu0 %v6449_v58  ;;  %2593 = vmatpush1.bf16.msra.mxu1 %v6452_v32  ;;  %v2867_v58 = vsel %vm178_vm3, %v2839_v49, %v2866_v13  ;;  %v6473_v32 = vld [vmem:[#allocation5 + $0x7c0] ss:$16 sps:$4 sm:$0xff]   ;;  %v6536_v49 = vld [vmem:[#allocation5 + $0x8ac] ss:$16 sps:$4 sm:$0xff]  }
 0x112   :  { %2553 = vmatprep.subr.bf16.mxu0 %v6457_v59  ;;  %2594 = vmatprep.subr.bf16.mxu1 %v6460_v62  ;;  %v6476_v59 = vld [vmem:[#allocation5 + $0x7c8] ss:$16 sps:$4 sm:$0xff]   ;;  %v2870_v62 = vrot.slane %v2843_v52, 6  ;;  %v2192_v3 = vsel %vm187_vm6, %v2191_v17, %v2190_v0  ;;  %v6542_v52 = vld [vmem:[#allocation5 + $0x8cc] ss:$16 sps:$4 sm:$0xff]  }
 0x113   :  { %v2207_v7 = vpack.c.b16 %v2192_v3, %v2192_v3  ;;  %v6540_v17 = vld [vmem:[#allocation5 + $0x8c8] ss:$16 sps:$4 sm:$0xff]   ;;  %v6545_v0 = vld [vmem:[#allocation5 + $0x8e4] ss:$16 sps:$4 sm:$0xff]   ;;  %v6548_v3 = vld [vmem:[#allocation5 + $0x8ec] ss:$16 sps:$4 sm:$0xff]  }
 0x115   :  { %2554 = vmatpush1.bf16.msra.mxu0 %v6455_v47  ;;  %2595 = vmatpush1.bf16.msra.mxu1 %v6458_v2  ;;  %v2869_v47 = vsel %vm181_vm4, %v2868_v15, %v2867_v58  ;;  %v2872_v2 = vrot.slane %v2845_v60, 5 }
 0x116   :  { %2555 = vmatprep.subr.bf16.mxu0 %v6463_v5  ;;  %2596 = vmatprep.subr.bf16.mxu1 %v6466_v6  ;;  %v2871_v5 = vsel %vm184_vm5, %v2870_v62, %v2869_v47  ;;  %v6506_v6 = vld [vmem:[#allocation5 + $0x80c] ss:$16 sps:$4 sm:$0xff]  }
 0x117   :  { %v2873_v20 = vsel %vm187_vm6, %v2872_v2, %v2871_v5  ;;  %v6546_v5 = vld [vmem:[#allocation5 + $0x8e8] ss:$16 sps:$4 sm:$0xff]  }
 0x118   :  { %v2875_v18 = vpack.c.b16 %v2873_v20, %v2873_v20  ;;  %v6551_v20 = vld [vmem:[#allocation5 + $0x904] ss:$16 sps:$4 sm:$0xff]  }
 0x119   :  { %2556 = vmatpush1.bf16.msra.mxu0 %v6461_v19  ;;  %2597 = vmatpush1.bf16.msra.mxu1 %v6464_v21  ;;  %v6507_v19 = vld [vmem:[#allocation5 + $0x820] ss:$16 sps:$4 sm:$0xff]   ;;  %v6524_v21 = vld [vmem:[#allocation5 + $0x86c] ss:$16 sps:$4 sm:$0xff]  }
 0x11a   :  { %2557 = vmatprep.subr.bf16.mxu0 %v6469_v40  ;;  %2598 = vmatprep.subr.bf16.mxu1 %v6472_v41  ;;  %v7027_v40 = vmov 1966171168  }
 0x11b   :  { %v618_v41 = vunpack.c.l.s4 %v7027_v40  ;;  %v5727_v40 = vcombine.low %v7241_v56, %v7241_v56  ;;  %v6560_v56 = vld [vmem:[#allocation5 + $0x92c] ss:$16 sps:$4 sm:$0xff]  }
 0x11d   :  { %2558 = vmatpush1.bf16.msra.mxu0 %v6467_v29  ;;  %2599 = vmatpush1.bf16.msra.mxu1 %v6470_v44  ;;  %v619_v22 = vunpack.c.0.s8 %v618_v41  ;;  %v621_v29 = vshrl.u32 %v620_v42, 7  ;;  %v6531_v44 = vld [vmem:[#allocation5 + $0x8a0] ss:$16 sps:$4 sm:$0xff]  }
 0x11e   :  { %2559 = vmatprep.subr.bf16.mxu0 %v6475_v28  ;;  %2600 = vmatprep.subr.bf16.mxu1 %v6478_v53  ;;  %v7323_v41 = vld [vmem:[#allocation2 + $0x10] sm:$0x44] }
 0x11f   :  { %v7291_v14 = vsub.s32 %v619_v22, %v621_v29  ;;  %v6558_v22 = vld [vmem:[#allocation5 + $0x928] ss:$16 sps:$4 sm:$0xff]   ;;  %v6563_v29 = vld [vmem:[#allocation5 + $0x944] ss:$16 sps:$4 sm:$0xff]  }
 0x121   :  { %2560 = vmatpush1.bf16.msra.mxu0 %v6473_v32  ;;  %2601 = vmatpush1.bf16.msra.mxu1 %v6476_v59 }
 0x122   :  { %2561 = vmatprep.subr.bf16.mxu0 %v6481_v61  ;;  %2602 = vmatprep.subr.bf16.mxu1 %v6484_v63  ;;  %v6537_v61 = vld [vmem:[#allocation5 + $0x8c0] ss:$16 sps:$4 sm:$0xff]  }
 0x125   :  { %2562 = vmatpush1.bf16.msra.mxu0 %v6479_v1  ;;  %2603 = vmatpush1.bf16.msra.mxu1 %v6482_v33 }
 0x126   :  { %3198 = vmatprep.subr.bf16.mxu0 %v6503_v4  ;;  %3239 = vmatprep.subr.bf16.mxu1 %v6506_v6  ;;  %v6543_v4 = vld [vmem:[#allocation5 + $0x8e0] ss:$16 sps:$4 sm:$0xff]  }
 0x128   :  { %2564 = vmatmul.mubr.bf16.vlgmr.msra.gmra.mrb[12].mxu0 %v2207_v7  ;;  %2605 = vmatmul.mubr.bf16.vlgmr.msra.gmra.mrb[12].mxu1 %v2207_v7 }
 0x129   :  { %3199 = vmatpush1.bf16.msra.mxu0 %v6501_v8  ;;  %3240 = vmatpush1.bf16.msra.mxu1 %v6504_v9 }
 0x12a   :  { %3200 = vmatprep.subr.bf16.mxu0 %v6509_v10  ;;  %3241 = vmatprep.subr.bf16.mxu1 %v6512_v12  ;;  %v6554_v10 = vld [vmem:[#allocation5 + $0x90c] ss:$16 sps:$4 sm:$0xff]  }
 0x12b   :  { %3230 = vmatprep.mubr.bf16.mxu0 %v2875_v18  ;;  %3271 = vmatprep.mubr.bf16.mxu1 %v2875_v18  ;;  %v5723_v18 = vcombine.low %v7235_v54, %v7235_v54 }
 0x12d   :  { %3201 = vmatpush1.bf16.msra.mxu0 %v6507_v19  ;;  %3242 = vmatpush1.bf16.msra.mxu1 %v6510_v23  ;;  %v5725_v19 = vcombine.low %v7237_v55, %v7237_v55  ;;  %v7305_v23 = vld [vmem:[#allocation2] sm:$0x44]  ;;  %v6552_v55 = vld [vmem:[#allocation5 + $0x908] ss:$16 sps:$4 sm:$0xff]  }
 0x12e   :  { %3202 = vmatprep.subr.bf16.mxu0 %v6515_v24  ;;  %3243 = vmatprep.subr.bf16.mxu1 %v6518_v25  ;;  %v5804_v42 = vcombine.high %v7305_v23, %v7305_v23 }
 0x131   :  { %3203 = vmatpush1.bf16.msra.mxu0 %v6513_v31  ;;  %3244 = vmatpush1.bf16.msra.mxu1 %v6516_v35 }
 0x132   :  { %3204 = vmatprep.subr.bf16.mxu0 %v6521_v36  ;;  %3245 = vmatprep.subr.bf16.mxu1 %v6524_v21  ;;  %v7311_v36 = vld [vmem:[#allocation2 + $0x8] sm:$0x44]  ;;  %v6549_v21 = vld [vmem:[#allocation5 + $0x900] ss:$16 sps:$4 sm:$0xff]  }
 0x135   :  { %3205 = vmatpush1.bf16.msra.mxu0 %v6519_v37  ;;  %3246 = vmatpush1.bf16.msra.mxu1 %v6522_v38 }
 0x136   :  { %3206 = vmatprep.subr.bf16.mxu0 %v6527_v27  ;;  %3247 = vmatprep.subr.bf16.mxu1 %v6530_v39  ;;  %v6557_v39 = vld [vmem:[#allocation5 + $0x924] ss:$16 sps:$4 sm:$0xff]  }
 0x139   :  { %3207 = vmatpush1.bf16.msra.mxu0 %v6525_v43  ;;  %3248 = vmatpush1.bf16.msra.mxu1 %v6528_v46  ;;  %v5806_v43 = vcombine.high %v7311_v36, %v7311_v36  ;;  %v2830_v46 = vunpack.c.l.b16 %v5723_v18  ;;  %v6578_v18 = vld [vmem:[#allocation5 + $0x98c] ss:$16 sps:$4 sm:$0xff]  }
 0x13a   :  { %3208 = vmatprep.subr.bf16.mxu0 %v6533_v48  ;;  %3249 = vmatprep.subr.bf16.mxu1 %v6536_v49  ;;  %v2832_v48 = vunpack.c.l.b16 %v5725_v19  ;;  %v6555_v49 = vld [vmem:[#allocation5 + $0x920] ss:$16 sps:$4 sm:$0xff]  }
 0x13b   :  { %v561_v13 = vpop.f32.mrb[0].mxu0  ;;  %v602_v28 = vpop.f32.mrb[0].mxu1 }
 0x13c   :  { %v563_v53 = vpop.f32.mrb[1].mxu0  ;;  %v604_v30 = vpop.f32.mrb[1].mxu1 }
 0x13d   :  { %v613_v15 = vcombine.low %v561_v13, %v563_v53  ;;  %v614_v45 = vcombine.high %v561_v13, %v563_v53  ;;  %v615_v58 = vcombine.low %v602_v28, %v604_v30  ;;  %v616_v32 = vcombine.high %v602_v28, %v604_v30  ;;  %v565_v59 = vpop.f32.mrb[2].mxu0  ;;  %v606_v60 = vpop.f32.mrb[2].mxu1  ;;  %3209 = vmatpush1.bf16.msra.mxu0 %v6531_v44  ;;  %v6566_v53 = vld [vmem:[#allocation5 + $0x94c] ss:$16 sps:$4 sm:$0xff]  }
 0x13e   :  { %3250 = vmatpush1.bf16.msra.mxu1 %v6534_v50  ;;  %v566_v62 = vpop.f32.mrb[3].mxu0  ;;  %v607_v63 = vpop.f32.mrb[3].mxu1  ;;  %3210 = vmatprep.subr.bf16.mxu0 %v6539_v51  ;;  %v5729_v44 = vcombine.low %v7243_v57, %v7243_v57  ;;  %v7339_v50 = vld [vmem:[#allocation2 + $0x18] sm:$0x44]  ;;  %v5808_v51 = vcombine.high %v7323_v41, %v7323_v41  ;;  %v2834_v13 = vunpack.c.l.b16 %v5727_v40  ;;  %v3498_v28 = vunpack.c.l.b16 %v5804_v42  ;;  %v6569_v59 = vld [vmem:[#allocation5 + $0x964] ss:$16 sps:$4 sm:$0xff]  }
 0x13f   :  { %v623_v47 = vrot.slane %v613_v15, %v7291_v14  ;;  %v630_v1 = vrot.slane %v614_v45, %v7291_v14  ;;  %v637_v33 = vrot.slane %v615_v58, %v7291_v14  ;;  %v644_v2 = vrot.slane %v616_v32, %v7291_v14  ;;  %3251 = vmatprep.subr.bf16.mxu1 %v6542_v52  ;;  %v6561_v45 = vld [vmem:[#allocation5 + $0x940] ss:$16 sps:$4 sm:$0xff]   ;;  %v6564_v58 = vld [vmem:[#allocation5 + $0x948] ss:$16 sps:$4 sm:$0xff]   ;;  %v6584_v42 = vld [vmem:[#allocation5 + $0x9ac] ss:$16 sps:$4 sm:$0xff]  }
 0x140   :  { %v3500_v52 = vunpack.c.l.b16 %v5806_v43  ;;  %v2846_v30 = vrot.slane %v2830_v46, 4  ;;  %v2847_v15 = vrot.slane %v2832_v48, 3  ;;  %v7343_v32 = vld [vmem:[#allocation2 + $0x20] sm:$0x44]  ;;  %v5810_v57 = vcombine.high %v7339_v50, %v7339_v50 }
 0x141   :  { %v645_v6 = vcombine.low %v623_v47, %v637_v33  ;;  %v646_v7 = vcombine.high %v623_v47, %v637_v33  ;;  %v647_v8 = vcombine.low %v630_v1, %v644_v2  ;;  %v648_v9 = vcombine.high %v630_v1, %v644_v2  ;;  %3211 = vmatpush1.bf16.msra.mxu0 %v6537_v61  ;;  %v6567_v2 = vld [vmem:[#allocation5 + $0x960] ss:$16 sps:$4 sm:$0xff]  }
 0x142   :  { %3252 = vmatpush1.bf16.msra.mxu1 %v6540_v17  ;;  %3212 = vmatprep.subr.bf16.mxu0 %v6545_v0  ;;  %v2836_v60 = vunpack.c.l.b16 %v5729_v44  ;;  %v3502_v61 = vunpack.c.l.b16 %v5808_v51  ;;  %v2849_v17 = vrot.slane %v2834_v13, 2  ;;  %v3527_v62 = vrot.slane %v3498_v28, 5  ;;  %v6572_v0 = vld [vmem:[#allocation5 + $0x96c] ss:$16 sps:$4 sm:$0xff]   ;;  %v6587_v51 = vld [vmem:[#allocation5 + $0x9c4] ss:$16 sps:$4 sm:$0xff]  }
 0x143   :  { %v655_v24 = vrot.slane %v645_v6, %v7291_v14  ;;  %v662_v25 = vrot.slane %v647_v8, %v7291_v14  ;;  %v669_v31 = vrot.slane %v646_v7, %v7291_v14  ;;  %v676_v35 = vrot.slane %v648_v9, %v7291_v14  ;;  %3253 = vmatprep.subr.bf16.mxu1 %v6548_v3  ;;  %v6570_v3 = vld [vmem:[#allocation5 + $0x968] ss:$16 sps:$4 sm:$0xff]   ;;  %v6575_v6 = vld [vmem:[#allocation5 + $0x984] ss:$16 sps:$4 sm:$0xff]  }
 0x144   :  { %v3528_v63 = vrot.slane %v3500_v52, 4  ;;  %v5733_v47 = vcombine.low %v7258_v16, %v7258_v16  ;;  %v2848_v1 = vsel %vm169_vm0, %v2847_v15, %v2846_v30  ;;  %v5812_v33 = vcombine.high %v7343_v32, %v7343_v32  ;;  %v6590_v52 = vld [vmem:[#allocation5 + $0x9cc] ss:$16 sps:$4 sm:$0xff]   ;;  %v6585_v15 = vld [vmem:[#allocation5 + $0x9c0] ss:$16 sps:$4 sm:$0xff]  }
 0x145   :  { %v677_v37 = vcombine.high %v655_v24, %v655_v24  ;;  %v678_v38 = vcombine.high %v662_v25, %v662_v25  ;;  %v679_v54 = vcombine.high %v669_v31, %v669_v31  ;;  %v680_v27 = vcombine.high %v676_v35, %v676_v35  ;;  %693 = vst.msk [vmem:[#allocation7] ss:$8 sm:$0xf] %vm7297_vm7, %v655_v24 }
 0x146   :  { %696 = vst.msk [vmem:[#allocation7 + $0x20] ss:$8 sm:$0xf] %vm7297_vm7, %v669_v31  ;;  %705 = vst.msk [vmem:[#allocation7 + $0x80] ss:$8 sm:$0xf] %vm7297_vm7, %v662_v25  ;;  %3213 = vmatpush1.bf16.msra.mxu0 %v6543_v4  ;;  %3254 = vmatpush1.bf16.msra.mxu1 %v6546_v5  ;;  %v5731_v4 = vcombine.low %v7260_v34, %v7260_v34  ;;  %v3504_v5 = vunpack.c.l.b16 %v5810_v57  ;;  %v5735_v16 = vcombine.low %v7265_v11, %v7265_v11 }
 0x147   :  { %708 = vst.msk [vmem:[#allocation7 + $0xa0] ss:$8 sm:$0xf] %vm7297_vm7, %v676_v35  ;;  %3214 = vmatprep.subr.bf16.mxu0 %v6551_v20  ;;  %699 = vst.msk [vmem:[#allocation7 + $0x40] ss:$8 sm:$0xf] %vm7297_vm7, %v677_v37  ;;  %3255 = vmatprep.subr.bf16.mxu1 %v6554_v10  ;;  %v2850_v9 = vsel %vm172_vm1, %v2849_v17, %v2848_v1  ;;  %v3529_v10 = vsel %vm169_vm0, %v3528_v63, %v3527_v62  ;;  %v2840_v19 = vunpack.c.l.b16 %v5733_v47 }
 0x148   :  { %702 = vst.msk [vmem:[#allocation7 + $0x60] ss:$8 sm:$0xf] %vm7297_vm7, %v679_v54  ;;  %711 = vst.msk [vmem:[#allocation7 + $0xc0] ss:$8 sm:$0xf] %vm7297_vm7, %v678_v38  ;;  %v3506_v24 = vunpack.c.l.b16 %v5812_v33  ;;  %v2838_v35 = vunpack.c.l.b16 %v5731_v4  ;;  %v5737_v11 = vcombine.low %v7274_v26, %v7274_v26 }
 0x149   :  { %714 = vst.msk [vmem:[#allocation7 + $0xe0] ss:$8 sm:$0xf] %vm7297_vm7, %v680_v27  ;;  %v2851_v7 = vrot.slane %v2836_v60, 1  ;;  %v3530_v8 = vrot.slane %v3502_v61, 3  ;;  %v2854_v43 = vrot.slane %v2840_v19, 7 }
 0x14a   :  { %3215 = vmatpush1.bf16.msra.mxu0 %v6549_v21  ;;  %3256 = vmatpush1.bf16.msra.mxu1 %v6552_v55  ;;  %v7357_v20 = vld [vmem:[#allocation2 + $0x30] sm:$0x44]  ;;  %v7360_v34 = vld [vmem:[#allocation2 + $0x28] sm:$0x44]  ;;  %v3532_v21 = vrot.slane %v3504_v5, 2  ;;  %v3534_v26 = vrot.slane %v3506_v24, 1 }
 0x14b   :  { %3216 = vmatprep.subr.bf16.mxu0 %v6557_v39  ;;  %3257 = vmatprep.subr.bf16.mxu1 %v6560_v56  ;;  %v6573_v25 = vld [vmem:[#allocation5 + $0x980] ss:$16 sps:$4 sm:$0xff]   ;;  %v6576_v31 = vld [vmem:[#allocation5 + $0x988] ss:$16 sps:$4 sm:$0xff]   ;;  %v2852_v37 = vsel %vm175_vm2, %v2851_v7, %v2850_v9  ;;  %v5816_v54 = vcombine.high %v7357_v20, %v7357_v20  ;;  %v3531_v27 = vsel %vm172_vm1, %v3530_v8, %v3529_v10  ;;  %v6581_v55 = vld [vmem:[#allocation5 + $0x9a4] ss:$16 sps:$4 sm:$0xff]   ;;  %v2842_v39 = vunpack.c.l.b16 %v5735_v16 }
 0x14c   :  { %v7365_v38 = vld [vmem:[#allocation2 + $0x38] sm:$0x44]  ;;  %v5814_v40 = vcombine.high %v7360_v34, %v7360_v34  ;;  %v6579_v56 = vld [vmem:[#allocation5 + $0x9a0] ss:$16 sps:$4 sm:$0xff]   ;;  %v2853_v46 = vsel %vm178_vm3, %v2838_v35, %v2852_v37  ;;  %v6593_v60 = vld [vmem:[#allocation5 + $0x9e4] ss:$16 sps:$4 sm:$0xff]  }
 0x14d   :  { %v5818_v48 = vcombine.high %v7365_v38, %v7365_v38  ;;  %v3510_v44 = vunpack.c.l.b16 %v5816_v54  ;;  %v2856_v13 = vrot.slane %v2842_v39, 6  ;;  %v6596_v62 = vld [vmem:[#allocation5 + $0x9ec] ss:$16 sps:$4 sm:$0xff]   ;;  %v6591_v63 = vld [vmem:[#allocation5 + $0x9e0] ss:$16 sps:$4 sm:$0xff]  }
 0x14e   :  { %3217 = vmatpush1.bf16.msra.mxu0 %v6555_v49  ;;  %3258 = vmatpush1.bf16.msra.mxu1 %v6558_v22  ;;  %v3533_v49 = vsel %vm175_vm2, %v3532_v21, %v3531_v27  ;;  %v6582_v22 = vld [vmem:[#allocation5 + $0x9a8] ss:$16 sps:$4 sm:$0xff]   ;;  %v3508_v28 = vunpack.c.l.b16 %v5814_v40  ;;  %v6613_v5 = vld [vmem:[#allocation5 + $0xa00] ss:$16 sps:$4 sm:$0xff]   ;;  %v6621_v8 = vld [vmem:[#allocation5 + $0xa24] ss:$16 sps:$4 sm:$0xff]  }
 0x14f   :  { %3218 = vmatprep.subr.bf16.mxu0 %v6563_v29  ;;  %3259 = vmatprep.subr.bf16.mxu1 %v6566_v53  ;;  %v2844_v29 = vunpack.c.l.b16 %v5737_v11  ;;  %v2855_v53 = vsel %vm181_vm4, %v2854_v43, %v2853_v46  ;;  %v3535_v30 = vsel %vm178_vm3, %v3534_v26, %v3533_v49  ;;  %v6594_v47 = vld [vmem:[#allocation5 + $0x9e8] ss:$16 sps:$4 sm:$0xff]   ;;  %v6624_v16 = vld [vmem:[#allocation5 + $0xa2c] ss:$16 sps:$4 sm:$0xff]   ;;  %v6619_v10 = vld [vmem:[#allocation5 + $0xa20] ss:$16 sps:$4 sm:$0xff]  }
 0x150   :  { %v2857_v61 = vsel %vm184_vm5, %v2856_v13, %v2855_v53  ;;  %v3536_v17 = vsel %vm181_vm4, %v3508_v28, %v3535_v30  ;;  %v6616_v7 = vld [vmem:[#allocation5 + $0xa08] ss:$16 sps:$4 sm:$0xff]   ;;  %v6627_v19 = vld [vmem:[#allocation5 + $0xa44] ss:$16 sps:$4 sm:$0xff]   ;;  %v6630_v24 = vld [vmem:[#allocation5 + $0xa4c] ss:$16 sps:$4 sm:$0xff]  }
 0x151   :  { %v2858_v57 = vrot.slane %v2844_v29, 5  ;;  %v6633_v35 = vld [vmem:[#allocation5 + $0xa64] ss:$16 sps:$4 sm:$0xff]   ;;  %v6636_v21 = vld [vmem:[#allocation5 + $0xa6c] ss:$16 sps:$4 sm:$0xff]  }
 0x152   :  { %3219 = vmatpush1.bf16.msra.mxu0 %v6561_v45  ;;  %3260 = vmatpush1.bf16.msra.mxu1 %v6564_v58  ;;  %v3512_v45 = vunpack.c.l.b16 %v5818_v48  ;;  %v6588_v58 = vld [vmem:[#allocation5 + $0x9c8] ss:$16 sps:$4 sm:$0xff]   ;;  %v6631_v11 = vld [vmem:[#allocation5 + $0xa60] ss:$16 sps:$4 sm:$0xff]   ;;  %v6639_v54 = vld [vmem:[#allocation5 + $0xa84] ss:$16 sps:$4 sm:$0xff]  }
 0x153   :  { %3220 = vmatprep.subr.bf16.mxu0 %v6569_v59  ;;  %3261 = vmatprep.subr.bf16.mxu1 %v6572_v0  ;;  %v3537_v59 = vrot.slane %v3510_v44, 7  ;;  %v2859_v1 = vsel %vm187_vm6, %v2858_v57, %v2857_v61  ;;  %v6634_v37 = vld [vmem:[#allocation5 + $0xa68] ss:$16 sps:$4 sm:$0xff]   ;;  %v6642_v27 = vld [vmem:[#allocation5 + $0xa8c] ss:$16 sps:$4 sm:$0xff]  }
 0x154   :  { %v3539_v0 = vrot.slane %v3512_v45, 6  ;;  %v2874_v4 = vpack.c.b16 %v2859_v1, %v2859_v1  ;;  %v6640_v39 = vld [vmem:[#allocation5 + $0xa88] ss:$16 sps:$4 sm:$0xff]   ;;  %v6645_v40 = vld [vmem:[#allocation5 + $0xaa4] ss:$16 sps:$4 sm:$0xff]  }
 0x155   :  { %v3538_v33 = vsel %vm184_vm5, %v3537_v59, %v3536_v17  ;;  %v6643_v43 = vld [vmem:[#allocation5 + $0xaa0] ss:$16 sps:$4 sm:$0xff]   ;;  %v6646_v26 = vld [vmem:[#allocation5 + $0xaa8] ss:$16 sps:$4 sm:$0xff]   ;;  %v6654_v49 = vld [vmem:[#allocation5 + $0xacc] ss:$16 sps:$4 sm:$0xff]  }
 0x156   :  { %3221 = vmatpush1.bf16.msra.mxu0 %v6567_v2  ;;  %3262 = vmatpush1.bf16.msra.mxu1 %v6570_v3  ;;  %v6615_v2 = vld [vmem:[#allocation5 + $0xa04] ss:$16 sps:$4 sm:$0xff]   ;;  %v6618_v3 = vld [vmem:[#allocation5 + $0xa0c] ss:$16 sps:$4 sm:$0xff]   ;;  %v6649_v30 = vld [vmem:[#allocation5 + $0xac0] ss:$16 sps:$4 sm:$0xff]  }
 0x157   :  { %3222 = vmatprep.subr.bf16.mxu0 %v6575_v6  ;;  %3263 = vmatprep.subr.bf16.mxu1 %v6578_v18  ;;  %v3540_v6 = vsel %vm187_vm6, %v3539_v0, %v3538_v33  ;;  %v6622_v18 = vld [vmem:[#allocation5 + $0xa28] ss:$16 sps:$4 sm:$0xff]   ;;  %v6657_v57 = vld [vmem:[#allocation5 + $0xae4] ss:$16 sps:$4 sm:$0xff]  }
 0x158   :  { %v3542_v9 = vpack.c.b16 %v3540_v6, %v3540_v6  ;;  %v6658_v0 = vld [vmem:[#allocation5 + $0xae8] ss:$16 sps:$4 sm:$0xff]   ;;  %v5805_v6 = vcombine.low %v7311_v36, %v7311_v36 }
 0x15a   :  { %3223 = vmatpush1.bf16.msra.mxu0 %v6573_v25  ;;  %3264 = vmatpush1.bf16.msra.mxu1 %v6576_v31  ;;  %v6625_v25 = vld [vmem:[#allocation5 + $0xa40] ss:$16 sps:$4 sm:$0xff]   ;;  %v6628_v31 = vld [vmem:[#allocation5 + $0xa48] ss:$16 sps:$4 sm:$0xff]  }
 0x15b   :  { %3224 = vmatprep.subr.bf16.mxu0 %v6581_v55  ;;  %3265 = vmatprep.subr.bf16.mxu1 %v6584_v42  ;;  %v6637_v55 = vld [vmem:[#allocation5 + $0xa80] ss:$16 sps:$4 sm:$0xff]   ;;  %v6648_v42 = vld [vmem:[#allocation5 + $0xaac] ss:$16 sps:$4 sm:$0xff]  }
 0x15e   :  { %3225 = vmatpush1.bf16.msra.mxu0 %v6579_v56  ;;  %3266 = vmatpush1.bf16.msra.mxu1 %v6582_v22  ;;  %v6651_v56 = vld [vmem:[#allocation5 + $0xac4] ss:$16 sps:$4 sm:$0xff]  }
 0x15f   :  { %3226 = vmatprep.subr.bf16.mxu0 %v6587_v51  ;;  %3267 = vmatprep.subr.bf16.mxu1 %v6590_v52 }
 0x162   :  { %3227 = vmatpush1.bf16.msra.mxu0 %v6585_v15  ;;  %3268 = vmatpush1.bf16.msra.mxu1 %v6588_v58  ;;  %v6652_v15 = vld [vmem:[#allocation5 + $0xac8] ss:$16 sps:$4 sm:$0xff]  }
 0x163   :  { %3228 = vmatprep.subr.bf16.mxu0 %v6593_v60  ;;  %3269 = vmatprep.subr.bf16.mxu1 %v6596_v62  ;;  %v6655_v62 = vld [vmem:[#allocation5 + $0xae0] ss:$16 sps:$4 sm:$0xff]  }
 0x166   :  { %3229 = vmatpush1.bf16.msra.mxu0 %v6591_v63  ;;  %3270 = vmatpush1.bf16.msra.mxu1 %v6594_v47  ;;  %v6660_v63 = vld [vmem:[#allocation5 + $0xaec] ss:$16 sps:$4 sm:$0xff]  }
 0x167   :  { %3865 = vmatprep.subr.bf16.mxu0 %v6615_v2  ;;  %3906 = vmatprep.subr.bf16.mxu1 %v6618_v3  ;;  %v6663_v3 = vld [vmem:[#allocation5 + $0xb04] ss:$16 sps:$4 sm:$0xff]  }
 0x169   :  { %3231 = vmatmul.mubr.bf16.vlgmr.msra.gmra.mrb[16].mxu0 %v2874_v4  ;;  %3272 = vmatmul.mubr.bf16.vlgmr.msra.gmra.mrb[16].mxu1 %v2874_v4  ;;  %v6666_v4 = vld [vmem:[#allocation5 + $0xb0c] ss:$16 sps:$4 sm:$0xff]  }
 0x16a   :  { %3866 = vmatpush1.bf16.msra.mxu0 %v6613_v5  ;;  %3907 = vmatpush1.bf16.msra.mxu1 %v6616_v7  ;;  %v5803_v5 = vcombine.low %v7305_v23, %v7305_v23  ;;  %v7399_v23 = vld [vmem:[#allocation2 + $0x10] sm:$0x88] }
 0x16b   :  { %3867 = vmatprep.subr.bf16.mxu0 %v6621_v8  ;;  %3908 = vmatprep.subr.bf16.mxu1 %v6624_v16 }
 0x16c   :  { %3897 = vmatprep.mubr.bf16.mxu0 %v3542_v9  ;;  %3938 = vmatprep.mubr.bf16.mxu1 %v3542_v9 }
 0x16e   :  { %3868 = vmatpush1.bf16.msra.mxu0 %v6619_v10  ;;  %3909 = vmatpush1.bf16.msra.mxu1 %v6622_v18  ;;  %v6661_v10 = vld [vmem:[#allocation5 + $0xb00] ss:$16 sps:$4 sm:$0xff]  }
 0x16f   :  { %3869 = vmatprep.subr.bf16.mxu0 %v6627_v19  ;;  %3910 = vmatprep.subr.bf16.mxu1 %v6630_v24  ;;  %v7395_v18 = vld [vmem:[#allocation2] sm:$0x88]  ;;  %v7397_v19 = vld [vmem:[#allocation2 + $0x8] sm:$0x88] }
 0x170   :  { %v6664_v24 = vld [vmem:[#allocation5 + $0xb08] ss:$16 sps:$4 sm:$0xff]  }
 0x172   :  { %3870 = vmatpush1.bf16.msra.mxu0 %v6625_v25  ;;  %3911 = vmatpush1.bf16.msra.mxu1 %v6628_v31  ;;  %v6669_v25 = vld [vmem:[#allocation5 + $0xb24] ss:$16 sps:$4 sm:$0xff]  }
 0x173   :  { %3871 = vmatprep.subr.bf16.mxu0 %v6633_v35  ;;  %3912 = vmatprep.subr.bf16.mxu1 %v6636_v21 }
 0x176   :  { %3872 = vmatpush1.bf16.msra.mxu0 %v6631_v11  ;;  %3913 = vmatpush1.bf16.msra.mxu1 %v6634_v37  ;;  %v5807_v11 = vcombine.low %v7323_v41, %v7323_v41  ;;  %v5884_v37 = vcombine.high %v7395_v18, %v7395_v18  ;;  %v6667_v41 = vld [vmem:[#allocation5 + $0xb20] ss:$16 sps:$4 sm:$0xff]  }
 0x177   :  { %3873 = vmatprep.subr.bf16.mxu0 %v6639_v54  ;;  %3914 = vmatprep.subr.bf16.mxu1 %v6642_v27  ;;  %v5886_v54 = vcombine.high %v7397_v19, %v7397_v19  ;;  %v6672_v27 = vld [vmem:[#allocation5 + $0xb2c] ss:$16 sps:$4 sm:$0xff]  }
 0x17a   :  { %3874 = vmatpush1.bf16.msra.mxu0 %v6637_v55  ;;  %3915 = vmatpush1.bf16.msra.mxu1 %v6640_v39  ;;  %v3497_v55 = vunpack.c.l.b16 %v5803_v5  ;;  %v3499_v39 = vunpack.c.l.b16 %v5805_v6  ;;  %v6690_v6 = vld [vmem:[#allocation5 + $0xb8c] ss:$16 sps:$4 sm:$0xff]  }
 0x17b   :  { %3875 = vmatprep.subr.bf16.mxu0 %v6645_v40  ;;  %v1231_v46 = vpop.f32.mrb[4].mxu0  ;;  %v1272_v48 = vpop.f32.mrb[4].mxu1  ;;  %3916 = vmatprep.subr.bf16.mxu1 %v6648_v42  ;;  %v7423_v40 = vld [vmem:[#allocation2 + $0x18] sm:$0x88]  ;;  %v5809_v42 = vcombine.low %v7339_v50, %v7339_v50  ;;  %v5811_v50 = vcombine.low %v7343_v32, %v7343_v32 }
 0x17c   :  { %v1233_v22 = vpop.f32.mrb[5].mxu0  ;;  %v1274_v29 = vpop.f32.mrb[5].mxu1 }
 0x17d   :  { %v1283_v44 = vcombine.low %v1231_v46, %v1233_v22  ;;  %v1284_v51 = vcombine.high %v1231_v46, %v1233_v22  ;;  %v1285_v13 = vcombine.low %v1272_v48, %v1274_v29  ;;  %v1286_v28 = vcombine.high %v1272_v48, %v1274_v29  ;;  %v1235_v52 = vpop.f32.mrb[6].mxu0  ;;  %v1276_v53 = vpop.f32.mrb[6].mxu1  ;;  %v6678_v46 = vld [vmem:[#allocation5 + $0xb4c] ss:$16 sps:$4 sm:$0xff]   ;;  %v6673_v29 = vld [vmem:[#allocation5 + $0xb40] ss:$16 sps:$4 sm:$0xff]  }
 0x17e   :  { %3876 = vmatpush1.bf16.msra.mxu0 %v6643_v43  ;;  %3917 = vmatpush1.bf16.msra.mxu1 %v6646_v26  ;;  %v1236_v45 = vpop.f32.mrb[7].mxu0  ;;  %v1277_v58 = vpop.f32.mrb[7].mxu1  ;;  %v5888_v43 = vcombine.high %v7399_v23, %v7399_v23  ;;  %v6670_v26 = vld [vmem:[#allocation5 + $0xb28] ss:$16 sps:$4 sm:$0xff]   ;;  %v3501_v48 = vunpack.c.l.b16 %v5807_v11  ;;  %v4167_v22 = vunpack.c.l.b16 %v5886_v54  ;;  %v6681_v52 = vld [vmem:[#allocation5 + $0xb64] ss:$16 sps:$4 sm:$0xff]   ;;  %v5890_v53 = vcombine.high %v7423_v40, %v7423_v40 }
 0x17f   :  { %3877 = vmatprep.subr.bf16.mxu0 %v6651_v56  ;;  %v1293_v59 = vrot.slane %v1283_v44, %v7291_v14  ;;  %v1300_v60 = vrot.slane %v1284_v51, %v7291_v14  ;;  %v1307_v61 = vrot.slane %v1285_v13, %v7291_v14  ;;  %v1314_v17 = vrot.slane %v1286_v28, %v7291_v14  ;;  %v6675_v56 = vld [vmem:[#allocation5 + $0xb44] ss:$16 sps:$4 sm:$0xff]   ;;  %v6676_v28 = vld [vmem:[#allocation5 + $0xb48] ss:$16 sps:$4 sm:$0xff]   ;;  %v6684_v45 = vld [vmem:[#allocation5 + $0xb6c] ss:$16 sps:$4 sm:$0xff]  }
 0x180   :  { %3918 = vmatprep.subr.bf16.mxu1 %v6654_v49  ;;  %v4165_v49 = vunpack.c.l.b16 %v5884_v37  ;;  %v3513_v44 = vrot.slane %v3497_v55, 5  ;;  %v3514_v51 = vrot.slane %v3499_v39, 4  ;;  %v7429_v13 = vld [vmem:[#allocation2 + $0x20] sm:$0x88]  ;;  %v3516_v58 = vrot.slane %v3501_v48, 3 }
 0x181   :  { %v1315_v47 = vcombine.low %v1293_v59, %v1307_v61  ;;  %v1316_v1 = vcombine.high %v1293_v59, %v1307_v61  ;;  %v1317_v33 = vcombine.low %v1300_v60, %v1314_v17  ;;  %v1318_v2 = vcombine.high %v1300_v60, %v1314_v17  ;;  %v6679_v60 = vld [vmem:[#allocation5 + $0xb60] ss:$16 sps:$4 sm:$0xff]   ;;  %v7436_v17 = vld [vmem:[#allocation2 + $0x28] sm:$0x88] }
 0x182   :  { %3878 = vmatpush1.bf16.msra.mxu0 %v6649_v30  ;;  %3919 = vmatpush1.bf16.msra.mxu1 %v6652_v15  ;;  %v3503_v30 = vunpack.c.l.b16 %v5809_v42  ;;  %v4169_v15 = vunpack.c.l.b16 %v5888_v43  ;;  %v4195_v59 = vrot.slane %v4167_v22, 5  ;;  %v3515_v61 = vsel %vm169_vm0, %v3514_v51, %v3513_v44  ;;  %v6696_v37 = vld [vmem:[#allocation5 + $0xbac] ss:$16 sps:$4 sm:$0xff]   ;;  %v6691_v39 = vld [vmem:[#allocation5 + $0xba0] ss:$16 sps:$4 sm:$0xff]  }
 0x183   :  { %3879 = vmatprep.subr.bf16.mxu0 %v6657_v57  ;;  %v1325_v7 = vrot.slane %v1315_v47, %v7291_v14  ;;  %v1332_v8 = vrot.slane %v1317_v33, %v7291_v14  ;;  %v1339_v16 = vrot.slane %v1316_v1, %v7291_v14  ;;  %v1346_v9 = vrot.slane %v1318_v2, %v7291_v14  ;;  %v6682_v33 = vld [vmem:[#allocation5 + $0xb68] ss:$16 sps:$4 sm:$0xff]   ;;  %v6687_v2 = vld [vmem:[#allocation5 + $0xb84] ss:$16 sps:$4 sm:$0xff]   ;;  %v6697_v51 = vld [vmem:[#allocation5 + $0xbc0] ss:$16 sps:$4 sm:$0xff]  }
 0x184   :  { %3920 = vmatprep.subr.bf16.mxu1 %v6660_v63  ;;  %v4194_v57 = vrot.slane %v4165_v49, 6  ;;  %v5892_v32 = vcombine.high %v7429_v13, %v7429_v13  ;;  %v4171_v63 = vunpack.c.l.b16 %v5890_v53  ;;  %v3518_v47 = vrot.slane %v3503_v30, 2  ;;  %v6702_v49 = vld [vmem:[#allocation5 + $0xbcc] ss:$16 sps:$4 sm:$0xff]   ;;  %v6705_v53 = vld [vmem:[#allocation5 + $0xbe4] ss:$16 sps:$4 sm:$0xff]  }
 0x185   :  { %v1347_v31 = vcombine.high %v1325_v7, %v1325_v7  ;;  %v1348_v36 = vcombine.high %v1332_v8, %v1332_v8  ;;  %v1349_v35 = vcombine.high %v1339_v16, %v1339_v16  ;;  %v1350_v21 = vcombine.high %v1346_v9, %v1346_v9  ;;  %1360 = vst.msk [vmem:[#allocation7 + $0x1] ss:$8 sm:$0xf] %vm7297_vm7, %v1325_v7 }
 0x186   :  { %1363 = vst.msk [vmem:[#allocation7 + $0x21] ss:$8 sm:$0xf] %vm7297_vm7, %v1339_v16  ;;  %1372 = vst.msk [vmem:[#allocation7 + $0x81] ss:$8 sm:$0xf] %vm7297_vm7, %v1332_v8  ;;  %3880 = vmatpush1.bf16.msra.mxu0 %v6655_v62  ;;  %3921 = vmatpush1.bf16.msra.mxu1 %v6658_v0  ;;  %v3505_v62 = vunpack.c.l.b16 %v5811_v50  ;;  %v5815_v0 = vcombine.low %v7357_v20, %v7357_v20  ;;  %v4196_v5 = vsel %vm169_vm0, %v4195_v59, %v4194_v57 }
 0x187   :  { %1375 = vst.msk [vmem:[#allocation7 + $0xa1] ss:$8 sm:$0xf] %vm7297_vm7, %v1346_v9  ;;  %3881 = vmatprep.subr.bf16.mxu0 %v6663_v3  ;;  %1366 = vst.msk [vmem:[#allocation7 + $0x41] ss:$8 sm:$0xf] %vm7297_vm7, %v1347_v31  ;;  %3922 = vmatprep.subr.bf16.mxu1 %v6666_v4  ;;  %v3517_v3 = vsel %vm172_vm1, %v3516_v58, %v3515_v61  ;;  %v5894_v4 = vcombine.high %v7436_v17, %v7436_v17  ;;  %v4173_v8 = vunpack.c.l.b16 %v5892_v32 }
 0x188   :  { %1369 = vst.msk [vmem:[#allocation7 + $0x61] ss:$8 sm:$0xf] %vm7297_vm7, %v1349_v35  ;;  %1378 = vst.msk [vmem:[#allocation7 + $0xc1] ss:$8 sm:$0xf] %vm7297_vm7, %v1348_v36  ;;  %v5813_v7 = vcombine.low %v7360_v34, %v7360_v34 }
 0x189   :  { %1381 = vst.msk [vmem:[#allocation7 + $0xe1] ss:$8 sm:$0xf] %vm7297_vm7, %v1350_v21  ;;  %v4197_v1 = vrot.slane %v4169_v15, 4  ;;  %v3520_v20 = vrot.slane %v3505_v62, 1  ;;  %v4199_v16 = vrot.slane %v4171_v63, 3  ;;  %v3509_v21 = vunpack.c.l.b16 %v5815_v0 }
 0x18a   :  { %3882 = vmatpush1.bf16.msra.mxu0 %v6661_v10  ;;  %3923 = vmatpush1.bf16.msra.mxu1 %v6664_v24  ;;  %v6685_v9 = vld [vmem:[#allocation5 + $0xb80] ss:$16 sps:$4 sm:$0xff]   ;;  %v5817_v10 = vcombine.low %v7365_v38, %v7365_v38  ;;  %v3519_v24 = vsel %vm175_vm2, %v3518_v47, %v3517_v3  ;;  %v6688_v36 = vld [vmem:[#allocation5 + $0xb88] ss:$16 sps:$4 sm:$0xff]   ;;  %v6693_v35 = vld [vmem:[#allocation5 + $0xba4] ss:$16 sps:$4 sm:$0xff]   ;;  %v4175_v11 = vunpack.c.l.b16 %v5894_v4  ;;  %v3507_v54 = vunpack.c.l.b16 %v5813_v7 }
 0x18b   :  { %3883 = vmatprep.subr.bf16.mxu0 %v6669_v25  ;;  %3924 = vmatprep.subr.bf16.mxu1 %v6672_v27  ;;  %v7451_v25 = vld [vmem:[#allocation2 + $0x38] sm:$0x88]  ;;  %v4198_v31 = vsel %vm172_vm1, %v4197_v1, %v4196_v5  ;;  %v7454_v34 = vld [vmem:[#allocation2 + $0x30] sm:$0x88]  ;;  %v3521_v38 = vsel %vm178_vm3, %v3520_v20, %v3519_v24 }
 0x18c   :  { %v5898_v27 = vcombine.high %v7451_v25, %v7451_v25  ;;  %v4200_v55 = vsel %vm175_vm2, %v4199_v16, %v4198_v31  ;;  %v3511_v42 = vunpack.c.l.b16 %v5817_v10  ;;  %v5896_v43 = vcombine.high %v7454_v34, %v7454_v34  ;;  %v6700_v50 = vld [vmem:[#allocation5 + $0xbc8] ss:$16 sps:$4 sm:$0xff]   ;;  %v6703_v57 = vld [vmem:[#allocation5 + $0xbe0] ss:$16 sps:$4 sm:$0xff]   ;;  %v6727_v32 = vld [vmem:[#allocation5 + $0xc04] ss:$16 sps:$4 sm:$0xff]  }
 0x18d   :  { %v4203_v48 = vrot.slane %v4175_v11, 1  ;;  %v3522_v22 = vsel %vm181_vm4, %v3507_v54, %v3521_v38  ;;  %v6706_v61 = vld [vmem:[#allocation5 + $0xbe8] ss:$16 sps:$4 sm:$0xff]   ;;  %v6730_v62 = vld [vmem:[#allocation5 + $0xc0c] ss:$16 sps:$4 sm:$0xff]  }
 0x18e   :  { %3884 = vmatpush1.bf16.msra.mxu0 %v6667_v41  ;;  %3925 = vmatpush1.bf16.msra.mxu1 %v6670_v26  ;;  %v4201_v41 = vrot.slane %v4173_v8, 2  ;;  %v6694_v26 = vld [vmem:[#allocation5 + $0xba8] ss:$16 sps:$4 sm:$0xff]   ;;  %v4179_v44 = vunpack.c.l.b16 %v5898_v27  ;;  %v6725_v47 = vld [vmem:[#allocation5 + $0xc00] ss:$16 sps:$4 sm:$0xff]  }
 0x18f   :  { %3885 = vmatprep.subr.bf16.mxu0 %v6675_v56  ;;  %3926 = vmatprep.subr.bf16.mxu1 %v6678_v46  ;;  %v6699_v56 = vld [vmem:[#allocation5 + $0xbc4] ss:$16 sps:$4 sm:$0xff]   ;;  %v3523_v46 = vrot.slane %v3509_v21, 7  ;;  %v6728_v1 = vld [vmem:[#allocation5 + $0xc08] ss:$16 sps:$4 sm:$0xff]  }
 0x190   :  { %v4206_v58 = vrot.slane %v4179_v44, 7  ;;  %v6731_v4 = vld [vmem:[#allocation5 + $0xc20] ss:$16 sps:$4 sm:$0xff]   ;;  %v6734_v5 = vld [vmem:[#allocation5 + $0xc28] ss:$16 sps:$4 sm:$0xff]  }
 0x191   :  { %v3524_v30 = vsel %vm184_vm5, %v3523_v46, %v3522_v22  ;;  %v6742_v7 = vld [vmem:[#allocation5 + $0xc4c] ss:$16 sps:$4 sm:$0xff]   ;;  %v6737_v8 = vld [vmem:[#allocation5 + $0xc40] ss:$16 sps:$4 sm:$0xff]   ;;  %v6740_v20 = vld [vmem:[#allocation5 + $0xc48] ss:$16 sps:$4 sm:$0xff]  }
 0x192   :  { %3886 = vmatpush1.bf16.msra.mxu0 %v6673_v29  ;;  %3927 = vmatpush1.bf16.msra.mxu1 %v6676_v28  ;;  %v4202_v29 = vsel %vm178_vm3, %v4201_v41, %v4200_v55  ;;  %v3525_v28 = vrot.slane %v3511_v42, 6  ;;  %v6745_v16 = vld [vmem:[#allocation5 + $0xc64] ss:$16 sps:$4 sm:$0xff]   ;;  %v6743_v10 = vld [vmem:[#allocation5 + $0xc60] ss:$16 sps:$4 sm:$0xff]  }
 0x193   :  { %3887 = vmatprep.subr.bf16.mxu0 %v6681_v52  ;;  %3928 = vmatprep.subr.bf16.mxu1 %v6684_v45  ;;  %v4177_v52 = vunpack.c.l.b16 %v5896_v43  ;;  %v4204_v15 = vsel %vm181_vm4, %v4203_v48, %v4202_v29  ;;  %v6708_v45 = vld [vmem:[#allocation5 + $0xbec] ss:$16 sps:$4 sm:$0xff]   ;;  %v6746_v24 = vld [vmem:[#allocation5 + $0xc68] ss:$16 sps:$4 sm:$0xff]   ;;  %v6751_v31 = vld [vmem:[#allocation5 + $0xc84] ss:$16 sps:$4 sm:$0xff]  }
 0x194   :  { %v3526_v59 = vsel %vm187_vm6, %v3525_v28, %v3524_v30  ;;  %v6752_v21 = vld [vmem:[#allocation5 + $0xc88] ss:$16 sps:$4 sm:$0xff]   ;;  %v6757_v11 = vld [vmem:[#allocation5 + $0xca4] ss:$16 sps:$4 sm:$0xff]   ;;  %v6755_v54 = vld [vmem:[#allocation5 + $0xca0] ss:$16 sps:$4 sm:$0xff]  }
 0x195   :  { %v3541_v63 = vpack.c.b16 %v3526_v59, %v3526_v59  ;;  %v6758_v41 = vld [vmem:[#allocation5 + $0xca8] ss:$16 sps:$4 sm:$0xff]   ;;  %v6763_v38 = vld [vmem:[#allocation5 + $0xcc4] ss:$16 sps:$4 sm:$0xff]   ;;  %v6761_v29 = vld [vmem:[#allocation5 + $0xcc0] ss:$16 sps:$4 sm:$0xff]  }
 0x196   :  { %3888 = vmatpush1.bf16.msra.mxu0 %v6679_v60  ;;  %3929 = vmatpush1.bf16.msra.mxu1 %v6682_v33  ;;  %v4205_v60 = vsel %vm184_vm5, %v4177_v52, %v4204_v15  ;;  %v6733_v33 = vld [vmem:[#allocation5 + $0xc24] ss:$16 sps:$4 sm:$0xff]   ;;  %v6764_v28 = vld [vmem:[#allocation5 + $0xcc8] ss:$16 sps:$4 sm:$0xff]  }
 0x197   :  { %3889 = vmatprep.subr.bf16.mxu0 %v6687_v2  ;;  %3930 = vmatprep.subr.bf16.mxu1 %v6690_v6  ;;  %v4207_v0 = vsel %vm187_vm6, %v4206_v58, %v4205_v60  ;;  %v6736_v2 = vld [vmem:[#allocation5 + $0xc2c] ss:$16 sps:$4 sm:$0xff]   ;;  %v6739_v6 = vld [vmem:[#allocation5 + $0xc44] ss:$16 sps:$4 sm:$0xff]  }
 0x198   :  { %v4209_v3 = vpack.c.b16 %v4207_v0, %v4207_v0  ;;  %v6769_v52 = vld [vmem:[#allocation5 + $0xce4] ss:$16 sps:$4 sm:$0xff]   ;;  %v5885_v0 = vcombine.low %v7397_v19, %v7397_v19  ;;  %v6773_v19 = vld [vmem:[#allocation5 + $0xd00] ss:$16 sps:$4 sm:$0xff]  }
 0x19a   :  { %3890 = vmatpush1.bf16.msra.mxu0 %v6685_v9  ;;  %3931 = vmatpush1.bf16.msra.mxu1 %v6688_v36  ;;  %v6748_v9 = vld [vmem:[#allocation5 + $0xc6c] ss:$16 sps:$4 sm:$0xff]  }
 0x19b   :  { %3891 = vmatprep.subr.bf16.mxu0 %v6693_v35  ;;  %3932 = vmatprep.subr.bf16.mxu1 %v6696_v37  ;;  %v6754_v36 = vld [vmem:[#allocation5 + $0xc8c] ss:$16 sps:$4 sm:$0xff]   ;;  %v6749_v35 = vld [vmem:[#allocation5 + $0xc80] ss:$16 sps:$4 sm:$0xff]  }
 0x19c   :  { %v6760_v37 = vld [vmem:[#allocation5 + $0xcac] ss:$16 sps:$4 sm:$0xff]  }
 0x19e   :  { %3892 = vmatpush1.bf16.msra.mxu0 %v6691_v39  ;;  %3933 = vmatpush1.bf16.msra.mxu1 %v6694_v26  ;;  %v6766_v39 = vld [vmem:[#allocation5 + $0xccc] ss:$16 sps:$4 sm:$0xff]  }
 0x19f   :  { %3893 = vmatprep.subr.bf16.mxu0 %v6699_v56  ;;  %3934 = vmatprep.subr.bf16.mxu1 %v6702_v49 }
 0x1a2   :  { %3894 = vmatpush1.bf16.msra.mxu0 %v6697_v51  ;;  %3935 = vmatpush1.bf16.msra.mxu1 %v6700_v50 }
 0x1a3   :  { %3895 = vmatprep.subr.bf16.mxu0 %v6705_v53  ;;  %3936 = vmatprep.subr.bf16.mxu1 %v6708_v45  ;;  %v6772_v45 = vld [vmem:[#allocation5 + $0xcec] ss:$16 sps:$4 sm:$0xff]  }
 0x1a6   :  { %3896 = vmatpush1.bf16.msra.mxu0 %v6703_v57  ;;  %3937 = vmatpush1.bf16.msra.mxu1 %v6706_v61  ;;  %v6767_v61 = vld [vmem:[#allocation5 + $0xce0] ss:$16 sps:$4 sm:$0xff]  }
 0x1a7   :  { %4532 = vmatprep.subr.bf16.mxu0 %v6727_v32  ;;  %4573 = vmatprep.subr.bf16.mxu1 %v6730_v62  ;;  %v6770_v32 = vld [vmem:[#allocation5 + $0xce8] ss:$16 sps:$4 sm:$0xff]   ;;  %v6775_v62 = vld [vmem:[#allocation5 + $0xd04] ss:$16 sps:$4 sm:$0xff]  }
 0x1a9   :  { %3898 = vmatmul.mubr.bf16.vlgmr.msra.gmra.mrb[20].mxu0 %v3541_v63  ;;  %3939 = vmatmul.mubr.bf16.vlgmr.msra.gmra.mrb[20].mxu1 %v3541_v63  ;;  %v5883_v63 = vcombine.low %v7395_v18, %v7395_v18 }
 0x1aa   :  { %4533 = vmatpush1.bf16.msra.mxu0 %v6725_v47  ;;  %4574 = vmatpush1.bf16.msra.mxu1 %v6728_v1 }
 0x1ab   :  { %4534 = vmatprep.subr.bf16.mxu0 %v6733_v33  ;;  %4575 = vmatprep.subr.bf16.mxu1 %v6736_v2 }
 0x1ac   :  { %4564 = vmatprep.mubr.bf16.mxu0 %v4209_v3  ;;  %4605 = vmatprep.mubr.bf16.mxu1 %v4209_v3  ;;  %v6778_v3 = vld [vmem:[#allocation5 + $0xd0c] ss:$16 sps:$4 sm:$0xff]  }
 0x1ae   :  { %4535 = vmatpush1.bf16.msra.mxu0 %v6731_v4  ;;  %4576 = vmatpush1.bf16.msra.mxu1 %v6734_v5  ;;  %v7481_v4 = vld [vmem:[#allocation2] sm:$0x88]  ;;  %v7483_v5 = vld [vmem:[#allocation2 + $0x8] sm:$0x88] }
 0x1af   :  { %4536 = vmatprep.subr.bf16.mxu0 %v6739_v6  ;;  %4577 = vmatprep.subr.bf16.mxu1 %v6742_v7 }
 0x1b2   :  { %4537 = vmatpush1.bf16.msra.mxu0 %v6737_v8  ;;  %4578 = vmatpush1.bf16.msra.mxu1 %v6740_v20  ;;  %v6776_v20 = vld [vmem:[#allocation5 + $0xd08] ss:$16 sps:$4 sm:$0xff]  }
 0x1b3   :  { %4538 = vmatprep.subr.bf16.mxu0 %v6745_v16  ;;  %4579 = vmatprep.subr.bf16.mxu1 %v6748_v9  ;;  %v6781_v16 = vld [vmem:[#allocation5 + $0xd24] ss:$16 sps:$4 sm:$0xff]   ;;  %v5887_v9 = vcombine.low %v7399_v23, %v7399_v23  ;;  %v6784_v23 = vld [vmem:[#allocation5 + $0xd2c] ss:$16 sps:$4 sm:$0xff]  }
 0x1b6   :  { %4539 = vmatpush1.bf16.msra.mxu0 %v6743_v10  ;;  %4580 = vmatpush1.bf16.msra.mxu1 %v6746_v24  ;;  %v7495_v10 = vld [vmem:[#allocation2 + $0x10] sm:$0x88]  ;;  %v5964_v24 = vcombine.high %v7481_v4, %v7481_v4 }
 0x1b7   :  { %4540 = vmatprep.subr.bf16.mxu0 %v6751_v31  ;;  %4581 = vmatprep.subr.bf16.mxu1 %v6754_v36  ;;  %v5966_v31 = vcombine.high %v7483_v5, %v7483_v5  ;;  %v4164_v36 = vunpack.c.l.b16 %v5883_v63 }
 0x1ba   :  { %4541 = vmatpush1.bf16.msra.mxu0 %v6749_v35  ;;  %4582 = vmatpush1.bf16.msra.mxu1 %v6752_v21  ;;  %v4166_v35 = vunpack.c.l.b16 %v5885_v0  ;;  %v6779_v21 = vld [vmem:[#allocation5 + $0xd20] ss:$16 sps:$4 sm:$0xff]  }
 0x1bb   :  { %4542 = vmatprep.subr.bf16.mxu0 %v6757_v11  ;;  %v1898_v27 = vpop.f32.mrb[8].mxu0  ;;  %v1939_v55 = vpop.f32.mrb[8].mxu1  ;;  %4583 = vmatprep.subr.bf16.mxu1 %v6760_v37  ;;  %v5889_v11 = vcombine.low %v7423_v40, %v7423_v40  ;;  %v7511_v37 = vld [vmem:[#allocation2 + $0x18] sm:$0x88]  ;;  %v7517_v40 = vld [vmem:[#allocation2 + $0x20] sm:$0x88] }
 0x1bc   :  { %v1900_v42 = vpop.f32.mrb[9].mxu0  ;;  %v1941_v43 = vpop.f32.mrb[9].mxu1 }
 0x1bd   :  { %v1950_v26 = vcombine.low %v1898_v27, %v1900_v42  ;;  %v1951_v56 = vcombine.high %v1898_v27, %v1900_v42  ;;  %v1952_v46 = vcombine.low %v1939_v55, %v1941_v43  ;;  %v1953_v48 = vcombine.high %v1939_v55, %v1941_v43  ;;  %v1902_v49 = vpop.f32.mrb[10].mxu0  ;;  %v1943_v22 = vpop.f32.mrb[10].mxu1  ;;  %v6790_v42 = vld [vmem:[#allocation5 + $0xd4c] ss:$16 sps:$4 sm:$0xff]  }
 0x1be   :  { %4543 = vmatpush1.bf16.msra.mxu0 %v6755_v54  ;;  %4584 = vmatpush1.bf16.msra.mxu1 %v6758_v41  ;;  %v1903_v44 = vpop.f32.mrb[11].mxu0  ;;  %v1944_v51 = vpop.f32.mrb[11].mxu1  ;;  %v5968_v54 = vcombine.high %v7495_v10, %v7495_v10  ;;  %v6782_v41 = vld [vmem:[#allocation5 + $0xd28] ss:$16 sps:$4 sm:$0xff]   ;;  %v4168_v27 = vunpack.c.l.b16 %v5887_v9  ;;  %v4832_v55 = vunpack.c.l.b16 %v5964_v24  ;;  %v4180_v43 = vrot.slane %v4164_v36, 6 }
 0x1bf   :  { %4544 = vmatprep.subr.bf16.mxu0 %v6763_v38  ;;  %v1960_v50 = vrot.slane %v1950_v26, %v7291_v14  ;;  %v1967_v53 = vrot.slane %v1951_v56, %v7291_v14  ;;  %v1974_v30 = vrot.slane %v1952_v46, %v7291_v14  ;;  %v1981_v15 = vrot.slane %v1953_v48, %v7291_v14  ;;  %v6787_v38 = vld [vmem:[#allocation5 + $0xd44] ss:$16 sps:$4 sm:$0xff]   ;;  %v6785_v48 = vld [vmem:[#allocation5 + $0xd40] ss:$16 sps:$4 sm:$0xff]   ;;  %v6788_v49 = vld [vmem:[#allocation5 + $0xd48] ss:$16 sps:$4 sm:$0xff]  }
 0x1c0   :  { %4585 = vmatprep.subr.bf16.mxu1 %v6766_v39  ;;  %v4834_v39 = vunpack.c.l.b16 %v5966_v31  ;;  %v4181_v26 = vrot.slane %v4166_v35, 5  ;;  %v5891_v56 = vcombine.low %v7429_v13, %v7429_v13  ;;  %v5970_v46 = vcombine.high %v7511_v37, %v7511_v37  ;;  %v6793_v44 = vld [vmem:[#allocation5 + $0xd64] ss:$16 sps:$4 sm:$0xff]   ;;  %v6808_v31 = vld [vmem:[#allocation5 + $0xdac] ss:$16 sps:$4 sm:$0xff]  }
 0x1c1   :  { %v1982_v58 = vcombine.low %v1960_v50, %v1974_v30  ;;  %v1983_v57 = vcombine.high %v1960_v50, %v1974_v30  ;;  %v1984_v59 = vcombine.low %v1967_v53, %v1981_v15  ;;  %v1985_v60 = vcombine.high %v1967_v53, %v1981_v15  ;;  %v6796_v50 = vld [vmem:[#allocation5 + $0xd6c] ss:$16 sps:$4 sm:$0xff]  }
 0x1c2   :  { %4545 = vmatpush1.bf16.msra.mxu0 %v6761_v29  ;;  %4586 = vmatpush1.bf16.msra.mxu1 %v6764_v28  ;;  %v4170_v22 = vunpack.c.l.b16 %v5889_v11  ;;  %v4836_v29 = vunpack.c.l.b16 %v5968_v54  ;;  %v4183_v51 = vrot.slane %v4168_v27, 4  ;;  %v4861_v28 = vrot.slane %v4832_v55, 7  ;;  %v7524_v30 = vld [vmem:[#allocation2 + $0x28] sm:$0x88]  ;;  %v7544_v54 = vld [vmem:[#allocation2 + $0x38] sm:$0x88] }
 0x1c3   :  { %4546 = vmatprep.subr.bf16.mxu0 %v6769_v52  ;;  %v1992_v47 = vrot.slane %v1982_v58, %v7291_v14  ;;  %v1999_v1 = vrot.slane %v1984_v59, %v7291_v14  ;;  %v2006_v33 = vrot.slane %v1983_v57, %v7291_v14  ;;  %v2013_v2 = vrot.slane %v1985_v60, %v7291_v14  ;;  %v6791_v57 = vld [vmem:[#allocation5 + $0xd60] ss:$16 sps:$4 sm:$0xff]   ;;  %v6811_v27 = vld [vmem:[#allocation5 + $0xdc4] ss:$16 sps:$4 sm:$0xff]  }
 0x1c4   :  { %4587 = vmatprep.subr.bf16.mxu1 %v6772_v45  ;;  %v4862_v52 = vrot.slane %v4834_v39, 6  ;;  %v5893_v13 = vcombine.low %v7436_v17, %v7436_v17  ;;  %v4182_v53 = vsel %vm169_vm0, %v4181_v26, %v4180_v43  ;;  %v5972_v15 = vcombine.high %v7517_v40, %v7517_v40  ;;  %v7529_v17 = vld [vmem:[#allocation2 + $0x30] sm:$0x88]  ;;  %v6814_v39 = vld [vmem:[#allocation5 + $0xdcc] ss:$16 sps:$4 sm:$0xff]  }
 0x1c5   :  { %v2014_v6 = vcombine.high %v1992_v47, %v1992_v47  ;;  %v2015_v7 = vcombine.high %v1999_v1, %v1999_v1  ;;  %v2016_v18 = vcombine.high %v2006_v33, %v2006_v33  ;;  %v2017_v8 = vcombine.high %v2013_v2, %v2013_v2  ;;  %2027 = vst.msk [vmem:[#allocation7 + $0x2] ss:$8 sm:$0xf] %vm7297_vm7, %v1992_v47  ;;  %v6802_v47 = vld [vmem:[#allocation5 + $0xd8c] ss:$16 sps:$4 sm:$0xff]  }
 0x1c6   :  { %2030 = vst.msk [vmem:[#allocation7 + $0x22] ss:$8 sm:$0xf] %vm7297_vm7, %v2006_v33  ;;  %2039 = vst.msk [vmem:[#allocation7 + $0x82] ss:$8 sm:$0xf] %vm7297_vm7, %v1999_v1  ;;  %4547 = vmatpush1.bf16.msra.mxu0 %v6767_v61  ;;  %4588 = vmatpush1.bf16.msra.mxu1 %v6770_v32  ;;  %v4172_v45 = vunpack.c.l.b16 %v5891_v56  ;;  %v4838_v58 = vunpack.c.l.b16 %v5970_v46  ;;  %v5974_v63 = vcombine.high %v7524_v30, %v7524_v30  ;;  %v4174_v1 = vunpack.c.l.b16 %v5893_v13 }
 0x1c7   :  { %2042 = vst.msk [vmem:[#allocation7 + $0xa2] ss:$8 sm:$0xf] %vm7297_vm7, %v2013_v2  ;;  %4548 = vmatprep.subr.bf16.mxu0 %v6775_v62  ;;  %2033 = vst.msk [vmem:[#allocation7 + $0x42] ss:$8 sm:$0xf] %vm7297_vm7, %v2014_v6  ;;  %4589 = vmatprep.subr.bf16.mxu1 %v6778_v3  ;;  %v4184_v62 = vsel %vm172_vm1, %v4183_v51, %v4182_v53  ;;  %v4863_v0 = vsel %vm169_vm0, %v4862_v52, %v4861_v28  ;;  %v4840_v33 = vunpack.c.l.b16 %v5972_v15 }
 0x1c8   :  { %2036 = vst.msk [vmem:[#allocation7 + $0x62] ss:$8 sm:$0xf] %vm7297_vm7, %v2016_v18  ;;  %2045 = vst.msk [vmem:[#allocation7 + $0xc2] ss:$8 sm:$0xf] %vm7297_vm7, %v2015_v7  ;;  %v5897_v7 = vcombine.low %v7451_v25, %v7451_v25  ;;  %v5895_v9 = vcombine.low %v7454_v34, %v7454_v34  ;;  %v4842_v24 = vunpack.c.l.b16 %v5974_v63  ;;  %v5978_v26 = vcombine.high %v7544_v54, %v7544_v54 }
 0x1c9   :  { %2048 = vst.msk [vmem:[#allocation7 + $0xe2] ss:$8 sm:$0xf] %vm7297_vm7, %v2017_v8  ;;  %v4185_v59 = vrot.slane %v4170_v22, 3  ;;  %v4864_v60 = vrot.slane %v4836_v29, 5  ;;  %v4187_v2 = vrot.slane %v4172_v45, 2  ;;  %v5976_v8 = vcombine.high %v7529_v17, %v7529_v17 }
 0x1ca   :  { %4549 = vmatpush1.bf16.msra.mxu0 %v6773_v19  ;;  %4590 = vmatpush1.bf16.msra.mxu1 %v6776_v20  ;;  %v6794_v61 = vld [vmem:[#allocation5 + $0xd68] ss:$16 sps:$4 sm:$0xff]   ;;  %v6799_v32 = vld [vmem:[#allocation5 + $0xd84] ss:$16 sps:$4 sm:$0xff]   ;;  %v4866_v3 = vrot.slane %v4838_v58, 4  ;;  %v4868_v36 = vrot.slane %v4840_v33, 3  ;;  %v4178_v11 = vunpack.c.l.b16 %v5897_v7  ;;  %v4176_v34 = vunpack.c.l.b16 %v5895_v9 }
 0x1cb   :  { %4550 = vmatprep.subr.bf16.mxu0 %v6781_v16  ;;  %4591 = vmatprep.subr.bf16.mxu1 %v6784_v23  ;;  %v6797_v6 = vld [vmem:[#allocation5 + $0xd80] ss:$16 sps:$4 sm:$0xff]   ;;  %v4186_v18 = vsel %vm175_vm2, %v4185_v59, %v4184_v62  ;;  %v4865_v19 = vsel %vm172_vm1, %v4864_v60, %v4863_v0  ;;  %v6800_v20 = vld [vmem:[#allocation5 + $0xd88] ss:$16 sps:$4 sm:$0xff]   ;;  %v6805_v16 = vld [vmem:[#allocation5 + $0xda4] ss:$16 sps:$4 sm:$0xff]   ;;  %v4846_v28 = vunpack.c.l.b16 %v5978_v26 }
 0x1cc   :  { %v4189_v23 = vrot.slane %v4174_v1, 1  ;;  %v4188_v25 = vsel %vm178_vm3, %v4187_v2, %v4186_v18  ;;  %v4867_v35 = vsel %vm175_vm2, %v4866_v3, %v4865_v19  ;;  %v4870_v55 = vrot.slane %v4842_v24, 2  ;;  %v6809_v56 = vld [vmem:[#allocation5 + $0xdc0] ss:$16 sps:$4 sm:$0xff]   ;;  %v6817_v22 = vld [vmem:[#allocation5 + $0xde4] ss:$16 sps:$4 sm:$0xff]  }
 0x1cd   :  { %v4869_v43 = vsel %vm178_vm3, %v4868_v36, %v4867_v35  ;;  %v4192_v46 = vrot.slane %v4178_v11, 7  ;;  %v6820_v51 = vld [vmem:[#allocation5 + $0xdec] ss:$16 sps:$4 sm:$0xff]   ;;  %v6815_v52 = vld [vmem:[#allocation5 + $0xde0] ss:$16 sps:$4 sm:$0xff]  }
 0x1ce   :  { %4551 = vmatpush1.bf16.msra.mxu0 %v6779_v21  ;;  %4592 = vmatpush1.bf16.msra.mxu1 %v6782_v41  ;;  %v6803_v21 = vld [vmem:[#allocation5 + $0xda0] ss:$16 sps:$4 sm:$0xff]   ;;  %v4844_v41 = vunpack.c.l.b16 %v5976_v8  ;;  %v6818_v53 = vld [vmem:[#allocation5 + $0xde8] ss:$16 sps:$4 sm:$0xff]   ;;  %v6839_v15 = vld [vmem:[#allocation5 + $0xe04] ss:$16 sps:$4 sm:$0xff]  }
 0x1cf   :  { %4552 = vmatprep.subr.bf16.mxu0 %v6787_v38  ;;  %4593 = vmatprep.subr.bf16.mxu1 %v6790_v42  ;;  %v6806_v38 = vld [vmem:[#allocation5 + $0xda8] ss:$16 sps:$4 sm:$0xff]   ;;  %v4190_v42 = vsel %vm181_vm4, %v4189_v23, %v4188_v25  ;;  %v6842_v45 = vld [vmem:[#allocation5 + $0xe0c] ss:$16 sps:$4 sm:$0xff]   ;;  %v6837_v59 = vld [vmem:[#allocation5 + $0xe00] ss:$16 sps:$4 sm:$0xff]  }
 0x1d0   :  { %v4191_v29 = vsel %vm184_vm5, %v4176_v34, %v4190_v42  ;;  %v6840_v60 = vld [vmem:[#allocation5 + $0xe08] ss:$16 sps:$4 sm:$0xff]   ;;  %v6843_v63 = vld [vmem:[#allocation5 + $0xe20] ss:$16 sps:$4 sm:$0xff]   ;;  %v6854_v1 = vld [vmem:[#allocation5 + $0xe4c] ss:$16 sps:$4 sm:$0xff]  }
 0x1d1   :  { %v6846_v0 = vld [vmem:[#allocation5 + $0xe28] ss:$16 sps:$4 sm:$0xff]   ;;  %v6849_v33 = vld [vmem:[#allocation5 + $0xe40] ss:$16 sps:$4 sm:$0xff]   ;;  %v6857_v3 = vld [vmem:[#allocation5 + $0xe64] ss:$16 sps:$4 sm:$0xff]  }
 0x1d2   :  { %4553 = vmatpush1.bf16.msra.mxu0 %v6785_v48  ;;  %4594 = vmatpush1.bf16.msra.mxu1 %v6788_v49  ;;  %v4872_v48 = vrot.slane %v4844_v41, 1  ;;  %v6812_v49 = vld [vmem:[#allocation5 + $0xdc8] ss:$16 sps:$4 sm:$0xff]   ;;  %v6855_v7 = vld [vmem:[#allocation5 + $0xe60] ss:$16 sps:$4 sm:$0xff]  }
 0x1d3   :  { %4554 = vmatprep.subr.bf16.mxu0 %v6793_v44  ;;  %4595 = vmatprep.subr.bf16.mxu1 %v6796_v50  ;;  %v4871_v44 = vsel %vm181_vm4, %v4870_v55, %v4869_v43  ;;  %v4193_v50 = vsel %vm187_vm6, %v4192_v46, %v4191_v29  ;;  %v6852_v2 = vld [vmem:[#allocation5 + $0xe48] ss:$16 sps:$4 sm:$0xff]   ;;  %v6863_v8 = vld [vmem:[#allocation5 + $0xe84] ss:$16 sps:$4 sm:$0xff]   ;;  %v6866_v19 = vld [vmem:[#allocation5 + $0xe8c] ss:$16 sps:$4 sm:$0xff]  }
 0x1d4   :  { %v4873_v13 = vsel %vm184_vm5, %v4872_v48, %v4871_v44  ;;  %v4208_v58 = vpack.c.b16 %v4193_v50, %v4193_v50  ;;  %v6858_v18 = vld [vmem:[#allocation5 + $0xe68] ss:$16 sps:$4 sm:$0xff]   ;;  %v6869_v9 = vld [vmem:[#allocation5 + $0xea4] ss:$16 sps:$4 sm:$0xff]   ;;  %v6872_v24 = vld [vmem:[#allocation5 + $0xeac] ss:$16 sps:$4 sm:$0xff]  }
 0x1d5   :  { %v6870_v23 = vld [vmem:[#allocation5 + $0xea8] ss:$16 sps:$4 sm:$0xff]   ;;  %v6875_v36 = vld [vmem:[#allocation5 + $0xec4] ss:$16 sps:$4 sm:$0xff]   ;;  %v6873_v43 = vld [vmem:[#allocation5 + $0xec0] ss:$16 sps:$4 sm:$0xff]  }
 0x1d6   :  { %4555 = vmatpush1.bf16.msra.mxu0 %v6791_v57  ;;  %4596 = vmatpush1.bf16.msra.mxu1 %v6794_v61  ;;  %v4874_v57 = vsel %vm187_vm6, %v4846_v28, %v4873_v13  ;;  %v6845_v61 = vld [vmem:[#allocation5 + $0xe24] ss:$16 sps:$4 sm:$0xff]   ;;  %v6876_v46 = vld [vmem:[#allocation5 + $0xec8] ss:$16 sps:$4 sm:$0xff]  }
 0x1d7   :  { %4556 = vmatprep.subr.bf16.mxu0 %v6799_v32  ;;  %4597 = vmatprep.subr.bf16.mxu1 %v6802_v47  ;;  %v6848_v32 = vld [vmem:[#allocation5 + $0xe2c] ss:$16 sps:$4 sm:$0xff]   ;;  %v4876_v62 = vpack.c.b16 %v4874_v57, %v4874_v57  ;;  %v6851_v47 = vld [vmem:[#allocation5 + $0xe44] ss:$16 sps:$4 sm:$0xff]   ;;  %v5965_v57 = vcombine.low %v7483_v5, %v7483_v5  ;;  %v6888_v5 = vld [vmem:[#allocation5 + $0xf08] ss:$16 sps:$4 sm:$0xff]  }
 0x1d8   :  { %v6881_v48 = vld [vmem:[#allocation5 + $0xee4] ss:$16 sps:$4 sm:$0xff]  }
 0x1da   :  { %4557 = vmatpush1.bf16.msra.mxu0 %v6797_v6  ;;  %4598 = vmatpush1.bf16.msra.mxu1 %v6800_v20  ;;  %v6860_v6 = vld [vmem:[#allocation5 + $0xe6c] ss:$16 sps:$4 sm:$0xff]   ;;  %v6861_v20 = vld [vmem:[#allocation5 + $0xe80] ss:$16 sps:$4 sm:$0xff]  }
 0x1db   :  { %4558 = vmatprep.subr.bf16.mxu0 %v6805_v16  ;;  %4599 = vmatprep.subr.bf16.mxu1 %v6808_v31  ;;  %v6864_v16 = vld [vmem:[#allocation5 + $0xe88] ss:$16 sps:$4 sm:$0xff]   ;;  %v6867_v31 = vld [vmem:[#allocation5 + $0xea0] ss:$16 sps:$4 sm:$0xff]  }
 0x1de   :  { %4559 = vmatpush1.bf16.msra.mxu0 %v6803_v21  ;;  %4600 = vmatpush1.bf16.msra.mxu1 %v6806_v38  ;;  %v6878_v21 = vld [vmem:[#allocation5 + $0xecc] ss:$16 sps:$4 sm:$0xff]  }
 0x1df   :  { %4560 = vmatprep.subr.bf16.mxu0 %v6811_v27  ;;  %4601 = vmatprep.subr.bf16.mxu1 %v6814_v39 }
 0x1e2   :  { %4561 = vmatpush1.bf16.msra.mxu0 %v6809_v56  ;;  %4602 = vmatpush1.bf16.msra.mxu1 %v6812_v49 }
 0x1e3   :  { %4562 = vmatprep.subr.bf16.mxu0 %v6817_v22  ;;  %4603 = vmatprep.subr.bf16.mxu1 %v6820_v51  ;;  %v6884_v51 = vld [vmem:[#allocation5 + $0xeec] ss:$16 sps:$4 sm:$0xff]  }
 0x1e6   :  { %4563 = vmatpush1.bf16.msra.mxu0 %v6815_v52  ;;  %4604 = vmatpush1.bf16.msra.mxu1 %v6818_v53  ;;  %v6879_v53 = vld [vmem:[#allocation5 + $0xee0] ss:$16 sps:$4 sm:$0xff]  }
 0x1e7   :  { %5199 = vmatprep.subr.bf16.mxu0 %v6839_v15  ;;  %5240 = vmatprep.subr.bf16.mxu1 %v6842_v45  ;;  %v6882_v15 = vld [vmem:[#allocation5 + $0xee8] ss:$16 sps:$4 sm:$0xff]   ;;  %v6887_v45 = vld [vmem:[#allocation5 + $0xf04] ss:$16 sps:$4 sm:$0xff]  }
 0x1e9   :  { %4565 = vmatmul.mubr.bf16.vlgmr.msra.gmra.mrb[24].mxu0 %v4208_v58  ;;  %4606 = vmatmul.mubr.bf16.vlgmr.msra.gmra.mrb[24].mxu1 %v4208_v58  ;;  %v5963_v58 = vcombine.low %v7481_v4, %v7481_v4  ;;  %v6885_v4 = vld [vmem:[#allocation5 + $0xf00] ss:$16 sps:$4 sm:$0xff]  }
 0x1ea   :  { %5200 = vmatpush1.bf16.msra.mxu0 %v6837_v59  ;;  %5241 = vmatpush1.bf16.msra.mxu1 %v6840_v60 }
 0x1eb   :  { %5201 = vmatprep.subr.bf16.mxu0 %v6845_v61  ;;  %5242 = vmatprep.subr.bf16.mxu1 %v6848_v32 }
 0x1ec   :  { %5231 = vmatprep.mubr.bf16.mxu0 %v4876_v62  ;;  %5272 = vmatprep.mubr.bf16.mxu1 %v4876_v62  ;;  %v6890_v62 = vld [vmem:[#allocation5 + $0xf0c] ss:$16 sps:$4 sm:$0xff]  }
 0x1ee   :  { %5202 = vmatpush1.bf16.msra.mxu0 %v6843_v63  ;;  %5243 = vmatpush1.bf16.msra.mxu1 %v6846_v0 }
 0x1ef   :  { %5203 = vmatprep.subr.bf16.mxu0 %v6851_v47  ;;  %5244 = vmatprep.subr.bf16.mxu1 %v6854_v1 }
 0x1f2   :  { %5204 = vmatpush1.bf16.msra.mxu0 %v6849_v33  ;;  %5245 = vmatpush1.bf16.msra.mxu1 %v6852_v2  ;;  %v6893_v33 = vld [vmem:[#allocation5 + $0xf24] ss:$16 sps:$4 sm:$0xff]   ;;  %v5967_v2 = vcombine.low %v7495_v10, %v7495_v10  ;;  %v5969_v10 = vcombine.low %v7511_v37, %v7511_v37 }
 0x1f3   :  { %5205 = vmatprep.subr.bf16.mxu0 %v6857_v3  ;;  %5246 = vmatprep.subr.bf16.mxu1 %v6860_v6  ;;  %v6896_v3 = vld [vmem:[#allocation5 + $0xf2c] ss:$16 sps:$4 sm:$0xff]   ;;  %v4831_v6 = vunpack.c.l.b16 %v5963_v58 }
 0x1f6   :  { %5206 = vmatpush1.bf16.msra.mxu0 %v6855_v7  ;;  %5247 = vmatpush1.bf16.msra.mxu1 %v6858_v18  ;;  %v4833_v7 = vunpack.c.l.b16 %v5965_v57  ;;  %v6891_v18 = vld [vmem:[#allocation5 + $0xf20] ss:$16 sps:$4 sm:$0xff]   ;;  %v6924_v57 = vld [vmem:[#allocation5 + $0xfc8] ss:$16 sps:$4 sm:$0xff]  }
 0x1f7   :  { %5207 = vmatprep.subr.bf16.mxu0 %v6863_v8  ;;  %5248 = vmatprep.subr.bf16.mxu1 %v6866_v19  ;;  %v6894_v8 = vld [vmem:[#allocation5 + $0xf28] ss:$16 sps:$4 sm:$0xff]   ;;  %v6899_v19 = vld [vmem:[#allocation5 + $0xf44] ss:$16 sps:$4 sm:$0xff]  }
 0x1fa   :  { %5208 = vmatpush1.bf16.msra.mxu0 %v6861_v20  ;;  %5249 = vmatpush1.bf16.msra.mxu1 %v6864_v16  ;;  %v4835_v20 = vunpack.c.l.b16 %v5967_v2  ;;  %v6902_v16 = vld [vmem:[#allocation5 + $0xf4c] ss:$16 sps:$4 sm:$0xff]  }
 0x1fb   :  { %5209 = vmatprep.subr.bf16.mxu0 %v6869_v9  ;;  %v2565_v25 = vpop.f32.mrb[12].mxu0  ;;  %v2606_v35 = vpop.f32.mrb[12].mxu1  ;;  %5250 = vmatprep.subr.bf16.mxu1 %v6872_v24  ;;  %v4847_v9 = vrot.slane %v4831_v6, 7  ;;  %v4848_v24 = vrot.slane %v4833_v7, 6 }
 0x1fc   :  { %v2567_v11 = vpop.f32.mrb[13].mxu0  ;;  %v2608_v41 = vpop.f32.mrb[13].mxu1  ;;  %v4850_v37 = vrot.slane %v4835_v20, 5 }
 0x1fd   :  { %v2617_v38 = vcombine.low %v2565_v25, %v2567_v11  ;;  %v2618_v27 = vcombine.high %v2565_v25, %v2567_v11  ;;  %v2619_v34 = vcombine.low %v2606_v35, %v2608_v41  ;;  %v2620_v55 = vcombine.high %v2606_v35, %v2608_v41  ;;  %v2569_v39 = vpop.f32.mrb[14].mxu0  ;;  %v2610_v42 = vpop.f32.mrb[14].mxu1  ;;  %v6900_v25 = vld [vmem:[#allocation5 + $0xf48] ss:$16 sps:$4 sm:$0xff]   ;;  %v6905_v35 = vld [vmem:[#allocation5 + $0xf64] ss:$16 sps:$4 sm:$0xff]  }
 0x1fe   :  { %5210 = vmatpush1.bf16.msra.mxu0 %v6867_v31  ;;  %5251 = vmatpush1.bf16.msra.mxu1 %v6870_v23  ;;  %v2570_v26 = vpop.f32.mrb[15].mxu0  ;;  %v2611_v56 = vpop.f32.mrb[15].mxu1  ;;  %v5971_v31 = vcombine.low %v7517_v40, %v7517_v40  ;;  %v6897_v23 = vld [vmem:[#allocation5 + $0xf40] ss:$16 sps:$4 sm:$0xff]   ;;  %v5973_v11 = vcombine.low %v7524_v30, %v7524_v30  ;;  %v4849_v41 = vsel %vm169_vm0, %v4848_v24, %v4847_v9  ;;  %v6906_v40 = vld [vmem:[#allocation5 + $0xf68] ss:$16 sps:$4 sm:$0xff]  }
 0x1ff   :  { %5211 = vmatprep.subr.bf16.mxu0 %v6875_v36  ;;  %v2627_v49 = vrot.slane %v2617_v38, %v7291_v14  ;;  %v2634_v22 = vrot.slane %v2618_v27, %v7291_v14  ;;  %v2641_v29 = vrot.slane %v2619_v34, %v7291_v14  ;;  %v2648_v44 = vrot.slane %v2620_v55, %v7291_v14  ;;  %v6903_v27 = vld [vmem:[#allocation5 + $0xf60] ss:$16 sps:$4 sm:$0xff]   ;;  %v6911_v55 = vld [vmem:[#allocation5 + $0xf84] ss:$16 sps:$4 sm:$0xff]  }
 0x200   :  { %5252 = vmatprep.subr.bf16.mxu1 %v6878_v21  ;;  %v4837_v36 = vunpack.c.l.b16 %v5969_v10  ;;  %v6908_v21 = vld [vmem:[#allocation5 + $0xf6c] ss:$16 sps:$4 sm:$0xff]   ;;  %v4839_v38 = vunpack.c.l.b16 %v5971_v31  ;;  %v5975_v39 = vcombine.low %v7529_v17, %v7529_v17  ;;  %v4851_v42 = vsel %vm172_vm1, %v4850_v37, %v4849_v41  ;;  %v6909_v30 = vld [vmem:[#allocation5 + $0xf80] ss:$16 sps:$4 sm:$0xff]  }
 0x201   :  { %v2649_v28 = vcombine.low %v2627_v49, %v2641_v29  ;;  %v2650_v52 = vcombine.high %v2627_v49, %v2641_v29  ;;  %v2651_v50 = vcombine.low %v2634_v22, %v2648_v44  ;;  %v2652_v13 = vcombine.high %v2634_v22, %v2648_v44  ;;  %v6917_v49 = vld [vmem:[#allocation5 + $0xfa4] ss:$16 sps:$4 sm:$0xff]   ;;  %v6920_v29 = vld [vmem:[#allocation5 + $0xfac] ss:$16 sps:$4 sm:$0xff]  }
 0x202   :  { %5212 = vmatpush1.bf16.msra.mxu0 %v6873_v43  ;;  %5253 = vmatpush1.bf16.msra.mxu1 %v6876_v46  ;;  %v4852_v34 = vrot.slane %v4837_v36, 4  ;;  %v6914_v43 = vld [vmem:[#allocation5 + $0xf8c] ss:$16 sps:$4 sm:$0xff]   ;;  %v4841_v26 = vunpack.c.l.b16 %v5973_v11  ;;  %v4854_v56 = vrot.slane %v4839_v38, 3  ;;  %v4843_v22 = vunpack.c.l.b16 %v5975_v39 }
 0x203   :  { %5213 = vmatprep.subr.bf16.mxu0 %v6881_v48  ;;  %v2659_v59 = vrot.slane %v2649_v28, %v7291_v14  ;;  %v2666_v60 = vrot.slane %v2651_v50, %v7291_v14  ;;  %v2673_v61 = vrot.slane %v2650_v52, %v7291_v14  ;;  %v2680_v32 = vrot.slane %v2652_v13, %v7291_v14  ;;  %v6912_v48 = vld [vmem:[#allocation5 + $0xf88] ss:$16 sps:$4 sm:$0xff]   ;;  %v6923_v50 = vld [vmem:[#allocation5 + $0xfc4] ss:$16 sps:$4 sm:$0xff]  }
 0x204   :  { %5254 = vmatprep.subr.bf16.mxu1 %v6884_v51  ;;  %v4853_v46 = vsel %vm175_vm2, %v4852_v34, %v4851_v42  ;;  %v4856_v44 = vrot.slane %v4841_v26, 2  ;;  %v6915_v51 = vld [vmem:[#allocation5 + $0xfa0] ss:$16 sps:$4 sm:$0xff]   ;;  %v5977_v28 = vcombine.low %v7544_v54, %v7544_v54  ;;  %v6918_v52 = vld [vmem:[#allocation5 + $0xfa8] ss:$16 sps:$4 sm:$0xff]   ;;  %v4858_v13 = vrot.slane %v4843_v22, 1 }
 0x205   :  { %v2681_v63 = vcombine.high %v2659_v59, %v2659_v59  ;;  %v2682_v0 = vcombine.high %v2666_v60, %v2666_v60  ;;  %v2683_v47 = vcombine.high %v2673_v61, %v2673_v61  ;;  %v2684_v1 = vcombine.high %v2680_v32, %v2680_v32  ;;  %2694 = vst.msk [vmem:[#allocation7 + $0x3] ss:$8 sm:$0xf] %vm7297_vm7, %v2659_v59  ;;  %v6929_v59 = vld [vmem:[#allocation5 + $0xfe4] ss:$16 sps:$4 sm:$0xff]  }
 0x206   :  { %2697 = vst.msk [vmem:[#allocation7 + $0x23] ss:$8 sm:$0xf] %vm7297_vm7, %v2673_v61  ;;  %2706 = vst.msk [vmem:[#allocation7 + $0x83] ss:$8 sm:$0xf] %vm7297_vm7, %v2666_v60  ;;  %5214 = vmatpush1.bf16.msra.mxu0 %v6879_v53  ;;  %5255 = vmatpush1.bf16.msra.mxu1 %v6882_v15  ;;  %v4855_v17 = vsel %vm178_vm3, %v4854_v56, %v4853_v46  ;;  %v4845_v58 = vunpack.c.l.b16 %v5977_v28 }
 0x207   :  { %2709 = vst.msk [vmem:[#allocation7 + $0xa3] ss:$8 sm:$0xf] %vm7297_vm7, %v2680_v32  ;;  %5215 = vmatprep.subr.bf16.mxu0 %v6887_v45  ;;  %2700 = vst.msk [vmem:[#allocation7 + $0x43] ss:$8 sm:$0xf] %vm7297_vm7, %v2681_v63  ;;  %5256 = vmatprep.subr.bf16.mxu1 %v6890_v62  ;;  %v4857_v15 = vsel %vm181_vm4, %v4856_v44, %v4855_v17 }
 0x208   :  { %2703 = vst.msk [vmem:[#allocation7 + $0x63] ss:$8 sm:$0xf] %vm7297_vm7, %v2683_v47  ;;  %2712 = vst.msk [vmem:[#allocation7 + $0xc3] ss:$8 sm:$0xf] %vm7297_vm7, %v2682_v0  ;;  %v4859_v60 = vsel %vm184_vm5, %v4858_v13, %v4857_v15 }
 0x209   :  { %2715 = vst.msk [vmem:[#allocation7 + $0xe3] ss:$8 sm:$0xf] %vm7297_vm7, %v2684_v1  ;;  %v6926_v53 = vld [vmem:[#allocation5 + $0xfcc] ss:$16 sps:$4 sm:$0xff]   ;;  %v4860_v32 = vsel %vm187_vm6, %v4845_v58, %v4859_v60 }
 0x20a   :  { %5216 = vmatpush1.bf16.msra.mxu0 %v6885_v4  ;;  %5257 = vmatpush1.bf16.msra.mxu1 %v6888_v5  ;;  %v6921_v45 = vld [vmem:[#allocation5 + $0xfc0] ss:$16 sps:$4 sm:$0xff]   ;;  %v6932_v54 = vld [vmem:[#allocation5 + $0xfec] ss:$16 sps:$4 sm:$0xff]   ;;  %v6930_v62 = vld [vmem:[#allocation5 + $0xfe8] ss:$16 sps:$4 sm:$0xff]   ;;  %v4875_v63 = vpack.c.b16 %v4860_v32, %v4860_v32 }
 0x20b   :  { %5217 = vmatprep.subr.bf16.mxu0 %v6893_v33  ;;  %5258 = vmatprep.subr.bf16.mxu1 %v6896_v3  ;;  %v6927_v61 = vld [vmem:[#allocation5 + $0xfe0] ss:$16 sps:$4 sm:$0xff]  }
 0x20e   :  { %5218 = vmatpush1.bf16.msra.mxu0 %v6891_v18  ;;  %5259 = vmatpush1.bf16.msra.mxu1 %v6894_v8 }
 0x20f   :  { %5219 = vmatprep.subr.bf16.mxu0 %v6899_v19  ;;  %5260 = vmatprep.subr.bf16.mxu1 %v6902_v16 }
 0x212   :  { %5220 = vmatpush1.bf16.msra.mxu0 %v6897_v23  ;;  %5261 = vmatpush1.bf16.msra.mxu1 %v6900_v25 }
 0x213   :  { %5221 = vmatprep.subr.bf16.mxu0 %v6905_v35  ;;  %5262 = vmatprep.subr.bf16.mxu1 %v6908_v21 }
 0x216   :  { %5222 = vmatpush1.bf16.msra.mxu0 %v6903_v27  ;;  %5263 = vmatpush1.bf16.msra.mxu1 %v6906_v40 }
 0x217   :  { %5223 = vmatprep.subr.bf16.mxu0 %v6911_v55  ;;  %5264 = vmatprep.subr.bf16.mxu1 %v6914_v43 }
 0x21a   :  { %5224 = vmatpush1.bf16.msra.mxu0 %v6909_v30  ;;  %5265 = vmatpush1.bf16.msra.mxu1 %v6912_v48 }
 0x21b   :  { %5225 = vmatprep.subr.bf16.mxu0 %v6917_v49  ;;  %5266 = vmatprep.subr.bf16.mxu1 %v6920_v29 }
 0x21e   :  { %5226 = vmatpush1.bf16.msra.mxu0 %v6915_v51  ;;  %5267 = vmatpush1.bf16.msra.mxu1 %v6918_v52 }
 0x21f   :  { %5227 = vmatprep.subr.bf16.mxu0 %v6923_v50  ;;  %5268 = vmatprep.subr.bf16.mxu1 %v6926_v53 }
 0x222   :  { %5228 = vmatpush1.bf16.msra.mxu0 %v6921_v45  ;;  %5269 = vmatpush1.bf16.msra.mxu1 %v6924_v57 }
 0x223   :  { %5229 = vmatprep.subr.bf16.mxu0 %v6929_v59  ;;  %5270 = vmatprep.subr.bf16.mxu1 %v6932_v54 }
 0x226   :  { %5230 = vmatpush1.bf16.msra.mxu0 %v6927_v61  ;;  %5271 = vmatpush1.bf16.msra.mxu1 %v6930_v62 }
 0x229   :  { %5232 = vmatmul.mubr.bf16.vlgmr.msra.gmra.mrb[28].mxu0 %v4875_v63  ;;  %5273 = vmatmul.mubr.bf16.vlgmr.msra.gmra.mrb[28].mxu1 %v4875_v63 }
 0x23c   :  { %v3232_v0 = vpop.f32.mrb[16].mxu0  ;;  %v3273_v47 = vpop.f32.mrb[16].mxu1 }
 0x23d   :  { %v3234_v1 = vpop.f32.mrb[17].mxu0  ;;  %v3275_v33 = vpop.f32.mrb[17].mxu1 }
 0x23e   :  { %v3284_v4 = vcombine.low %v3232_v0, %v3234_v1  ;;  %v3285_v5 = vcombine.high %v3232_v0, %v3234_v1  ;;  %v3236_v2 = vpop.f32.mrb[18].mxu0  ;;  %v3286_v3 = vcombine.low %v3273_v47, %v3275_v33  ;;  %v3287_v6 = vcombine.high %v3273_v47, %v3275_v33  ;;  %v3277_v7 = vpop.f32.mrb[18].mxu1 }
 0x23f   :  { %v3237_v18 = vpop.f32.mrb[19].mxu0  ;;  %v3278_v19 = vpop.f32.mrb[19].mxu1 }
 0x240   :  { %v3294_v10 = vrot.slane %v3284_v4, %v7291_v14  ;;  %v3301_v8 = vrot.slane %v3285_v5, %v7291_v14  ;;  %v3308_v20 = vrot.slane %v3286_v3, %v7291_v14  ;;  %v3315_v16 = vrot.slane %v3287_v6, %v7291_v14 }
 0x242   :  { %v3316_v9 = vcombine.low %v3294_v10, %v3308_v20  ;;  %v3317_v24 = vcombine.high %v3294_v10, %v3308_v20  ;;  %v3318_v31 = vcombine.low %v3301_v8, %v3315_v16  ;;  %v3319_v23 = vcombine.high %v3301_v8, %v3315_v16 }
 0x244   :  { %v3326_v36 = vrot.slane %v3316_v9, %v7291_v14  ;;  %v3333_v25 = vrot.slane %v3318_v31, %v7291_v14  ;;  %v3340_v35 = vrot.slane %v3317_v24, %v7291_v14  ;;  %v3347_v37 = vrot.slane %v3319_v23, %v7291_v14 }
 0x246   :  { %v3348_v21 = vcombine.high %v3326_v36, %v3326_v36  ;;  %v3349_v11 = vcombine.high %v3333_v25, %v3333_v25  ;;  %v3350_v41 = vcombine.high %v3340_v35, %v3340_v35  ;;  %v3351_v38 = vcombine.high %v3347_v37, %v3347_v37  ;;  %3361 = vst.msk [vmem:[#allocation7 + $0x4] ss:$8 sm:$0xf] %vm7297_vm7, %v3326_v36 }
 0x247   :  { %3364 = vst.msk [vmem:[#allocation7 + $0x24] ss:$8 sm:$0xf] %vm7297_vm7, %v3340_v35  ;;  %3373 = vst.msk [vmem:[#allocation7 + $0x84] ss:$8 sm:$0xf] %vm7297_vm7, %v3333_v25 }
 0x248   :  { %3376 = vst.msk [vmem:[#allocation7 + $0xa4] ss:$8 sm:$0xf] %vm7297_vm7, %v3347_v37  ;;  %3367 = vst.msk [vmem:[#allocation7 + $0x44] ss:$8 sm:$0xf] %vm7297_vm7, %v3348_v21 }
 0x249   :  { %3370 = vst.msk [vmem:[#allocation7 + $0x64] ss:$8 sm:$0xf] %vm7297_vm7, %v3350_v41  ;;  %3379 = vst.msk [vmem:[#allocation7 + $0xc4] ss:$8 sm:$0xf] %vm7297_vm7, %v3349_v11 }
 0x24a   :  { %3382 = vst.msk [vmem:[#allocation7 + $0xe4] ss:$8 sm:$0xf] %vm7297_vm7, %v3351_v38 }
 0x27c   :  { %v3899_v27 = vpop.f32.mrb[20].mxu0  ;;  %v3940_v34 = vpop.f32.mrb[20].mxu1 }
 0x27d   :  { %v3901_v40 = vpop.f32.mrb[21].mxu0  ;;  %v3942_v42 = vpop.f32.mrb[21].mxu1 }
 0x27e   :  { %v3951_v55 = vcombine.low %v3899_v27, %v3901_v40  ;;  %v3952_v39 = vcombine.high %v3899_v27, %v3901_v40  ;;  %v3903_v43 = vpop.f32.mrb[22].mxu0  ;;  %v3953_v26 = vcombine.low %v3940_v34, %v3942_v42  ;;  %v3954_v56 = vcombine.high %v3940_v34, %v3942_v42  ;;  %v3944_v30 = vpop.f32.mrb[22].mxu1 }
 0x27f   :  { %v3904_v46 = vpop.f32.mrb[23].mxu0  ;;  %v3945_v22 = vpop.f32.mrb[23].mxu1 }
 0x280   :  { %v3961_v48 = vrot.slane %v3951_v55, %v7291_v14  ;;  %v3968_v49 = vrot.slane %v3952_v39, %v7291_v14  ;;  %v3975_v29 = vrot.slane %v3953_v26, %v7291_v14  ;;  %v3982_v44 = vrot.slane %v3954_v56, %v7291_v14 }
 0x282   :  { %v3983_v17 = vcombine.low %v3961_v48, %v3975_v29  ;;  %v3984_v51 = vcombine.high %v3961_v48, %v3975_v29  ;;  %v3985_v28 = vcombine.low %v3968_v49, %v3982_v44  ;;  %v3986_v52 = vcombine.high %v3968_v49, %v3982_v44 }
 0x284   :  { %v3993_v50 = vrot.slane %v3983_v17, %v7291_v14  ;;  %v4000_v13 = vrot.slane %v3985_v28, %v7291_v14  ;;  %v4007_v53 = vrot.slane %v3984_v51, %v7291_v14  ;;  %v4014_v15 = vrot.slane %v3986_v52, %v7291_v14 }
 0x286   :  { %v4015_v45 = vcombine.high %v3993_v50, %v3993_v50  ;;  %v4016_v58 = vcombine.high %v4000_v13, %v4000_v13  ;;  %v4017_v57 = vcombine.high %v4007_v53, %v4007_v53  ;;  %v4018_v59 = vcombine.high %v4014_v15, %v4014_v15  ;;  %4028 = vst.msk [vmem:[#allocation7 + $0x5] ss:$8 sm:$0xf] %vm7297_vm7, %v3993_v50 }
 0x287   :  { %4031 = vst.msk [vmem:[#allocation7 + $0x25] ss:$8 sm:$0xf] %vm7297_vm7, %v4007_v53  ;;  %4040 = vst.msk [vmem:[#allocation7 + $0x85] ss:$8 sm:$0xf] %vm7297_vm7, %v4000_v13 }
 0x288   :  { %4043 = vst.msk [vmem:[#allocation7 + $0xa5] ss:$8 sm:$0xf] %vm7297_vm7, %v4014_v15  ;;  %4034 = vst.msk [vmem:[#allocation7 + $0x45] ss:$8 sm:$0xf] %vm7297_vm7, %v4015_v45 }
 0x289   :  { %4037 = vst.msk [vmem:[#allocation7 + $0x65] ss:$8 sm:$0xf] %vm7297_vm7, %v4017_v57  ;;  %4046 = vst.msk [vmem:[#allocation7 + $0xc5] ss:$8 sm:$0xf] %vm7297_vm7, %v4016_v58 }
 0x28a   :  { %4049 = vst.msk [vmem:[#allocation7 + $0xe5] ss:$8 sm:$0xf] %vm7297_vm7, %v4018_v59 }
 0x2bc   :  { %v4566_v60 = vpop.f32.mrb[24].mxu0  ;;  %v4607_v54 = vpop.f32.mrb[24].mxu1 }
 0x2bd   :  { %v4568_v61 = vpop.f32.mrb[25].mxu0  ;;  %v4609_v63 = vpop.f32.mrb[25].mxu1 }
 0x2be   :  { %v4618_v32 = vcombine.low %v4566_v60, %v4568_v61  ;;  %v4619_v62 = vcombine.high %v4566_v60, %v4568_v61  ;;  %v4570_v0 = vpop.f32.mrb[26].mxu0  ;;  %v4620_v47 = vcombine.low %v4607_v54, %v4609_v63  ;;  %v4621_v1 = vcombine.high %v4607_v54, %v4609_v63  ;;  %v4611_v4 = vpop.f32.mrb[26].mxu1 }
 0x2bf   :  { %v4571_v5 = vpop.f32.mrb[27].mxu0  ;;  %v4612_v3 = vpop.f32.mrb[27].mxu1 }
 0x2c0   :  { %v4628_v33 = vrot.slane %v4618_v32, %v7291_v14  ;;  %v4635_v2 = vrot.slane %v4619_v62, %v7291_v14  ;;  %v4642_v6 = vrot.slane %v4620_v47, %v7291_v14  ;;  %v4649_v7 = vrot.slane %v4621_v1, %v7291_v14 }
 0x2c2   :  { %v4650_v18 = vcombine.low %v4628_v33, %v4642_v6  ;;  %v4651_v10 = vcombine.high %v4628_v33, %v4642_v6  ;;  %v4652_v8 = vcombine.low %v4635_v2, %v4649_v7  ;;  %v4653_v19 = vcombine.high %v4635_v2, %v4649_v7 }
 0x2c4   :  { %v4660_v20 = vrot.slane %v4650_v18, %v7291_v14  ;;  %v4667_v16 = vrot.slane %v4652_v8, %v7291_v14  ;;  %v4674_v9 = vrot.slane %v4651_v10, %v7291_v14  ;;  %v4681_v24 = vrot.slane %v4653_v19, %v7291_v14 }
 0x2c6   :  { %v4682_v31 = vcombine.high %v4660_v20, %v4660_v20  ;;  %v4683_v23 = vcombine.high %v4667_v16, %v4667_v16  ;;  %v4684_v36 = vcombine.high %v4674_v9, %v4674_v9  ;;  %v4685_v25 = vcombine.high %v4681_v24, %v4681_v24  ;;  %4695 = vst.msk [vmem:[#allocation7 + $0x6] ss:$8 sm:$0xf] %vm7297_vm7, %v4660_v20 }
 0x2c7   :  { %4698 = vst.msk [vmem:[#allocation7 + $0x26] ss:$8 sm:$0xf] %vm7297_vm7, %v4674_v9  ;;  %4707 = vst.msk [vmem:[#allocation7 + $0x86] ss:$8 sm:$0xf] %vm7297_vm7, %v4667_v16 }
 0x2c8   :  { %4710 = vst.msk [vmem:[#allocation7 + $0xa6] ss:$8 sm:$0xf] %vm7297_vm7, %v4681_v24  ;;  %4701 = vst.msk [vmem:[#allocation7 + $0x46] ss:$8 sm:$0xf] %vm7297_vm7, %v4682_v31 }
 0x2c9   :  { %4704 = vst.msk [vmem:[#allocation7 + $0x66] ss:$8 sm:$0xf] %vm7297_vm7, %v4684_v36  ;;  %4713 = vst.msk [vmem:[#allocation7 + $0xc6] ss:$8 sm:$0xf] %vm7297_vm7, %v4683_v23 }
 0x2ca   :  { %4716 = vst.msk [vmem:[#allocation7 + $0xe6] ss:$8 sm:$0xf] %vm7297_vm7, %v4685_v25 }
 0x2fc   :  { %v5233_v35 = vpop.f32.mrb[28].mxu0  ;;  %v5274_v37 = vpop.f32.mrb[28].mxu1 }
 0x2fd   :  { %v5235_v21 = vpop.f32.mrb[29].mxu0  ;;  %v5276_v38 = vpop.f32.mrb[29].mxu1 }
 0x2fe   :  { %v5285_v11 = vcombine.low %v5233_v35, %v5235_v21  ;;  %v5286_v41 = vcombine.high %v5233_v35, %v5235_v21  ;;  %v5237_v27 = vpop.f32.mrb[30].mxu0  ;;  %v5287_v34 = vcombine.low %v5274_v37, %v5276_v38  ;;  %v5288_v40 = vcombine.high %v5274_v37, %v5276_v38  ;;  %v5278_v55 = vpop.f32.mrb[30].mxu1 }
 0x2ff   :  { %v5238_v39 = vpop.f32.mrb[31].mxu0  ;;  %v5279_v26 = vpop.f32.mrb[31].mxu1 }
 0x300   :  { %v5295_v42 = vrot.slane %v5285_v11, %v7291_v14  ;;  %v5302_v43 = vrot.slane %v5286_v41, %v7291_v14  ;;  %v5309_v56 = vrot.slane %v5287_v34, %v7291_v14  ;;  %v5316_v30 = vrot.slane %v5288_v40, %v7291_v14 }
 0x302   :  { %v5317_v46 = vcombine.low %v5295_v42, %v5309_v56  ;;  %v5318_v48 = vcombine.high %v5295_v42, %v5309_v56  ;;  %v5319_v49 = vcombine.low %v5302_v43, %v5316_v30  ;;  %v5320_v22 = vcombine.high %v5302_v43, %v5316_v30 }
 0x304   :  { %v5327_v29 = vrot.slane %v5317_v46, %v7291_v14  ;;  %v5334_v44 = vrot.slane %v5319_v49, %v7291_v14  ;;  %v5341_v17 = vrot.slane %v5318_v48, %v7291_v14  ;;  %v5348_v51 = vrot.slane %v5320_v22, %v7291_v14 }
 0x306   :  { %v5349_v28 = vcombine.high %v5327_v29, %v5327_v29  ;;  %v5350_v52 = vcombine.high %v5334_v44, %v5334_v44  ;;  %v5351_v50 = vcombine.high %v5341_v17, %v5341_v17  ;;  %v5352_v13 = vcombine.high %v5348_v51, %v5348_v51  ;;  %5362 = vst.msk [vmem:[#allocation7 + $0x7] ss:$8 sm:$0xf] %vm7297_vm7, %v5327_v29 }
 0x307   :  { %5365 = vst.msk [vmem:[#allocation7 + $0x27] ss:$8 sm:$0xf] %vm7297_vm7, %v5341_v17  ;;  %5374 = vst.msk [vmem:[#allocation7 + $0x87] ss:$8 sm:$0xf] %vm7297_vm7, %v5334_v44 }
 0x308   :  { %5377 = vst.msk [vmem:[#allocation7 + $0xa7] ss:$8 sm:$0xf] %vm7297_vm7, %v5348_v51  ;;  %5368 = vst.msk [vmem:[#allocation7 + $0x47] ss:$8 sm:$0xf] %vm7297_vm7, %v5349_v28 }
 0x309   :  { %5371 = vst.msk [vmem:[#allocation7 + $0x67] ss:$8 sm:$0xf] %vm7297_vm7, %v5351_v50  ;;  %5380 = vst.msk [vmem:[#allocation7 + $0xc7] ss:$8 sm:$0xf] %vm7297_vm7, %v5350_v52 }
 0x30a   :  { %5383 = vst.msk [vmem:[#allocation7 + $0xe7] ss:$8 sm:$0xf] %vm7297_vm7, %v5352_v13 }
 0x30b   :  { %7004 = shalt.err (!%p7001_p6)
}
 0x30c   :  { %s7005_s12 = scalar_lea.hbm %s7719_s2, 4096 }
 0x30d   :  { %p7006_p7 = scmp.ne.s32.totalorder %s7719_s2, %s7005_s12  ;;  %p7009_p8 = scmp.lt.u32.totalorder %s7005_s12, %s7719_s2 }
 0x30f   :  { %p7011_p9 = pnand %p7009_p8, %p7006_p7 }
 0x311   :  { %7014 = shalt.err (!%p7011_p9)
}
 0x312   :  { %s7029_s17 = smov 512   ;;  %s7030_s18 = smov 32  }
 0x313   :  { %5396 = dma.vmem_to_hbm [thread:$0]  %s7682_s8, 4096, %s7719_s2, [#allocation4], %s7029_s17, %s7029_s17, %s7030_s18  }
 0x314   :  { %7019 = dma.done.wait [#allocation4], 4096  }
 0x315   :  { %7020 = vsyncadd [#allocation4], 4294963200 }
 0x316   :  { %5400 = vsyncpa [#allocation3], 1 }
 0x317   :  { %5401 = vsyncpa [#allocation6], 1 }
 0x318   :  { %5402 = vsyncpa [#allocation4], 1 }

</bundles_post_ra>
